<compile_context>
chip_gen: v6e
topology: v6e:2x2x1
jax: 0.10.0
libtpu: 0.0.40
codegen_flags: <defaults>
</compile_context>

<pallas_src>
import math
import jax
import jax.numpy as jnp
from jax import lax
from jax.experimental import pallas as pl
from jax.experimental.pallas import tpu as pltpu

_INV_SQRT2 = 1.0 / math.sqrt(2.0)
_LN_EPS = 1e-12


def _gelu_erf(x):
    # UNITER GELU: x * 0.5 * (1 + erf(x / sqrt(2)))
    return x * 0.5 * (1.0 + lax.erf(x * _INV_SQRT2))


def _round_up(a, b):
    return ((a + b - 1) // b) * b


def _cdiv(a, b):
    return -(-a // b)


def region_cls_kernel(x_ref, w1_ref, b1_ref, w2_ref, b2_ref, o_ref):
    # ---- Linear 1 (hidden -> hidden): cast x tile to bf16 in-kernel, f32 accumulation ----
    x = x_ref[...].astype(w1_ref.dtype)
    h = jnp.dot(x, w1_ref[...], preferred_element_type=jnp.float32)
    h = h + b1_ref[...]                                   # [TM, H] f32

    # ---- GELU (exact erf variant), f32 elementwise ----
    h = _gelu_erf(h)

    # ---- LayerNorm, eps=1e-12, single-pass statistics; gamma/beta folded into W2/b2 ----
    mean = jnp.mean(h, axis=-1, keepdims=True)
    mean_sq = jnp.mean(h * h, axis=-1, keepdims=True)
    var = jnp.maximum(mean_sq - mean * mean, 0.0)
    h = (h - mean) * lax.rsqrt(var + _LN_EPS)

    # ---- Linear 2 (hidden -> padded label_dim): bf16 MXU, f32 accumulation ----
    out = jnp.dot(h.astype(w2_ref.dtype), w2_ref[...],
                  preferred_element_type=jnp.float32)
    out = out + b2_ref[...]

    o_ref[...] = out.astype(o_ref.dtype)


def region_classification(x, w1, b1, gamma, beta, w2, b2, *,
                          tile_m=512, matmul_dtype=jnp.bfloat16):
    """x: [N, H]; w1: [H, H]; b1: [H]; gamma/beta: [H]; w2: [H, L]; b2: [L]."""
    N, H = x.shape
    L = w2.shape[1]
    out_dtype = x.dtype
    Lp = _round_up(L, 128)                               # lane-dense output width

    # ---- fold LayerNorm's elementwise affine into the second linear (wrapper-time) ----
    w2_f32 = w2.astype(jnp.float32)
    w2_fold = gamma.astype(jnp.float32)[:, None] * w2_f32               # [H, L]
    b2_fold = beta.astype(jnp.float32) @ w2_f32 + b2.astype(jnp.float32)  # [L]
    if Lp != L:
        w2_fold = jnp.pad(w2_fold, ((0, 0), (0, Lp - L)))
        b2_fold = jnp.pad(b2_fold, (0, Lp - L))
    w2_c = w2_fold.astype(matmul_dtype)                                 # [H, Lp] bf16
    b2_2d = b2_fold.reshape(1, Lp)                                      # f32
    w1_c = w1.astype(matmul_dtype)                                      # [H, H] bf16
    b1_2d = b1.astype(jnp.float32).reshape(1, H)

    # ---- VMEM capacity (generation-aware: 128 MiB v5e/v6e, 64 MiB/TC v7x) ----
    try:
        vmem_cap = int(pltpu.get_tpu_info().vmem_capacity_bytes)
    except Exception:
        vmem_cap = 64 << 20                                             # conservative

    itm_w = jnp.dtype(matmul_dtype).itemsize
    itm_x = jnp.dtype(x.dtype).itemsize
    itm_o = jnp.dtype(out_dtype).itemsize

    def vmem_estimate(tm, weight_bufs):
        weights = (H * H + H * Lp) * itm_w * weight_bufs                # resident weights
        biases = (H + Lp) * 4 * weight_bufs
        x_tiles = 2 * tm * H * itm_x                                    # double-buffered x tile
        o_tiles = 2 * tm * Lp * itm_o                                   # double-buffered out tile
        interm = 4 * tm * H * 4                                         # f32 h + temps headroom
        return weights + biases + x_tiles + o_tiles + interm

    # ---- choose the row tile: 16-aligned, fits VMEM, balanced across an even grid ----
    tile_m_eff = max(16, min(_round_up(tile_m, 16), _round_up(N, 16)))
    budget = vmem_cap - (8 << 20)
    while tile_m_eff > 64 and vmem_estimate(tile_m_eff, 2) > budget:    # conservative: 2 bufs
        tile_m_eff = max(64, _round_up(tile_m_eff // 2, 16))
    n_blocks = _cdiv(N, tile_m_eff)
    if n_blocks > 1 and n_blocks % 2 == 1:
        n_blocks += 1                                    # keep both v7x TensorCores busy
    tile_m_eff = _round_up(_cdiv(N, n_blocks), 16)       # re-balance -> minimal row padding
    Np = n_blocks * tile_m_eff

    # Pad rows only if the balanced grid overshoots; x stays in its native dtype
    # (bf16 cast happens inside the kernel).
    x_p = x if Np == N else jnp.pad(x, ((0, Np - N), (0, 0)))

    def run(single_buffer_weights):
        def const_spec(shape):
            if single_buffer_weights:
                return pl.BlockSpec(shape, lambda i: (0,) * len(shape),
                                    pipeline_mode=pl.Buffered(1))
            return pl.BlockSpec(shape, lambda i: (0,) * len(shape))

        est = vmem_estimate(tile_m_eff, 1 if single_buffer_weights else 2)
        vmem_limit = int(min(max(est + (16 << 20), 32 << 20), vmem_cap - (4 << 20)))

        out = pl.pallas_call(
            region_cls_kernel,
            out_shape=jax.ShapeDtypeStruct((Np, Lp), out_dtype),
            grid_spec=pltpu.PrefetchScalarGridSpec(
                num_scalar_prefetch=0,
                grid=(n_blocks,),
                in_specs=[
                    pl.BlockSpec((tile_m_eff, H), lambda i: (i, 0)),  # x row tile (native dtype)
                    const_spec((H, H)),                               # W1 (resident)
                    const_spec((1, H)),                               # b1
                    const_spec((H, Lp)),                              # W2 with gamma folded in
                    const_spec((1, Lp)),                              # b2 with beta@W2 folded in
                ],
                out_specs=pl.BlockSpec((tile_m_eff, Lp), lambda i: (i, 0)),
            ),
            compiler_params=pltpu.CompilerParams(
                dimension_semantics=("parallel",),
                vmem_limit_bytes=vmem_limit,
            ),
        )(x_p, w1_c, b1_2d, w2_c, b2_2d)
        return jax.block_until_ready(out)

    try:
        out_p = run(True)             # single-buffered resident weights
    except Exception:                 # pl.Buffered(1) not supported -> default pipelining
        out_p = run(False)

    # Drop row / label-dim padding; output is already in the caller dtype.
    return out_p[:N, :L]


def region_classification_ref(x, w1, b1, gamma, beta, w2, b2,
                              matmul_dtype=jnp.bfloat16):
    """Faithful forward (un-folded LN affine, two-pass stats) at matching matmul precision."""
    h = jnp.dot(x.astype(matmul_dtype), w1.astype(matmul_dtype),
                preferred_element_type=jnp.float32) + b1.astype(jnp.float32)
    h = _gelu_erf(h)
    mean = jnp.mean(h, axis=-1, keepdims=True)
    var = jnp.mean(jnp.square(h - mean), axis=-1, keepdims=True)
    h = (h - mean) * lax.rsqrt(var + _LN_EPS)
    h = h * gamma.astype(jnp.float32) + beta.astype(jnp.float32)
    out = jnp.dot(h.astype(matmul_dtype), w2.astype(matmul_dtype),
                  preferred_element_type=jnp.float32) + b2.astype(jnp.float32)
    return out.astype(x.dtype)


if __name__ == "__main__":
    key = jax.random.PRNGKey(0)
    # regions (not a multiple of the default tile -> exercises balanced tiling),
    # hidden_size, label_dim (< 128 -> exercises lane-dense output padding)
    N, H, L = 384, 256, 32

    ks = jax.random.split(key, 7)
    x = jax.random.normal(ks[0], (N, H), dtype=jnp.float32)
    w1 = jax.random.normal(ks[1], (H, H), dtype=jnp.float32) * (1.0 / math.sqrt(H))
    b1 = jax.random.normal(ks[2], (H,), dtype=jnp.float32) * 0.02
    gamma = 1.0 + 0.1 * jax.random.normal(ks[3], (H,), dtype=jnp.float32)
    beta = 0.05 * jax.random.normal(ks[4], (H,), dtype=jnp.float32)
    w2 = jax.random.normal(ks[5], (H, L), dtype=jnp.float32) * (1.0 / math.sqrt(H))
    b2 = jax.random.normal(ks[6], (L,), dtype=jnp.float32) * 0.02

    out = region_classification(x, w1, b1, gamma, beta, w2, b2, tile_m=256)
    out = jax.block_until_ready(out)

    ref = region_classification_ref(x, w1, b1, gamma, beta, w2, b2)
    assert out.shape == (N, L)
    max_err = float(jnp.max(jnp.abs(out - ref)))
    assert jnp.allclose(out, ref, atol=3e-2, rtol=3e-2), (
        f"mismatch vs reference (max abs err {max_err})")

    print("KERNEL_OK")
</pallas_src>

<mosaic_0001>
module attributes {stable_mosaic.version = 11 : i64} {
  func.func @region_cls_kernel(%arg0: i32, %arg1: memref<192x256xf32, #tpu.memory_space<vmem>>, %arg2: memref<256x256xbf16, #tpu.memory_space<vmem>>, %arg3: memref<1x256xf32, #tpu.memory_space<vmem>>, %arg4: memref<256x128xbf16, #tpu.memory_space<vmem>>, %arg5: memref<1x128xf32, #tpu.memory_space<vmem>>, %arg6: memref<192x128xf32, #tpu.memory_space<vmem>>) attributes {dimension_semantics = [#tpu.dimension_semantics<parallel>], iteration_bounds = array<i64: 2>, scalar_prefetch = 0 : i64, scratch_operands = 0 : i64, tpu.core_type = #tpu.core_type<tc>, window_params = [{transform_indices = @transform_0, window_bounds = array<i64: 192, 256>}, {pipeline_mode = #tpu.pipeline_mode<synchronous>, transform_indices = @transform_1, window_bounds = array<i64: 256, 256>}, {pipeline_mode = #tpu.pipeline_mode<synchronous>, transform_indices = @transform_2, window_bounds = array<i64: 1, 256>}, {pipeline_mode = #tpu.pipeline_mode<synchronous>, transform_indices = @transform_3, window_bounds = array<i64: 256, 128>}, {pipeline_mode = #tpu.pipeline_mode<synchronous>, transform_indices = @transform_4, window_bounds = array<i64: 1, 128>}, {transform_indices = @transform_5, window_bounds = array<i64: 192, 128>}]} {
    %c0 = arith.constant 0 : index
    %c0_0 = arith.constant 0 : index
    %0 = vector.load %arg1[%c0, %c0_0] : memref<192x256xf32, #tpu.memory_space<vmem>>, vector<192x256xf32>
    %1 = arith.truncf %0 : vector<192x256xf32> to vector<192x256xbf16>
    %c0_1 = arith.constant 0 : index
    %c0_2 = arith.constant 0 : index
    %2 = vector.load %arg2[%c0_1, %c0_2] : memref<256x256xbf16, #tpu.memory_space<vmem>>, vector<256x256xbf16>
    %cst = arith.constant dense<0.000000e+00> : vector<192x256xf32>
    %3 = tpu.matmul %1, %2, %cst {dimension_numbers = #tpu.dot_dimension_numbers<[1], [0], [0], [1], [0, 0, 1, 1], [], []>} : vector<192x256xbf16>, vector<256x256xbf16>, vector<192x256xf32> -> vector<192x256xf32>
    %c0_3 = arith.constant 0 : index
    %c0_4 = arith.constant 0 : index
    %4 = vector.load %arg3[%c0_3, %c0_4] : memref<1x256xf32, #tpu.memory_space<vmem>>, vector<1x256xf32>
    %5 = vector.broadcast %4 : vector<1x256xf32> to vector<192x256xf32>
    %6 = arith.addf %3, %5 : vector<192x256xf32>
    %cst_5 = arith.constant 5.000000e-01 : f32
    %7 = vector.broadcast %cst_5 : f32 to vector<192x256xf32>
    %8 = arith.mulf %6, %7 : vector<192x256xf32>
    %cst_6 = arith.constant 0.707106769 : f32
    %9 = vector.broadcast %cst_6 : f32 to vector<192x256xf32>
    %10 = arith.mulf %6, %9 : vector<192x256xf32>
    %11 = math.erf %10 : vector<192x256xf32>
    %cst_7 = arith.constant 1.000000e+00 : f32
    %12 = vector.broadcast %cst_7 : f32 to vector<192x256xf32>
    %13 = arith.addf %12, %11 : vector<192x256xf32>
    %14 = arith.mulf %8, %13 : vector<192x256xf32>
    %cst_8 = arith.constant dense<0.000000e+00> : vector<192xf32>
    %15 = vector.multi_reduction <add>, %14, %cst_8 [1] : vector<192x256xf32> to vector<192xf32>
    %16 = vector.shape_cast %15 : vector<192xf32> to vector<192x1xf32>
    %cst_9 = arith.constant 2.560000e+02 : f32
    %17 = vector.broadcast %cst_9 : f32 to vector<192x1xf32>
    %18 = arith.divf %16, %17 : vector<192x1xf32>
    %19 = arith.mulf %14, %14 : vector<192x256xf32>
    %cst_10 = arith.constant dense<0.000000e+00> : vector<192xf32>
    %20 = vector.multi_reduction <add>, %19, %cst_10 [1] : vector<192x256xf32> to vector<192xf32>
    %21 = vector.shape_cast %20 : vector<192xf32> to vector<192x1xf32>
    %cst_11 = arith.constant 2.560000e+02 : f32
    %22 = vector.broadcast %cst_11 : f32 to vector<192x1xf32>
    %23 = arith.divf %21, %22 : vector<192x1xf32>
    %24 = arith.mulf %18, %18 : vector<192x1xf32>
    %25 = arith.subf %23, %24 : vector<192x1xf32>
    %cst_12 = arith.constant 0.000000e+00 : f32
    %26 = vector.broadcast %cst_12 : f32 to vector<192x1xf32>
    %27 = arith.maximumf %25, %26 : vector<192x1xf32>
    %28 = vector.broadcast %18 : vector<192x1xf32> to vector<192x256xf32>
    %29 = arith.subf %14, %28 : vector<192x256xf32>
    %cst_13 = arith.constant 9.99999996E-13 : f32
    %30 = vector.broadcast %cst_13 : f32 to vector<192x1xf32>
    %31 = arith.addf %27, %30 : vector<192x1xf32>
    %32 = math.rsqrt %31 : vector<192x1xf32>
    %33 = vector.broadcast %32 : vector<192x1xf32> to vector<192x256xf32>
    %34 = arith.mulf %29, %33 : vector<192x256xf32>
    %35 = arith.truncf %34 : vector<192x256xf32> to vector<192x256xbf16>
    %c0_14 = arith.constant 0 : index
    %c0_15 = arith.constant 0 : index
    %36 = vector.load %arg4[%c0_14, %c0_15] : memref<256x128xbf16, #tpu.memory_space<vmem>>, vector<256x128xbf16>
    %cst_16 = arith.constant dense<0.000000e+00> : vector<192x128xf32>
    %37 = tpu.matmul %35, %36, %cst_16 {dimension_numbers = #tpu.dot_dimension_numbers<[1], [0], [0], [1], [0, 0, 1, 1], [], []>} : vector<192x256xbf16>, vector<256x128xbf16>, vector<192x128xf32> -> vector<192x128xf32>
    %c0_17 = arith.constant 0 : index
    %c0_18 = arith.constant 0 : index
    %38 = vector.load %arg5[%c0_17, %c0_18] : memref<1x128xf32, #tpu.memory_space<vmem>>, vector<1x128xf32>
    %39 = vector.broadcast %38 : vector<1x128xf32> to vector<192x128xf32>
    %40 = arith.addf %37, %39 : vector<192x128xf32>
    %c0_19 = arith.constant 0 : index
    %c0_20 = arith.constant 0 : index
    %41 = vector.load %arg6[%c0_19, %c0_20] : memref<192x128xf32, #tpu.memory_space<vmem>>, vector<192x128xf32>
    tpu.vector_store %arg6[%c0_19, %c0_20], %40 {strides = array<i32>} : memref<192x128xf32, #tpu.memory_space<vmem>>, vector<192x128xf32>,
    return
  }
  func.func @transform_0(%arg0: i32) -> (i32, i32) {
    %c0_i32 = arith.constant 0 : i32
    %c0_i32_0 = arith.constant 0 : i32
    return %arg0, %c0_i32 : i32, i32
  }
  func.func @transform_1(%arg0: i32) -> (i32, i32) {
    %c0_i32 = arith.constant 0 : i32
    %c0_i32_0 = arith.constant 0 : i32
    %c0_i32_1 = arith.constant 0 : i32
    return %c0_i32, %c0_i32_0 : i32, i32
  }
  func.func @transform_2(%arg0: i32) -> (i32, i32) {
    %c0_i32 = arith.constant 0 : i32
    %c0_i32_0 = arith.constant 0 : i32
    %c0_i32_1 = arith.constant 0 : i32
    return %c0_i32, %c0_i32_0 : i32, i32
  }
  func.func @transform_3(%arg0: i32) -> (i32, i32) {
    %c0_i32 = arith.constant 0 : i32
    %c0_i32_0 = arith.constant 0 : i32
    %c0_i32_1 = arith.constant 0 : i32
    return %c0_i32, %c0_i32_0 : i32, i32
  }
  func.func @transform_4(%arg0: i32) -> (i32, i32) {
    %c0_i32 = arith.constant 0 : i32
    %c0_i32_0 = arith.constant 0 : i32
    %c0_i32_1 = arith.constant 0 : i32
    return %c0_i32, %c0_i32_0 : i32, i32
  }
  func.func @transform_5(%arg0: i32) -> (i32, i32) {
    %c0_i32 = arith.constant 0 : i32
    %c0_i32_0 = arith.constant 0 : i32
    return %arg0, %c0_i32 : i32, i32
  }
}

module attributes {stable_mosaic.version = 11 : i64} {
  func.func @region_cls_kernel(%arg0: i32, %arg1: memref<192x256xf32, #tpu.memory_space<vmem>>, %arg2: memref<256x256xbf16, #tpu.memory_space<vmem>>, %arg3: memref<1x256xf32, #tpu.memory_space<vmem>>, %arg4: memref<256x128xbf16, #tpu.memory_space<vmem>>, %arg5: memref<1x128xf32, #tpu.memory_space<vmem>>, %arg6: memref<192x128xf32, #tpu.memory_space<vmem>>) attributes {dimension_semantics = [#tpu.dimension_semantics<parallel>], iteration_bounds = array<i64: 2>, scalar_prefetch = 0 : i64, scratch_operands = 0 : i64, tpu.core_type = #tpu.core_type<tc>, window_params = [{transform_indices = @transform_0, window_bounds = array<i64: 192, 256>}, {pipeline_mode = #tpu.pipeline_mode<synchronous>, transform_indices = @transform_1, window_bounds = array<i64: 256, 256>}, {pipeline_mode = #tpu.pipeline_mode<synchronous>, transform_indices = @transform_2, window_bounds = array<i64: 1, 256>}, {pipeline_mode = #tpu.pipeline_mode<synchronous>, transform_indices = @transform_3, window_bounds = array<i64: 256, 128>}, {pipeline_mode = #tpu.pipeline_mode<synchronous>, transform_indices = @transform_4, window_bounds = array<i64: 1, 128>}, {transform_indices = @transform_5, window_bounds = array<i64: 192, 128>}]} {
    %c0 = arith.constant 0 : index
    %c0_0 = arith.constant 0 : index
    %0 = vector.load %arg1[%c0, %c0_0] : memref<192x256xf32, #tpu.memory_space<vmem>>, vector<192x256xf32>
    %1 = arith.truncf %0 : vector<192x256xf32> to vector<192x256xbf16>
    %c0_1 = arith.constant 0 : index
    %c0_2 = arith.constant 0 : index
    %2 = vector.load %arg2[%c0_1, %c0_2] : memref<256x256xbf16, #tpu.memory_space<vmem>>, vector<256x256xbf16>
    %cst = arith.constant dense<0.000000e+00> : vector<192x256xf32>
    %3 = tpu.matmul %1, %2, %cst {dimension_numbers = #tpu.dot_dimension_numbers<[1], [0], [0], [1], [0, 0, 1, 1], [], []>} : vector<192x256xbf16>, vector<256x256xbf16>, vector<192x256xf32> -> vector<192x256xf32>
    %c0_3 = arith.constant 0 : index
    %c0_4 = arith.constant 0 : index
    %4 = vector.load %arg3[%c0_3, %c0_4] : memref<1x256xf32, #tpu.memory_space<vmem>>, vector<1x256xf32>
    %5 = vector.broadcast %4 : vector<1x256xf32> to vector<192x256xf32>
    %6 = arith.addf %3, %5 : vector<192x256xf32>
    %cst_5 = arith.constant 5.000000e-01 : f32
    %7 = vector.broadcast %cst_5 : f32 to vector<192x256xf32>
    %8 = arith.mulf %6, %7 : vector<192x256xf32>
    %cst_6 = arith.constant 0.707106769 : f32
    %9 = vector.broadcast %cst_6 : f32 to vector<192x256xf32>
    %10 = arith.mulf %6, %9 : vector<192x256xf32>
    %11 = math.erf %10 : vector<192x256xf32>
    %cst_7 = arith.constant 1.000000e+00 : f32
    %12 = vector.broadcast %cst_7 : f32 to vector<192x256xf32>
    %13 = arith.addf %12, %11 : vector<192x256xf32>
    %14 = arith.mulf %8, %13 : vector<192x256xf32>
    %cst_8 = arith.constant dense<0.000000e+00> : vector<192xf32>
    %15 = vector.multi_reduction <add>, %14, %cst_8 [1] : vector<192x256xf32> to vector<192xf32>
    %16 = vector.shape_cast %15 : vector<192xf32> to vector<192x1xf32>
    %cst_9 = arith.constant 2.560000e+02 : f32
    %17 = vector.broadcast %cst_9 : f32 to vector<192x1xf32>
    %18 = arith.divf %16, %17 : vector<192x1xf32>
    %19 = arith.mulf %14, %14 : vector<192x256xf32>
    %cst_10 = arith.constant dense<0.000000e+00> : vector<192xf32>
    %20 = vector.multi_reduction <add>, %19, %cst_10 [1] : vector<192x256xf32> to vector<192xf32>
    %21 = vector.shape_cast %20 : vector<192xf32> to vector<192x1xf32>
    %cst_11 = arith.constant 2.560000e+02 : f32
    %22 = vector.broadcast %cst_11 : f32 to vector<192x1xf32>
    %23 = arith.divf %21, %22 : vector<192x1xf32>
    %24 = arith.mulf %18, %18 : vector<192x1xf32>
    %25 = arith.subf %23, %24 : vector<192x1xf32>
    %cst_12 = arith.constant 0.000000e+00 : f32
    %26 = vector.broadcast %cst_12 : f32 to vector<192x1xf32>
    %27 = arith.maximumf %25, %26 : vector<192x1xf32>
    %28 = vector.broadcast %18 : vector<192x1xf32> to vector<192x256xf32>
    %29 = arith.subf %14, %28 : vector<192x256xf32>
    %cst_13 = arith.constant 9.99999996E-13 : f32
    %30 = vector.broadcast %cst_13 : f32 to vector<192x1xf32>
    %31 = arith.addf %27, %30 : vector<192x1xf32>
    %32 = math.rsqrt %31 : vector<192x1xf32>
    %33 = vector.broadcast %32 : vector<192x1xf32> to vector<192x256xf32>
    %34 = arith.mulf %29, %33 : vector<192x256xf32>
    %35 = arith.truncf %34 : vector<192x256xf32> to vector<192x256xbf16>
    %c0_14 = arith.constant 0 : index
    %c0_15 = arith.constant 0 : index
    %36 = vector.load %arg4[%c0_14, %c0_15] : memref<256x128xbf16, #tpu.memory_space<vmem>>, vector<256x128xbf16>
    %cst_16 = arith.constant dense<0.000000e+00> : vector<192x128xf32>
    %37 = tpu.matmul %35, %36, %cst_16 {dimension_numbers = #tpu.dot_dimension_numbers<[1], [0], [0], [1], [0, 0, 1, 1], [], []>} : vector<192x256xbf16>, vector<256x128xbf16>, vector<192x128xf32> -> vector<192x128xf32>
    %c0_17 = arith.constant 0 : index
    %c0_18 = arith.constant 0 : index
    %38 = vector.load %arg5[%c0_17, %c0_18] : memref<1x128xf32, #tpu.memory_space<vmem>>, vector<1x128xf32>
    %39 = vector.broadcast %38 : vector<1x128xf32> to vector<192x128xf32>
    %40 = arith.addf %37, %39 : vector<192x128xf32>
    %c0_19 = arith.constant 0 : index
    %c0_20 = arith.constant 0 : index
    %41 = vector.load %arg6[%c0_19, %c0_20] : memref<192x128xf32, #tpu.memory_space<vmem>>, vector<192x128xf32>
    tpu.vector_store %arg6[%c0_19, %c0_20], %40 {strides = array<i32>} : memref<192x128xf32, #tpu.memory_space<vmem>>, vector<192x128xf32>,
    return
  }
  func.func @transform_0(%arg0: i32) -> (i32, i32) {
    %c0_i32 = arith.constant 0 : i32
    %c0_i32_0 = arith.constant 0 : i32
    return %arg0, %c0_i32 : i32, i32
  }
  func.func @transform_1(%arg0: i32) -> (i32, i32) {
    %c0_i32 = arith.constant 0 : i32
    %c0_i32_0 = arith.constant 0 : i32
    %c0_i32_1 = arith.constant 0 : i32
    return %c0_i32, %c0_i32_0 : i32, i32
  }
  func.func @transform_2(%arg0: i32) -> (i32, i32) {
    %c0_i32 = arith.constant 0 : i32
    %c0_i32_0 = arith.constant 0 : i32
    %c0_i32_1 = arith.constant 0 : i32
    return %c0_i32, %c0_i32_0 : i32, i32
  }
  func.func @transform_3(%arg0: i32) -> (i32, i32) {
    %c0_i32 = arith.constant 0 : i32
    %c0_i32_0 = arith.constant 0 : i32
    %c0_i32_1 = arith.constant 0 : i32
    return %c0_i32, %c0_i32_0 : i32, i32
  }
  func.func @transform_4(%arg0: i32) -> (i32, i32) {
    %c0_i32 = arith.constant 0 : i32
    %c0_i32_0 = arith.constant 0 : i32
    %c0_i32_1 = arith.constant 0 : i32
    return %c0_i32, %c0_i32_0 : i32, i32
  }
  func.func @transform_5(%arg0: i32) -> (i32, i32) {
    %c0_i32 = arith.constant 0 : i32
    %c0_i32_0 = arith.constant 0 : i32
    return %arg0, %c0_i32 : i32, i32
  }
}

</mosaic_0001>

<bundles_post_ra>
// kernel: tpu_custom_call.1
= control target key start
LH: loop header
LB: loop body
LE: loop exit
PB: predicated region body
PF: predicated region fallthrough
CT: control target
= control target key end

     0   :  { %10 = vsyncpa [#allocation3], 0  ;;  %s3396_s0 = inlined_call_operand.hbm [shape: f32[384,256], index: 0, kind: input, shape index: {}]   ;;  %s3397_s1 = inlined_call_operand.hbm [shape: bf16[256,256], index: 1, kind: input, shape index: {}]   ;;  %s3398_s2 = inlined_call_operand.vmem [shape: f32[1,256], index: 2, kind: input, shape index: {}]   ;;  %s3399_s3 = inlined_call_operand.hbm [shape: bf16[256,128], index: 3, kind: input, shape index: {}]   ;;  %s3400_s4 = inlined_call_operand.vmem [shape: f32[1,128], index: 4, kind: input, shape index: {}]   ;;  %s3401_s5 = inlined_call_operand.hbm [shape: f32[384,128], index: 5, kind: output, shape index: {}]  }
   0x1   :  { %12 = vsyncpa [#allocation3 + $0x1], 0 }
   0x2   :  { %13 = vsyncpa [#allocation6], 0 }
   0x3   :  { %14 = vsyncpa [#allocation4], 0 }
   0x4   :  { %16 = vsyncpa [#allocation4 + $0x1], 0  ;;  %s2452_s18 = smov 0   ;;  %s2454_s19 = smov 0  }
   0x5   :  { %s2456_s20 = smov 0   ;;  %s2458_s21 = smov 0  }
   0x6 LB: > { %s2473_s22 = sadd.s32 4294967295, %s2408_s21   ;;  %s1820_s23 = sadd.s32 4294967294, %s2408_s21   ;;  %s2408_s21 = sphi %s2458_s21, %s3456_s21   ;;  %s2404_s20 = sphi %s2456_s20, %s3455_s20   ;;  %s2400_s19 = sphi %s2454_s19, %s3454_s19   ;;  %s2396_s18 = sphi %s2452_s18, %s3453_s18  }
   0x7   : > { %p42_p0 = scmp.ne.s32.totalorder %s2400_s19, %s2396_s18  ;;  %p3402_p1 = scmp.eq.s32.totalorder %s2473_s22, 0 }
   0x8   : > { %p156_p3 = scmp.eq.s32.totalorder %s1820_s23, 1  ;;  %p1821_p5 = scmp.ge.s32.totalorder %s2408_s21, 1 }
   0x9   : > { %p2482_p4 = por %p3402_p1, %p42_p0  ;;  %p163_p7 = scmp.lt.s32.totalorder %s2408_s21, 3 }
   0xa   : > { %p2487_p6 = por %p156_p3, %p42_p0  ;;  %s2410_s27 = smov [#allocation5]  }
   0xb   : > { %s3417_s24 = scalar_select %p2482_p4, 1, 0 }
   0xc   : > { %s3418_s25 = scalar_select %p2487_p6, 1, 0 }
   0xd   : > { %p2492_p8 = pnand %p1821_p5, %p163_p7  ;;  %s175_s28 = sshll.u32 %s2410_s27, 4  ;;  %s176_s28 = int_to_ptr.vmem [resolvable:$true] %s175_s28 }
   0xe   : > { %s2411_s30 = smov [#allocation7]   ;;  %s2271_s7 = scalar_lea.vmem %s176_s28, 4096 }
   0xf   : > { %s3419_s26 = scalar_select %p2492_p8, 1, 0 }
  0x10   : > { %p1989_p9 = pneg %p2492_p8  ;;  %s191_s6 = sshll.u32 %s2411_s30, 4  ;;  %s192_s6 = int_to_ptr.vmem [resolvable:$true] %s191_s6 }
  0x11   : > { %p2272_p13 = scmp.ne.s32.totalorder %s176_s28, %s2271_s7  ;;  %p2279_p5 = scmp.lt.s32.totalorder %s176_s28, %s176_s28 }
  0x12   : > { %p2501_p11 = pnand %p1989_p9, %p3402_p1  ;;  %p2280_p7 = scmp.lt.s32.totalorder %s2271_s7, %s2271_s7 }
  0x14   : > { %p2262_p12 = pneg %p2501_p11  ;;  %p2281_p10 = por %p2280_p7, %p2279_p5 }
  0x16   : > { %p2274_p0 = pnand %p2272_p13, %p2262_p12 }
  0x18   : > { %p2275_p3 = pneg %p2274_p0 }
  0x1a   : > { %p2282_p9 = pnand %p2281_p10, %p2275_p3 }
  0x1c   : > { %2285 = shalt.err (!%p2282_p9)
}
  0x1d   : > { %s2412_s8 = smov 128   ;;  %s2413_s9 = smov 8  }
  0x1e   : > { %1992 = dma.hbm_to_vmem [thread:$0]  (!%p2501_p11), %s3397_s1, 4096, %s176_s28, [#allocation6], %s2412_s8, %s2412_s8, %s2413_s9  }
  0x1f   : > { %s2297_s12 = scalar_lea.vmem %s192_s6, 2048  ;;  %p2305_p2 = scmp.lt.s32.totalorder %s192_s6, %s192_s6 }
  0x20   : > { %p2298_p1 = scmp.ne.s32.totalorder %s192_s6, %s2297_s12  ;;  %p2306_p6 = scmp.lt.s32.totalorder %s2297_s12, %s2297_s12 }
  0x22   : > { %p2300_p13 = pnand %p2298_p1, %p2262_p12  ;;  %p2307_p5 = por %p2306_p6, %p2305_p2 }
  0x24   : > { %p2301_p0 = pneg %p2300_p13 }
  0x26   : > { %p2308_p10 = pnand %p2307_p5, %p2301_p0 }
  0x28   : > { %2311 = shalt.err (!%p2308_p10)
}
  0x29   : > { %s2414_s13 = smov 64   ;;  %s2415_s14 = smov 4  }
  0x2a   : > { %1995 = dma.hbm_to_vmem [thread:$0]  (!%p2501_p11), %s3399_s3, 2048, %s192_s6, [#allocation6], %s2414_s13, %s2414_s13, %s2415_s14  }
  0x2b   : > { %s2524_s17 = sadd.s32 1, %s2408_s21   ;;  %s29_s27 = sadd.s32 1, %s2404_s20 }
  0x2c   : > { %s26_s23 = ssub.s32 %s2408_s21, %s2524_s17  ;;  %p36_p2 = scmp.ne.s32.totalorder %s2404_s20, %s2400_s19 }
  0x2d   : > { %p27_p1 = scmp.eq.s32.totalorder %s26_s23, 0  ;;  %p37_p6 = scmp.eq.s32.totalorder %s2408_s21, 0 }
  0x2e   : > { %p3421_p3 = scmp.eq.s32.totalorder %s2473_s22, 1  ;;  %p2006_p9 = scmp.lt.s32.totalorder %s2408_s21, 2 }
  0x2f   : > { %s2533_s28 = scalar_select %p27_p1, %s2404_s20, %s29_s27  }
  0x30   : > { %p38_p12 = por %p37_p6, %p36_p2  ;;  %p2537_p7 = por %p3421_p3, %p36_p2 }
  0x31   : > { %s208_s29 = sand.u32 1, %s2404_s20   ;;  %s1885_s6 = smul.u32 6144, %s2408_s21 }
  0x32   : > { %s3422_s30 = scalar_select %p2537_p7, 1, 0 }
  0x33   : > { %s1974_s7 = smul.u32 384, %s208_s29  ;;  %p2544_p11 = pnand %p2006_p9, %p38_p12 }
  0x34   : > { %s2551_s11 = scalar_lea.hbm %s3396_s0, %s1885_s6  ;;  %s2555_s14 = scalar_lea.sflag [#allocation3], %s208_s29 }
  0x35   : > { %s212_s12 = scalar_lea.vmem [#allocation2], %s1974_s7  ;;  %s2312_s15 = scalar_lea.hbm %s2551_s11, 6144 }
  0x36   : > { %s220_s13 = sshll.u32 %s212_s12, 4  ;;  %p2313_p13 = scmp.ne.s32.totalorder %s2551_s11, %s2312_s15  ;;  %s2553_s13 = int_to_ptr.vmem [resolvable:$true] %s220_s13 }
  0x37   : > { %p2314_p0 = pneg %p2544_p11  ;;  %s2317_s27 = scalar_lea.hbm %s3396_s0, 12288 }
  0x38   : > { %p2318_p1 = scmp.lt.s32.totalorder %s2551_s11, %s3396_s0  ;;  %p2319_p2 = scmp.lt.s32.totalorder %s2317_s27, %s2312_s15 }
  0x39   : > { %p2315_p5 = pnand %p2314_p0, %p2313_p13 }
  0x3a   : > { %p2320_p6 = por %p2319_p2, %p2318_p1 }
  0x3b   : > { %p2316_p10 = pneg %p2315_p5 }
  0x3d   : > { %p2321_p12 = pnand %p2320_p6, %p2316_p10 }
  0x3f   : > { %2324 = shalt.err (!%p2321_p12)
}
  0x40   : > { %s2325_s29 = scalar_lea.vmem %s2553_s13, 6144  ;;  %s2416_s7 = smov [#allocation2]  }
  0x41   : > { %p2326_p3 = scmp.ne.s32.totalorder %s2553_s13, %s2325_s29  ;;  %s2330_s10 = sshll.u32 %s2416_s7, 4  ;;  %s2331_s10 = int_to_ptr.vmem [resolvable:$false] %s2330_s10 }
  0x42   : > { %s2332_s12 = scalar_lea.vmem %s2331_s10, 12288  ;;  %p2333_p5 = scmp.lt.s32.totalorder %s2553_s13, %s2331_s10 }
  0x43   : > { %p2328_p9 = pnand %p2326_p3, %p2314_p0  ;;  %p2334_p7 = scmp.lt.s32.totalorder %s2332_s12, %s2325_s29 }
  0x45   : > { %p2329_p13 = pneg %p2328_p9  ;;  %p2335_p4 = por %p2334_p7, %p2333_p5 }
  0x47   : > { %p2336_p8 = pnand %p2335_p4, %p2329_p13 }
  0x49   : > { %2339 = shalt.err (!%p2336_p8)
}
  0x4a   : > { %s2417_s15 = smov 256   ;;  %s2418_s16 = smov 16  }
  0x4b   : > { %1999 = dma.hbm_to_vmem [thread:$0]  (!%p2544_p11), %s2551_s11, 6144, %s2553_s13, %s2555_s14, %s2417_s15, %s2417_s15, %s2418_s16  }
  0x4c   : > { %p3424_p0 = scmp.ne.s32.totalorder %s3419_s26, 0 }
  0x4e   : > { %232 = sbr.rel (%p3424_p0) target bundleno = 854 (0x356), region = 40 }
  0x53   : > { %s2579_s23 = sand.u32 1, %s2400_s19   ;;  %p3425_p4 = scmp.ne.s32.totalorder %s3417_s24, 0 }
  0x54   : > { %s1975_s27 = smul.u32 384, %s2579_s23  ;;  %s235_s6 = scalar_lea.sflag [#allocation3], %s2579_s23 }
  0x56   : > { %s2583_s9 = scalar_lea.vmem [#allocation2], %s1975_s27 }
  0x57   : > { %2383 = dma.done.wait (%p3425_p4), %s235_s6, 6144  }
  0x58   : > { %2385 = vsyncadd (%p3425_p4), %s235_s6, 4294961152  ;;  %p3426_p8 = scmp.eq.s32.totalorder %s2473_s22, 0 }
  0x5a   : > { %2387 = dma.done.wait (%p3426_p8), [#allocation6], 6144   ;;  %p3427_p7 = pmov %p3426_p8 }
  0x5b   : > { %v2052_v0 = vld [vmem:[#allocation5 + $0x74] ss:$8 sps:$4 sm:$0xff]   ;;  %v2054_v1 = vld [vmem:[#allocation5 + $0x70] ss:$8 sps:$4 sm:$0xff]   ;;  %v2055_v2 = vld [vmem:[#allocation5 + $0x64] ss:$8 sps:$4 sm:$0xff]  }
  0x5c   : > { %2389 = vsyncadd (%p3427_p7), [#allocation6], 4294961152  ;;  %552 = vmatprep.subr.bf16.mxu0 %v2052_v0  ;;  %v2057_v3 = vld [vmem:[#allocation5 + $0x60] ss:$8 sps:$4 sm:$0xff]   ;;  %v2058_v4 = vld [vmem:[#allocation5 + $0x54] ss:$8 sps:$4 sm:$0xff]  }
  0x5d   : > { %553 = vmatpush1.bf16.msra.mxu0 %v2054_v1  ;;  %v2060_v5 = vld [vmem:[#allocation5 + $0x50] ss:$8 sps:$4 sm:$0xff]   ;;  %v2061_v6 = vld [vmem:[#allocation5 + $0x44] ss:$8 sps:$4 sm:$0xff]   ;;  %v2063_v7 = vld [vmem:[#allocation5 + $0x40] ss:$8 sps:$4 sm:$0xff]  }
  0x5e   : > { %554 = vmatprep.subr.bf16.mxu0 %v2055_v2  ;;  %v2064_v8 = vld [vmem:[#allocation5 + $0x34] ss:$8 sps:$4 sm:$0xff]   ;;  %v2066_v9 = vld [vmem:[#allocation5 + $0x30] ss:$8 sps:$4 sm:$0xff]   ;;  %v2067_v10 = vld [vmem:[#allocation5 + $0x24] ss:$8 sps:$4 sm:$0xff]  }
  0x5f   : > { %v2069_v11 = vld [vmem:[#allocation5 + $0x20] ss:$8 sps:$4 sm:$0xff]   ;;  %v2070_v12 = vld [vmem:[#allocation5 + $0x14] ss:$8 sps:$4 sm:$0xff]   ;;  %v2072_v16 = vld [vmem:[#allocation5 + $0x10] ss:$8 sps:$4 sm:$0xff]  }
  0x60   : > { %v277_v13 = vld [vmem:[%s2583_s9 + $0x8] sm:$0xff]  ;;  %v279_v14 = vld [vmem:[%s2583_s9 + $0x18] sm:$0xff]  ;;  %v276_v35 = vld [vmem:[%s2583_s9] sm:$0xff]  ;;  %s1976_s8 = smul.u32 192, %s2579_s23  ;;  %p3450_p10 = scmp.ne.s32.totalorder %s3422_s30, 0 }
  0x61   : > { %555 = vmatpush1.bf16.msra.mxu0 %v2057_v3  ;;  %v325_v15 = vpack.c.bf16 %v279_v14, %v277_v13  ;;  %v2073_v17 = vld [vmem:[#allocation5 + $0x4] ss:$8 sps:$4 sm:$0xff]   ;;  %v2075_v18 = vld [vmem:[#allocation5] ss:$8 sps:$4 sm:$0xff]   ;;  %v2076_v19 = vld [vmem:[#allocation5 + $0xf4] ss:$8 sps:$4 sm:$0xff]  }
  0x62   : > { %556 = vmatprep.subr.bf16.mxu0 %v2058_v4  ;;  %v2078_v20 = vld [vmem:[#allocation5 + $0xf0] ss:$8 sps:$4 sm:$0xff]   ;;  %v2079_v21 = vld [vmem:[#allocation5 + $0xe4] ss:$8 sps:$4 sm:$0xff]   ;;  %v2081_v22 = vld [vmem:[#allocation5 + $0xe0] ss:$8 sps:$4 sm:$0xff]  }
  0x63   : > { %584 = vmatprep.mubr.bf16.mxu0 %v325_v15  ;;  %v2082_v23 = vld [vmem:[#allocation5 + $0xd4] ss:$8 sps:$4 sm:$0xff]   ;;  %v2084_v24 = vld [vmem:[#allocation5 + $0xd0] ss:$8 sps:$4 sm:$0xff]   ;;  %v2085_v25 = vld [vmem:[#allocation5 + $0xc4] ss:$8 sps:$4 sm:$0xff]  }
  0x64   : > { %v2087_v26 = vld [vmem:[#allocation5 + $0xc0] ss:$8 sps:$4 sm:$0xff]   ;;  %v2088_v27 = vld [vmem:[#allocation5 + $0xb4] ss:$8 sps:$4 sm:$0xff]   ;;  %v2090_v28 = vld [vmem:[#allocation5 + $0xb0] ss:$8 sps:$4 sm:$0xff]  }
  0x65   : > { %557 = vmatpush1.bf16.msra.mxu0 %v2060_v5  ;;  %v2091_v29 = vld [vmem:[#allocation5 + $0xa4] ss:$8 sps:$4 sm:$0xff]   ;;  %v2093_v30 = vld [vmem:[#allocation5 + $0xa0] ss:$8 sps:$4 sm:$0xff]   ;;  %v2094_v31 = vld [vmem:[#allocation5 + $0x94] ss:$8 sps:$4 sm:$0xff]  }
  0x66   : > { %558 = vmatprep.subr.bf16.mxu0 %v2061_v6  ;;  %v2096_v32 = vld [vmem:[#allocation5 + $0x90] ss:$8 sps:$4 sm:$0xff]   ;;  %v2097_v33 = vld [vmem:[#allocation5 + $0x84] ss:$8 sps:$4 sm:$0xff]   ;;  %v2099_v34 = vld [vmem:[#allocation5 + $0x80] ss:$8 sps:$4 sm:$0xff]  }
  0x67   : > { %v278_v36 = vld [vmem:[%s2583_s9 + $0x10] sm:$0xff]  ;;  %v281_v37 = vld [vmem:[%s2583_s9 + $0x28] sm:$0xff]  ;;  %v283_v38 = vld [vmem:[%s2583_s9 + $0x38] sm:$0xff]  ;;  %s3297_s14 = scalar_lea.vmem [#allocation8], %s1976_s8  ;;  %s1884_s29 = smul.u32 3072, %s2473_s22 }
  0x68   : > { %v324_v39 = vpack.c.bf16 %v278_v36, %v276_v35  ;;  %v327_v40 = vpack.c.bf16 %v283_v38, %v281_v37  ;;  %v280_v41 = vld [vmem:[%s2583_s9 + $0x20] sm:$0xff]  ;;  %v282_v42 = vld [vmem:[%s2583_s9 + $0x30] sm:$0xff]  ;;  %v285_v43 = vld [vmem:[%s2583_s9 + $0x48] sm:$0xff]  ;;  %s1728_s7 = sshll.u32 %s3297_s14, 4  ;;  %s1715_s22 = scalar_lea.sflag [#allocation4], %s2579_s23  ;;  %s3352_s7 = int_to_ptr.vmem [resolvable:$true] %s1728_s7 }
  0x69   : > { %559 = vmatpush1.bf16.msra.mxu0 %v2063_v7  ;;  %v287_v44 = vld [vmem:[%s2583_s9 + $0x58] sm:$0xff]  ;;  %v326_v45 = vpack.c.bf16 %v282_v42, %v280_v41  ;;  %v284_v47 = vld [vmem:[%s2583_s9 + $0x40] sm:$0xff]  ;;  %v286_v48 = vld [vmem:[%s2583_s9 + $0x50] sm:$0xff]  ;;  %s3349_s15 = scalar_lea.hbm %s3401_s5, %s1884_s29  ;;  %s2340_s16 = scalar_lea.vmem %s3352_s7, 3072 }
  0x6a   : > { %560 = vmatprep.subr.bf16.mxu0 %v2064_v8  ;;  %v329_v46 = vpack.c.bf16 %v287_v44, %v285_v43  ;;  %v289_v49 = vld [vmem:[%s2583_s9 + $0x68] sm:$0xff]  ;;  %v291_v50 = vld [vmem:[%s2583_s9 + $0x78] sm:$0xff]  ;;  %v328_v51 = vpack.c.bf16 %v286_v48, %v284_v47  ;;  %v288_v53 = vld [vmem:[%s2583_s9 + $0x60] sm:$0xff]  ;;  %p2341_p11 = scmp.ne.s32.totalorder %s3352_s7, %s2340_s16  ;;  %s2419_s27 = smov [#allocation8]  }
  0x6b   : > { %v331_v52 = vpack.c.bf16 %v291_v50, %v289_v49  ;;  %v290_v54 = vld [vmem:[%s2583_s9 + $0x70] sm:$0xff]  ;;  %v293_v55 = vld [vmem:[%s2583_s9 + $0x88] sm:$0xff]  ;;  %v295_v56 = vld [vmem:[%s2583_s9 + $0x98] sm:$0xff]  ;;  %s2344_s6 = sshll.u32 %s2419_s27, 4  ;;  %s2345_s6 = int_to_ptr.vmem [resolvable:$false] %s2344_s6 }
  0x6c   : > { %v330_v57 = vpack.c.bf16 %v290_v54, %v288_v53  ;;  %v333_v58 = vpack.c.bf16 %v295_v56, %v293_v55  ;;  %v292_v59 = vld [vmem:[%s2583_s9 + $0x80] sm:$0xff]  ;;  %v294_v60 = vld [vmem:[%s2583_s9 + $0x90] sm:$0xff]  ;;  %v297_v61 = vld [vmem:[%s2583_s9 + $0xa8] sm:$0xff]  ;;  %p2342_p1 = pnand %p2341_p11, %p3450_p10  ;;  %p2347_p6 = scmp.lt.s32.totalorder %s3352_s7, %s2345_s6 }
  0x6d   : > { %561 = vmatpush1.bf16.msra.mxu0 %v2066_v9  ;;  %v299_v62 = vld [vmem:[%s2583_s9 + $0xb8] sm:$0xff]  ;;  %v332_v63 = vpack.c.bf16 %v294_v60, %v292_v59  ;;  %v296_v1 = vld [vmem:[%s2583_s9 + $0xa0] sm:$0xff]  ;;  %v298_v2 = vld [vmem:[%s2583_s9 + $0xb0] sm:$0xff] }
  0x6e   : > { %562 = vmatprep.subr.bf16.mxu0 %v2067_v10  ;;  %v335_v0 = vpack.c.bf16 %v299_v62, %v297_v61  ;;  %v301_v3 = vld [vmem:[%s2583_s9 + $0xc8] sm:$0xff]  ;;  %v303_v4 = vld [vmem:[%s2583_s9 + $0xd8] sm:$0xff]  ;;  %v334_v5 = vpack.c.bf16 %v298_v2, %v296_v1  ;;  %v300_v7 = vld [vmem:[%s2583_s9 + $0xc0] sm:$0xff]  ;;  %p2343_p2 = pneg %p2342_p1 }
  0x6f   : > { %v337_v6 = vpack.c.bf16 %v303_v4, %v301_v3  ;;  %v302_v8 = vld [vmem:[%s2583_s9 + $0xd0] sm:$0xff]  ;;  %v305_v9 = vld [vmem:[%s2583_s9 + $0xe8] sm:$0xff]  ;;  %v307_v10 = vld [vmem:[%s2583_s9 + $0xf8] sm:$0xff] }
  0x70   : > { %v304_v13 = vld [vmem:[%s2583_s9 + $0xe0] sm:$0xff]  ;;  %v306_v14 = vld [vmem:[%s2583_s9 + $0xf0] sm:$0xff]  ;;  %v309_v15 = vld [vmem:[%s2583_s9 + $0x108] sm:$0xff] }
  0x71   : > { %563 = vmatpush1.bf16.msra.mxu0 %v2069_v11  ;;  %v336_v11 = vpack.c.bf16 %v302_v8, %v300_v7  ;;  %v320_v37 = vld [vmem:[%s2583_s9 + $0x160] sm:$0xff]  ;;  %v322_v38 = vld [vmem:[%s2583_s9 + $0x170] sm:$0xff] }
  0x72   : > { %564 = vmatprep.subr.bf16.mxu0 %v2070_v12  ;;  %v339_v12 = vpack.c.bf16 %v307_v10, %v305_v9  ;;  %v380_v43 = vld [vmem:[%s3398_s2] sm:$0x3] }
  0x75   : > { %565 = vmatpush1.bf16.msra.mxu0 %v2072_v16  ;;  %v311_v16 = vld [vmem:[%s2583_s9 + $0x118] sm:$0xff] }
  0x76   : > { %566 = vmatprep.subr.bf16.mxu0 %v2073_v17  ;;  %v338_v17 = vpack.c.bf16 %v306_v14, %v304_v13 }
  0x79   : > { %567 = vmatpush1.bf16.msra.mxu0 %v2075_v18  ;;  %v341_v18 = vpack.c.bf16 %v311_v16, %v309_v15 }
  0x7a   : > { %568 = vmatprep.subr.bf16.mxu0 %v2076_v19  ;;  %v308_v19 = vld [vmem:[%s2583_s9 + $0x100] sm:$0xff] }
  0x7d   : > { %569 = vmatpush2.bf16.msra.mxu0 %v2078_v20  ;;  %v310_v20 = vld [vmem:[%s2583_s9 + $0x110] sm:$0xff] }
  0x7e   : > { %570 = vmatprep.subr.bf16.mxu0 %v2079_v21  ;;  %v313_v21 = vld [vmem:[%s2583_s9 + $0x128] sm:$0xff] }
  0x81   : > { %571 = vmatpush2.bf16.msra.mxu0 %v2081_v22  ;;  %v315_v22 = vld [vmem:[%s2583_s9 + $0x138] sm:$0xff] }
  0x82   : > { %572 = vmatprep.subr.bf16.mxu0 %v2082_v23  ;;  %v340_v23 = vpack.c.bf16 %v310_v20, %v308_v19 }
  0x85   : > { %573 = vmatpush2.bf16.msra.mxu0 %v2084_v24  ;;  %v343_v24 = vpack.c.bf16 %v315_v22, %v313_v21 }
  0x86   : > { %574 = vmatprep.subr.bf16.mxu0 %v2085_v25  ;;  %v312_v25 = vld [vmem:[%s2583_s9 + $0x120] sm:$0xff] }
  0x89   : > { %575 = vmatpush2.bf16.msra.mxu0 %v2087_v26  ;;  %v314_v26 = vld [vmem:[%s2583_s9 + $0x130] sm:$0xff] }
  0x8a   : > { %576 = vmatprep.subr.bf16.mxu0 %v2088_v27  ;;  %v317_v27 = vld [vmem:[%s2583_s9 + $0x148] sm:$0xff] }
  0x8d   : > { %577 = vmatpush2.bf16.msra.mxu0 %v2090_v28  ;;  %v319_v28 = vld [vmem:[%s2583_s9 + $0x158] sm:$0xff] }
  0x8e   : > { %578 = vmatprep.subr.bf16.mxu0 %v2091_v29  ;;  %v342_v29 = vpack.c.bf16 %v314_v26, %v312_v25 }
  0x91   : > { %579 = vmatpush2.bf16.msra.mxu0 %v2093_v30  ;;  %v345_v30 = vpack.c.bf16 %v319_v28, %v317_v27 }
  0x92   : > { %580 = vmatprep.subr.bf16.mxu0 %v2094_v31  ;;  %v316_v31 = vld [vmem:[%s2583_s9 + $0x140] sm:$0xff] }
  0x95   : > { %581 = vmatpush2.bf16.msra.mxu0 %v2096_v32  ;;  %v318_v32 = vld [vmem:[%s2583_s9 + $0x150] sm:$0xff] }
  0x96   : > { %582 = vmatprep.subr.bf16.mxu0 %v2097_v33  ;;  %v321_v33 = vld [vmem:[%s2583_s9 + $0x168] sm:$0xff]  ;;  %v344_v35 = vpack.c.bf16 %v318_v32, %v316_v31 }
  0x99   : > { %583 = vmatpush2.bf16.msra.mxu0 %v2099_v34  ;;  %v323_v34 = vld [vmem:[%s2583_s9 + $0x178] sm:$0xff]  ;;  %s2346_s9 = scalar_lea.vmem %s2345_s6, 6144 }
  0x9a   : > { %v347_v36 = vpack.c.bf16 %v323_v34, %v321_v33  ;;  %p2348_p12 = scmp.lt.s32.totalorder %s2346_s9, %s2340_s16 }
  0x9c   : > { %585 = vmatmul.mubr.bf16.vlgmr.msra.gmra.mxu0 %v324_v39  ;;  %v346_v39 = vpack.c.bf16 %v322_v38, %v320_v37  ;;  %p2349_p3 = por %p2348_p12, %p2347_p6 }
  0x9d   : > { %594 = vmatprep.mubr.bf16.mxu0 %v327_v40  ;;  %v382_v40 = vlaneseq }
  0x9e   : > { %p2350_p9 = pnand %p2349_p3, %p2343_p2 }
  0x9f   : > { %v383_v41 = vshrl.u32 %v382_v40, 7 }
  0xa1   : > { %v384_v42 = vsub.s32 0, %v383_v41  ;;  %v388_v44 = vsub.s32 1, %v383_v41 }
  0xa4   : > { %595 = vmatmul.mubr.bf16.gmra.mxu0 %v326_v45  ;;  %v2644_v45 = vrot.slane %v380_v43, %v384_v42 }
  0xa5   : > { %604 = vmatprep.mubr.bf16.mxu0 %v329_v46  ;;  %v2646_v46 = vrot.slane %v380_v43, %v388_v44 }
  0xac   : > { %605 = vmatmul.mubr.bf16.gmra.mxu0 %v328_v51 }
  0xad   : > { %614 = vmatprep.mubr.bf16.mxu0 %v331_v52 }
  0xb4   : > { %615 = vmatmul.mubr.bf16.gmra.mxu0 %v330_v57 }
  0xb5   : > { %624 = vmatprep.mubr.bf16.mxu0 %v333_v58 }
  0xbc   : > { %625 = vmatmul.mubr.bf16.gmra.mxu0 %v332_v63 }
  0xbd   : > { %634 = vmatprep.mubr.bf16.mxu0 %v335_v0 }
  0xc4   : > { %635 = vmatmul.mubr.bf16.gmra.mxu0 %v334_v5 }
  0xc5   : > { %644 = vmatprep.mubr.bf16.mxu0 %v337_v6 }
  0xcc   : > { %645 = vmatmul.mubr.bf16.gmra.mxu0 %v336_v11 }
  0xcd   : > { %654 = vmatprep.mubr.bf16.mxu0 %v339_v12 }
  0xd4   : > { %655 = vmatmul.mubr.bf16.gmra.mxu0 %v338_v17 }
  0xd5   : > { %664 = vmatprep.mubr.bf16.mxu0 %v341_v18 }
  0xdc   : > { %665 = vmatmul.mubr.bf16.gmra.mxu0 %v340_v23 }
  0xdd   : > { %674 = vmatprep.mubr.bf16.mxu0 %v343_v24 }
  0xe4   : > { %675 = vmatmul.mubr.bf16.gmra.mxu0 %v342_v29 }
  0xe5   : > { %684 = vmatprep.mubr.bf16.mxu0 %v345_v30 }
  0xec   : > { %685 = vmatmul.mubr.bf16.gmra.mxu0 %v344_v35 }
  0xed   : > { %694 = vmatprep.mubr.bf16.mxu0 %v347_v36 }
  0xf4   : > { %695 = vmatmul.mubr.bf16.gmra.mxu0 %v346_v39 }
 0x15c   : > { %v586_v47 = vpop.f32.mrf.mxu0 }
 0x15d   : > { %v587_v48 = vadd.f32 %v586_v47, %v2644_v45 }
 0x15e   : > { %v588_v49 = vpop.f32.mrf.mxu0 }
 0x15f   : > { %v753_v50 = vmul.f32 0.70710677, %v587_v48  ;;  %v589_v51 = vadd.f32 %v588_v49, %v2646_v46  ;;  %v705_v14 = vmul.f32 0.5, %v587_v48 }
 0x160   : > { %v590_v52 = vpop.f32.mrf.mxu0 }
 0x161   : > { %2116 = verf.f32 %v753_v50  ;;  %v754_v53 = vmul.f32 0.70710677, %v589_v51  ;;  %v591_v54 = vadd.f32 %v590_v52, %v2644_v45  ;;  %v706_v20 = vmul.f32 0.5, %v589_v51 }
 0x162   : > { %v592_v55 = vpop.f32.mrf.mxu0 }
 0x163   : > { %2118 = verf.f32 %v754_v53  ;;  %v755_v56 = vmul.f32 0.70710677, %v591_v54  ;;  %v593_v57 = vadd.f32 %v592_v55, %v2646_v46  ;;  %v707_v27 = vmul.f32 0.5, %v591_v54 }
 0x164   : > { %v596_v58 = vpop.f32.mrf.mxu0 }
 0x165   : > { %2120 = verf.f32 %v755_v56  ;;  %v756_v59 = vmul.f32 0.70710677, %v593_v57  ;;  %v597_v60 = vadd.f32 %v596_v58, %v2644_v45  ;;  %v708_v28 = vmul.f32 0.5, %v593_v57 }
 0x166   : > { %v598_v61 = vpop.f32.mrf.mxu0 }
 0x167   : > { %2122 = verf.f32 %v756_v59  ;;  %v757_v62 = vmul.f32 0.70710677, %v597_v60  ;;  %v599_v63 = vadd.f32 %v598_v61, %v2646_v46  ;;  %v709_v47 = vmul.f32 0.5, %v597_v60 }
 0x168   : > { %v600_v0 = vpop.f32.mrf.mxu0 }
 0x169   : > { %2124 = verf.f32 %v757_v62  ;;  %v758_v1 = vmul.f32 0.70710677, %v599_v63  ;;  %v2655_v2 = vadd.f32 %v600_v0, %v2644_v45  ;;  %v710_v51 = vmul.f32 0.5, %v599_v63 }
 0x16a   : > { %v602_v3 = vpop.f32.mrf.mxu0 }
 0x16b   : > { %2126 = verf.f32 %v758_v1  ;;  %v759_v4 = vmul.f32 0.70710677, %v2655_v2  ;;  %v2659_v5 = vadd.f32 %v602_v3, %v2646_v46 }
 0x16c   : > { %v606_v6 = vpop.f32.mrf.mxu0 }
 0x16d   : > { %2128 = verf.f32 %v759_v4  ;;  %v760_v7 = vmul.f32 0.70710677, %v2659_v5  ;;  %v2663_v8 = vadd.f32 %v606_v6, %v2644_v45  ;;  %v712_v6 = vmul.f32 0.5, %v2659_v5 }
 0x16e   : > { %v2117_v9 = vpop.eup %2116  ;;  %v608_v10 = vpop.f32.mrf.mxu0 }
 0x16f   : > { %2130 = verf.f32 %v760_v7  ;;  %v761_v11 = vmul.f32 0.70710677, %v2663_v8  ;;  %v2667_v12 = vadd.f32 %v608_v10, %v2646_v46  ;;  %v849_v16 = vadd.f32 1.0, %v2117_v9 }
 0x170   : > { %v2119_v13 = vpop.eup %2118  ;;  %v610_v15 = vpop.f32.mrf.mxu0  ;;  %v713_v5 = vmul.f32 0.5, %v2663_v8 }
 0x171   : > { %2132 = verf.f32 %v761_v11  ;;  %v762_v17 = vmul.f32 0.70710677, %v2667_v12  ;;  %v2671_v18 = vadd.f32 %v610_v15, %v2644_v45  ;;  %v850_v22 = vadd.f32 1.0, %v2119_v13 }
 0x172   : > { %v2121_v19 = vpop.eup %2120  ;;  %v612_v21 = vpop.f32.mrf.mxu0  ;;  %v2673_v23 = vmul.f32 %v849_v16, %v705_v14  ;;  %v711_v11 = vmul.f32 0.5, %v2655_v2 }
 0x173   : > { %v851_v24 = vadd.f32 1.0, %v2121_v19  ;;  %2134 = verf.f32 %v762_v17  ;;  %v763_v25 = vmul.f32 0.70710677, %v2671_v18  ;;  %v2677_v29 = vadd.f32 %v612_v21, %v2646_v46 }
 0x174   : > { %v2123_v26 = vpop.eup %2122  ;;  %v616_v30 = vpop.f32.mrf.mxu0  ;;  %v2679_v31 = vmul.f32 %v850_v22, %v706_v20  ;;  %v1042_v34 = vmul.f32 %v2673_v23, %v2673_v23 }
 0x175   : > { %v852_v32 = vadd.f32 1.0, %v2123_v26  ;;  %2136 = verf.f32 %v763_v25  ;;  %v2682_v33 = vadd.f32 %v616_v30, %v2644_v45  ;;  %v2686_v36 = vmul.f32 %v851_v24, %v707_v27 }
 0x176   : > { %v2125_v35 = vpop.eup %2124  ;;  %v764_v37 = vmul.f32 0.70710677, %v2677_v29  ;;  %v618_v38 = vpop.f32.mrf.mxu0  ;;  %v945_v39 = vadd.f32 %v2679_v31, %v2673_v23  ;;  %v1043_v40 = vmul.f32 %v2679_v31, %v2679_v31  ;;  %v714_v26 = vmul.f32 0.5, %v2667_v12 }
 0x177   : > { %v2693_v41 = vmul.f32 %v852_v32, %v708_v28  ;;  %v853_v42 = vadd.f32 1.0, %v2125_v35  ;;  %v765_v43 = vmul.f32 0.70710677, %v2682_v33  ;;  %v2697_v48 = vadd.f32 %v618_v38, %v2646_v46 }
 0x178   : > { %v2127_v44 = vpop.eup %2126  ;;  %2138 = verf.f32 %v764_v37  ;;  %946 = vadd.xlane.f32.xlu0 %v945_v39  ;;  %v620_v49 = vpop.f32.mrf.mxu0  ;;  %v1090_v50 = vadd.f32 %v1043_v40, %v1042_v34  ;;  %v1044_v58 = vmul.f32 %v2686_v36, %v2686_v36 }
 0x179   : > { %v854_v52 = vadd.f32 1.0, %v2127_v44  ;;  %2140 = verf.f32 %v765_v43  ;;  %v2700_v53 = vadd.f32 %v620_v49, %v2644_v45  ;;  %v766_v55 = vmul.f32 0.70710677, %v2697_v48  ;;  %v2100_v49 = vld [vmem:[#allocation7 + $0x78] sm:$0xff]  }
 0x17a   : > { %v2129_v54 = vpop.eup %2128  ;;  %1091 = vadd.xlane.f32.xlu1 %v1090_v50  ;;  %v622_v56 = vpop.f32.mrf.mxu0  ;;  %v948_v57 = vadd.f32 %v2693_v41, %v2686_v36  ;;  %v1045_v59 = vmul.f32 %v2693_v41, %v2693_v41  ;;  %v2709_v60 = vmul.f32 %v853_v42, %v709_v47  ;;  %v715_v42 = vmul.f32 0.5, %v2671_v18  ;;  %1886 = vmatprep.subr.bf16.mxu1 %v2100_v49 }
 0x17b   : > { %v2711_v61 = vmul.f32 %v854_v52, %v710_v51  ;;  %v767_v62 = vmul.f32 0.70710677, %v2700_v53  ;;  %v855_v0 = vadd.f32 1.0, %v2129_v54  ;;  %2142 = verf.f32 %v766_v55 }
 0x17c   : > { %v2131_v63 = vpop.eup %2130  ;;  %v2715_v1 = vadd.f32 %v622_v56, %v2646_v46  ;;  %949 = vadd.xlane.f32.xlu0 %v948_v57  ;;  %v626_v3 = vpop.f32.mrf.mxu0  ;;  %v1093_v4 = vadd.f32 %v1045_v59, %v1044_v58  ;;  %v1046_v25 = vmul.f32 %v2709_v60, %v2709_v60  ;;  %v716_v51 = vmul.f32 0.5, %v2677_v29 }
 0x17d   : > { %v856_v7 = vadd.f32 1.0, %v2131_v63  ;;  %2144 = verf.f32 %v767_v62  ;;  %v2719_v9 = vadd.f32 %v626_v3, %v2644_v45  ;;  %v951_v15 = vadd.f32 %v2711_v61, %v2709_v60  ;;  %v2101_v62 = vld [vmem:[#allocation7 + $0x38] sm:$0xff]  }
 0x17e   : > { %v2133_v10 = vpop.eup %2132  ;;  %v768_v13 = vmul.f32 0.70710677, %v2715_v1  ;;  %1094 = vadd.xlane.f32.xlu1 %v1093_v4  ;;  %v628_v14 = vpop.f32.mrf.mxu0  ;;  %v1047_v16 = vmul.f32 %v2711_v61, %v2711_v61  ;;  %v2731_v22 = vmul.f32 %v855_v0, %v711_v11  ;;  %1887 = vmatpush3.bf16.msra.mxu1 %v2101_v62 }
 0x17f   : > { %v2727_v17 = vmul.f32 %v856_v7, %v712_v6  ;;  %v857_v19 = vadd.f32 1.0, %v2133_v10  ;;  %v769_v20 = vmul.f32 0.70710677, %v2719_v9  ;;  %v2734_v2 = vadd.f32 %v628_v14, %v2646_v46 }
 0x180   : > { %v2135_v21 = vpop.eup %2134  ;;  %2146 = verf.f32 %v768_v13  ;;  %952 = vadd.xlane.f32.xlu0 %v951_v15  ;;  %v630_v24 = vpop.f32.mrf.mxu0  ;;  %v1096_v35 = vadd.f32 %v1047_v16, %v1046_v25  ;;  %v1048_v47 = vmul.f32 %v2731_v22, %v2731_v22  ;;  %v717_v6 = vmul.f32 0.5, %v2682_v33  ;;  %v2102_v16 = vld [vmem:[#allocation7 + $0x70] sm:$0xff]  }
 0x181   : > { %v858_v27 = vadd.f32 1.0, %v2135_v21  ;;  %2148 = verf.f32 %v769_v20  ;;  %v2740_v8 = vadd.f32 %v630_v24, %v2644_v45  ;;  %v770_v30 = vmul.f32 0.70710677, %v2734_v2  ;;  %v2103_v25 = vld [vmem:[#allocation7 + $0x30] sm:$0xff]   ;;  %1888 = vmatprep.subr.bf16.mxu1 %v2102_v16 }
 0x182   : > { %v2137_v28 = vpop.eup %2136  ;;  %v632_v32 = vpop.f32.mrf.mxu0  ;;  %v954_v34 = vadd.f32 %v2727_v17, %v2731_v22  ;;  %v1049_v37 = vmul.f32 %v2727_v17, %v2727_v17  ;;  %v2747_v38 = vmul.f32 %v857_v19, %v713_v5  ;;  %v718_v13 = vmul.f32 0.5, %v2697_v48  ;;  %1889 = vmatpush3.bf16.msra.mxu1 %v2103_v25 }
 0x183   : > { %v2749_v39 = vmul.f32 %v858_v27, %v714_v26  ;;  %v859_v12 = vadd.f32 1.0, %v2137_v28  ;;  %v771_v40 = vmul.f32 0.70710677, %v2740_v8  ;;  %2150 = verf.f32 %v770_v30 }
 0x184   : > { %v2754_v43 = vadd.f32 %v632_v32, %v2646_v46  ;;  %955 = vadd.xlane.f32.xlu1 %v954_v34  ;;  %1097 = vadd.xlane.f32.xlu0 %v1096_v35  ;;  %v636_v44 = vpop.f32.mrf.mxu0  ;;  %v1099_v58 = vadd.f32 %v1049_v37, %v1048_v47  ;;  %v1050_v3 = vmul.f32 %v2747_v38, %v2747_v38  ;;  %v719_v32 = vmul.f32 0.5, %v2700_v53  ;;  %v2104_v47 = vld [vmem:[#allocation7 + $0x68] sm:$0xff]  }
 0x185   : > { %v2139_v50 = vpop.eup %2138  ;;  %2152 = verf.f32 %v771_v40  ;;  %v2760_v52 = vadd.f32 %v636_v44, %v2644_v45  ;;  %v957_v18 = vadd.f32 %v2749_v39, %v2747_v38  ;;  %v1051_v59 = vmul.f32 %v2749_v39, %v2749_v39  ;;  %1890 = vmatprep.subr.bf16.mxu1 %v2104_v47 }
 0x186   : > { %v2141_v54 = vpop.eup %2140  ;;  %v860_v55 = vadd.f32 1.0, %v2139_v50  ;;  %v772_v56 = vmul.f32 0.70710677, %v2754_v43  ;;  %v638_v57 = vpop.f32.mrf.mxu0  ;;  %v2767_v63 = vmul.f32 %v859_v12, %v715_v42  ;;  %v720_v12 = vmul.f32 0.5, %v2715_v1 }
 0x187   : > { %v773_v29 = vmul.f32 0.70710677, %v2760_v52  ;;  %v2771_v0 = vadd.f32 %v638_v57, %v2646_v46  ;;  %v861_v7 = vadd.f32 1.0, %v2141_v54  ;;  %v1102_v15 = vadd.f32 %v1051_v59, %v1050_v3  ;;  %v2105_v54 = vld [vmem:[#allocation7 + $0x28] sm:$0xff]  }
 0x188   : > { %v2775_v4 = vmul.f32 %v860_v55, %v716_v51  ;;  %2154 = verf.f32 %v772_v56  ;;  %1100 = vadd.xlane.f32.xlu1 %v1099_v58  ;;  %958 = vadd.xlane.f32.xlu0 %v957_v18  ;;  %v640_v10 = vpop.f32.mrf.mxu0  ;;  %v2143_v11 = vpop.eup %2142  ;;  %v1052_v27 = vmul.f32 %v2767_v63, %v2767_v63  ;;  %v721_v58 = vmul.f32 0.5, %v2719_v9  ;;  %v2106_v9 = vld [vmem:[#allocation7 + $0x60] sm:$0xff]  }
 0x189   : > { %2156 = verf.f32 %v773_v29  ;;  %v774_v14 = vmul.f32 0.70710677, %v2771_v0  ;;  %v862_v19 = vadd.f32 1.0, %v2143_v11  ;;  %v2781_v20 = vadd.f32 %v640_v10, %v2644_v45  ;;  %1891 = vmatpush3.bf16.msra.mxu1 %v2105_v54 }
 0x18a   : > { %v2145_v5 = vpop.eup %2144  ;;  %v642_v33 = vpop.f32.mrf.mxu0  ;;  %v960_v21 = vadd.f32 %v2775_v4, %v2767_v63  ;;  %v1053_v24 = vmul.f32 %v2775_v4, %v2775_v4  ;;  %v2792_v28 = vmul.f32 %v861_v7, %v717_v6  ;;  %v722_v6 = vmul.f32 0.5, %v2734_v2  ;;  %1892 = vmatprep.subr.bf16.mxu1 %v2106_v9 }
 0x18b   : > { %v863_v48 = vadd.f32 1.0, %v2145_v5  ;;  %2158 = verf.f32 %v774_v14  ;;  %v2788_v26 = vadd.f32 %v642_v33, %v2646_v46  ;;  %v2794_v30 = vmul.f32 %v862_v19, %v718_v13  ;;  %v2107_v19 = vld [vmem:[#allocation7 + $0x20] sm:$0xff]  }
 0x18c   : > { %v775_v34 = vmul.f32 0.70710677, %v2781_v20  ;;  %961 = vadd.xlane.f32.xlu1 %v960_v21  ;;  %1103 = vadd.xlane.f32.xlu0 %v1102_v15  ;;  %v646_v35 = vpop.f32.mrf.mxu0  ;;  %v1105_v44 = vadd.f32 %v1053_v24, %v1052_v27  ;;  %v1054_v29 = vmul.f32 %v2792_v28, %v2792_v28  ;;  %v723_v7 = vmul.f32 0.5, %v2740_v8 }
 0x18d   : > { %v2147_v37 = vpop.eup %2146  ;;  %v776_v40 = vmul.f32 0.70710677, %v2788_v26  ;;  %v2801_v42 = vadd.f32 %v646_v35, %v2644_v45  ;;  %v963_v51 = vadd.f32 %v2794_v30, %v2792_v28  ;;  %v1055_v18 = vmul.f32 %v2794_v30, %v2794_v30  ;;  %1893 = vmatpush3.bf16.msra.mxu1 %v2107_v19 }
 0x18e   : > { %v2149_v49 = vpop.eup %2148  ;;  %v864_v50 = vadd.f32 1.0, %v2147_v37  ;;  %2160 = verf.f32 %v775_v34  ;;  %v648_v53 = vpop.f32.mrf.mxu0  ;;  %v2807_v1 = vmul.f32 %v863_v48, %v719_v32  ;;  %v724_v34 = vmul.f32 0.5, %v2754_v43 }
 0x18f   : > { %v865_v55 = vadd.f32 1.0, %v2149_v49  ;;  %2162 = verf.f32 %v776_v40  ;;  %v777_v56 = vmul.f32 0.70710677, %v2801_v42  ;;  %v2814_v59 = vadd.f32 %v648_v53, %v2646_v46 }
 0x190   : > { %v2810_v57 = vmul.f32 %v864_v50, %v720_v12  ;;  %1106 = vadd.xlane.f32.xlu1 %v1105_v44  ;;  %964 = vadd.xlane.f32.xlu0 %v963_v51  ;;  %v650_v62 = vpop.f32.mrf.mxu0  ;;  %v2151_v3 = vpop.eup %2150  ;;  %v1108_v5 = vadd.f32 %v1055_v18, %v1054_v29  ;;  %v1056_v21 = vmul.f32 %v2807_v1, %v2807_v1  ;;  %v725_v35 = vmul.f32 0.5, %v2760_v52  ;;  %v2108_v12 = vld [vmem:[#allocation7 + $0x58] sm:$0xff]  }
 0x191   : > { %2164 = verf.f32 %v777_v56  ;;  %v2821_v10 = vadd.f32 %v650_v62, %v2644_v45  ;;  %v866_v13 = vadd.f32 1.0, %v2151_v3  ;;  %v778_v14 = vmul.f32 0.70710677, %v2814_v59  ;;  %v2109_v51 = vld [vmem:[#allocation7 + $0x18] sm:$0xff]   ;;  %1894 = vmatprep.subr.bf16.mxu1 %v2108_v12 }
 0x192   : > { %v2153_v11 = vpop.eup %2152  ;;  %v652_v15 = vpop.f32.mrf.mxu0  ;;  %v966_v16 = vadd.f32 %v2810_v57, %v2807_v1  ;;  %v2826_v33 = vmul.f32 %v865_v55, %v721_v58  ;;  %v1057_v27 = vmul.f32 %v2810_v57, %v2810_v57  ;;  %v726_v3 = vmul.f32 0.5, %v2771_v0  ;;  %1895 = vmatpush3.bf16.msra.mxu1 %v2109_v51 }
 0x193   : > { %v779_v2 = vmul.f32 0.70710677, %v2821_v10  ;;  %v2830_v8 = vadd.f32 %v652_v15, %v2646_v46  ;;  %v2834_v24 = vmul.f32 %v866_v13, %v722_v6  ;;  %v867_v25 = vadd.f32 1.0, %v2153_v11  ;;  %v2110_v13 = vld [vmem:[#allocation7 + $0x50] sm:$0xff]  }
 0x194   : > { %2166 = verf.f32 %v778_v14  ;;  %967 = vadd.xlane.f32.xlu1 %v966_v16  ;;  %1109 = vadd.xlane.f32.xlu0 %v1108_v5  ;;  %v656_v48 = vpop.f32.mrf.mxu0  ;;  %v1111_v50 = vadd.f32 %v1057_v27, %v1056_v21  ;;  %v1058_v52 = vmul.f32 %v2826_v33, %v2826_v33  ;;  %v727_v9 = vmul.f32 0.5, %v2781_v20  ;;  %v2111_v5 = vld [vmem:[#allocation7 + $0x10] sm:$0xff]  }
 0x195   : > { %v2155_v32 = vpop.eup %2154  ;;  %2168 = verf.f32 %v779_v2  ;;  %v780_v37 = vmul.f32 0.70710677, %v2830_v8  ;;  %v2842_v47 = vadd.f32 %v656_v48, %v2644_v45  ;;  %v969_v53 = vadd.f32 %v2834_v24, %v2826_v33  ;;  %1896 = vmatprep.subr.bf16.mxu1 %v2110_v13 }
 0x196   : > { %v2157_v40 = vpop.eup %2156  ;;  %v868_v44 = vadd.f32 1.0, %v2155_v32  ;;  %v658_v49 = vpop.f32.mrf.mxu0  ;;  %v1059_v18 = vmul.f32 %v2834_v24, %v2834_v24  ;;  %v2853_v55 = vmul.f32 %v867_v25, %v723_v7  ;;  %1897 = vmatpush3.bf16.msra.mxu1 %v2111_v5 }
 0x197   : > { %2170 = verf.f32 %v780_v37  ;;  %v2847_v43 = vadd.f32 %v658_v49, %v2646_v46  ;;  %v869_v58 = vadd.f32 1.0, %v2157_v40  ;;  %v781_v62 = vmul.f32 0.70710677, %v2842_v47 }
 0x198   : > { %v2159_v54 = vpop.eup %2158  ;;  %v2855_v56 = vmul.f32 %v868_v44, %v724_v34  ;;  %1112 = vadd.xlane.f32.xlu1 %v1111_v50  ;;  %970 = vadd.xlane.f32.xlu0 %v969_v53  ;;  %v660_v29 = vpop.f32.mrf.mxu0  ;;  %v1114_v16 = vadd.f32 %v1059_v18, %v1058_v52  ;;  %v1060_v34 = vmul.f32 %v2853_v55, %v2853_v55  ;;  %v728_v37 = vmul.f32 0.5, %v2788_v26  ;;  %v2113_v18 = vld [vmem:[#allocation7 + $0x8] sm:$0xff]  }
 0x199   : > { %v870_v6 = vadd.f32 1.0, %v2159_v54  ;;  %v782_v11 = vmul.f32 0.70710677, %v2847_v43  ;;  %2172 = verf.f32 %v781_v62  ;;  %v2862_v7 = vadd.f32 %v660_v29, %v2644_v45 }
 0x19a   : > { %v662_v14 = vpop.f32.mrf.mxu0  ;;  %v972_v15 = vadd.f32 %v2855_v56, %v2853_v55  ;;  %v1061_v20 = vmul.f32 %v2855_v56, %v2855_v56  ;;  %v2873_v25 = vmul.f32 %v869_v58, %v725_v35  ;;  %v2112_v35 = vld [vmem:[#allocation7 + $0x48] sm:$0xff]   ;;  %v729_v50 = vmul.f32 0.5, %v2801_v42 }
 0x19b   : > { %v2161_v19 = vpop.eup %2160  ;;  %v2866_v2 = vmul.f32 %v870_v6, %v726_v3  ;;  %2174 = verf.f32 %v782_v11  ;;  %v2869_v0 = vadd.f32 %v662_v14, %v2646_v46  ;;  %v783_v27 = vmul.f32 0.70710677, %v2862_v7  ;;  %1898 = vmatprep.subr.bf16.mxu1 %v2112_v35 }
 0x19c   : > { %v2163_v21 = vpop.eup %2162  ;;  %v871_v48 = vadd.f32 1.0, %v2161_v19  ;;  %973 = vadd.xlane.f32.xlu1 %v972_v15  ;;  %1115 = vadd.xlane.f32.xlu0 %v1114_v16  ;;  %v666_v32 = vpop.f32.mrf.mxu0  ;;  %v1117_v51 = vadd.f32 %v1061_v20, %v1060_v34  ;;  %v730_v58 = vmul.f32 0.5, %v2814_v59  ;;  %v731_v11 = vmul.f32 0.5, %v2821_v10  ;;  %v2114_v15 = vld [vmem:[#allocation7 + $0x40] sm:$0xff]  }
 0x19d   : > { %v872_v12 = vadd.f32 1.0, %v2163_v21  ;;  %v784_v40 = vmul.f32 0.70710677, %v2869_v0  ;;  %v2881_v44 = vadd.f32 %v666_v32, %v2644_v45  ;;  %2176 = verf.f32 %v783_v27  ;;  %1899 = vmatpush3.bf16.msra.mxu1 %v2113_v18  ;;  %v2115_v21 = vld [vmem:[#allocation7] sm:$0xff]  }
 0x19e   : > { %v2165_v49 = vpop.eup %2164  ;;  %v668_v53 = vpop.f32.mrf.mxu0  ;;  %v975_v52 = vadd.f32 %v2866_v2, %v2873_v25  ;;  %v2886_v54 = vmul.f32 %v871_v48, %v727_v9  ;;  %v1063_v6 = vmul.f32 %v2866_v2, %v2866_v2  ;;  %v1062_v10 = vmul.f32 %v2873_v25, %v2873_v25  ;;  %1900 = vmatprep.subr.bf16.mxu1 %v2114_v15 }
 0x19f   : > { %v2888_v26 = vmul.f32 %v872_v12, %v728_v37  ;;  %2178 = verf.f32 %v784_v40  ;;  %v873_v62 = vadd.f32 1.0, %v2165_v49  ;;  %v785_v29 = vmul.f32 0.70710677, %v2881_v44 }
 0x1a0   : > { %v2893_v42 = vadd.f32 %v668_v53, %v2646_v46  ;;  %1118 = vadd.xlane.f32.xlu1 %v1117_v51  ;;  %976 = vadd.xlane.f32.xlu0 %v975_v52  ;;  %v670_v3 = vpop.f32.mrf.mxu0  ;;  %v1064_v34 = vmul.f32 %v2886_v54, %v2886_v54  ;;  %v1120_v35 = vadd.f32 %v1063_v6, %v1062_v10  ;;  %v732_v53 = vmul.f32 0.5, %v2830_v8 }
 0x1a1   : > { %v2167_v9 = vpop.eup %2166  ;;  %v2899_v13 = vadd.f32 %v670_v3, %v2644_v45  ;;  %v978_v59 = vadd.f32 %v2888_v26, %v2886_v54  ;;  %v1065_v14 = vmul.f32 %v2888_v26, %v2888_v26  ;;  %2180 = verf.f32 %v785_v29  ;;  %1901 = vmatpush3.bf16.msra.mxu1 %v2115_v21 }
 0x1a2   : > { %v2169_v16 = vpop.eup %2168  ;;  %v874_v5 = vadd.f32 1.0, %v2167_v9  ;;  %v786_v19 = vmul.f32 0.70710677, %v2893_v42  ;;  %v672_v20 = vpop.f32.mrf.mxu0  ;;  %v2914_v12 = vmul.f32 %v873_v62, %v729_v50  ;;  %v733_v8 = vmul.f32 0.5, %v2842_v47 }
 0x1a3   : > { %v875_v48 = vadd.f32 1.0, %v2169_v16  ;;  %v787_v27 = vmul.f32 0.70710677, %v2899_v13  ;;  %v2910_v32 = vadd.f32 %v672_v20, %v2646_v46  ;;  %v1123_v52 = vadd.f32 %v1065_v14, %v1064_v34 }
 0x1a4   : > { %v2171_v37 = vpop.eup %2170  ;;  %v2916_v40 = vmul.f32 %v874_v5, %v730_v58  ;;  %2182 = verf.f32 %v786_v19  ;;  %979 = vadd.xlane.f32.xlu1 %v978_v59  ;;  %v676_v49 = vpop.f32.mrf.mxu0  ;;  %1121 = vadd.xlane.f32.xlu0 %v1120_v35  ;;  %v734_v9 = vmul.f32 0.5, %v2847_v43  ;;  %v735_v20 = vmul.f32 0.5, %v2862_v7 }
 0x1a5   : > { %v876_v51 = vadd.f32 1.0, %v2171_v37  ;;  %2184 = verf.f32 %v787_v27  ;;  %v2919_v18 = vmul.f32 %v875_v48, %v731_v11  ;;  %v788_v29 = vmul.f32 0.70710677, %v2910_v32 }
 0x1a6   : > { %v2923_v50 = vadd.f32 %v676_v49, %v2644_v45  ;;  %v678_v58 = vpop.f32.mrf.mxu0  ;;  %v981_v62 = vadd.f32 %v2916_v40, %v2914_v12  ;;  %v2173_v3 = vpop.eup %2172  ;;  %v1067_v5 = vmul.f32 %v2916_v40, %v2916_v40  ;;  %v1066_v48 = vmul.f32 %v2914_v12, %v2914_v12 }
 0x1a7   : > { %v2927_v6 = vmul.f32 %v876_v51, %v732_v53  ;;  %v2932_v11 = vadd.f32 %v678_v58, %v2646_v46  ;;  %v877_v14 = vadd.f32 1.0, %v2173_v3  ;;  %2186 = verf.f32 %v788_v29 }
 0x1a8   : > { %v2175_v59 = vpop.eup %2174  ;;  %v789_v15 = vmul.f32 0.70710677, %v2923_v50  ;;  %1124 = vadd.xlane.f32.xlu1 %v1123_v52  ;;  %v680_v16 = vpop.f32.mrf.mxu0  ;;  %982 = vadd.xlane.f32.xlu0 %v981_v62  ;;  %v1068_v27 = vmul.f32 %v2919_v18, %v2919_v18  ;;  %v1126_v52 = vadd.f32 %v1067_v5, %v1066_v48  ;;  %v736_v62 = vmul.f32 0.5, %v2869_v0 }
 0x1a9   : > { %v878_v19 = vadd.f32 1.0, %v2175_v59  ;;  %v790_v47 = vmul.f32 0.70710677, %v2932_v11  ;;  %v2940_v43 = vadd.f32 %v680_v16, %v2644_v45  ;;  %v984_v21 = vadd.f32 %v2927_v6, %v2919_v18 }
 0x1aa   : > { %2188 = verf.f32 %v789_v15  ;;  %v682_v10 = vpop.f32.mrf.mxu0  ;;  %v2177_v34 = vpop.eup %2176  ;;  %v2948_v37 = vmul.f32 %v877_v14, %v733_v8  ;;  %v1069_v58 = vmul.f32 %v2927_v6, %v2927_v6 }
 0x1ab   : > { %v2950_v7 = vmul.f32 %v878_v19, %v734_v9  ;;  %2190 = verf.f32 %v790_v47  ;;  %v791_v35 = vmul.f32 0.70710677, %v2940_v43  ;;  %v879_v53 = vadd.f32 1.0, %v2177_v34 }
 0x1ac   : > { %v2179_v49 = vpop.eup %2178  ;;  %v2954_v51 = vadd.f32 %v682_v10, %v2646_v46  ;;  %985 = vadd.xlane.f32.xlu1 %v984_v21  ;;  %v686_v29 = vpop.f32.mrf.mxu0  ;;  %v737_v9 = vmul.f32 0.5, %v2881_v44  ;;  %1127 = vadd.xlane.f32.xlu0 %v1126_v52  ;;  %v1129_v15 = vadd.f32 %v1069_v58, %v1068_v27  ;;  %v738_v44 = vmul.f32 0.5, %v2893_v42 }
 0x1ad   : > { %v880_v3 = vadd.f32 1.0, %v2179_v49  ;;  %2192 = verf.f32 %v791_v35  ;;  %v2960_v8 = vadd.f32 %v686_v29, %v2644_v45  ;;  %v987_v16 = vadd.f32 %v2950_v7, %v2948_v37 }
 0x1ae   : > { %v792_v59 = vmul.f32 0.70710677, %v2954_v51  ;;  %v688_v14 = vpop.f32.mrf.mxu0  ;;  %v2181_v5 = vpop.eup %2180  ;;  %v2966_v19 = vmul.f32 %v879_v53, %v735_v20  ;;  %v739_v21 = vmul.f32 0.5, %v2899_v13  ;;  %v1071_v27 = vmul.f32 %v2950_v7, %v2950_v7 }
 0x1af   : > { %v2968_v47 = vmul.f32 %v880_v3, %v736_v62  ;;  %v793_v0 = vmul.f32 0.70710677, %v2960_v8  ;;  %v2972_v10 = vadd.f32 %v688_v14, %v2646_v46  ;;  %v881_v20 = vadd.f32 1.0, %v2181_v5 }
 0x1b0   : > { %2194 = verf.f32 %v792_v59  ;;  %1130 = vadd.xlane.f32.xlu1 %v1129_v15  ;;  %v690_v48 = vpop.f32.mrf.mxu0  ;;  %v740_v42 = vmul.f32 0.5, %v2910_v32  ;;  %988 = vadd.xlane.f32.xlu0 %v987_v16  ;;  %v1070_v58 = vmul.f32 %v2948_v37, %v2948_v37  ;;  %v1072_v59 = vmul.f32 %v2966_v19, %v2966_v19 }
 0x1b1   : > { %v2183_v34 = vpop.eup %2182  ;;  %2196 = verf.f32 %v793_v0  ;;  %v794_v35 = vmul.f32 0.70710677, %v2972_v10  ;;  %v2980_v49 = vadd.f32 %v690_v48, %v2644_v45  ;;  %v990_v29 = vadd.f32 %v2968_v47, %v2966_v19 }
 0x1b2   : > { %v2185_v53 = vpop.eup %2184  ;;  %v882_v52 = vadd.f32 1.0, %v2183_v34  ;;  %v692_v13 = vpop.f32.mrf.mxu0  ;;  %v1132_v32 = vadd.f32 %v1071_v27, %v1070_v58  ;;  %v1073_v5 = vmul.f32 %v2968_v47, %v2968_v47  ;;  %v2997_v48 = vmul.f32 %v881_v20, %v737_v9 }
 0x1b3   : > { %v883_v62 = vadd.f32 1.0, %v2185_v53  ;;  %2198 = verf.f32 %v794_v35  ;;  %v795_v3 = vmul.f32 0.70710677, %v2980_v49  ;;  %v2993_v15 = vadd.f32 %v692_v13, %v2646_v46 }
 0x1b4   : > { %v2990_v14 = vmul.f32 %v882_v52, %v738_v44  ;;  %991 = vadd.xlane.f32.xlu1 %v990_v29  ;;  %v696_v16 = vpop.f32.mrf.mxu0  ;;  %v2187_v0 = vpop.eup %2186  ;;  %3428 = vst [vmem:[#allocation12_spill] sm:$0xff] %v2997_v48  ;;  %v741_v34 = vmul.f32 0.5, %v2923_v50  ;;  %v742_v53 = vmul.f32 0.5, %v2932_v11  ;;  %1133 = vadd.xlane.f32.xlu0 %v1132_v32  ;;  %v1135_v13 = vadd.f32 %v1073_v5, %v1072_v59 }
 0x1b5   : > { %2200 = verf.f32 %v795_v3  ;;  %v3001_v35 = vadd.f32 %v696_v16, %v2644_v45  ;;  %v884_v44 = vadd.f32 1.0, %v2187_v0  ;;  %v796_v52 = vmul.f32 0.70710677, %v2993_v15 }
 0x1b6   : > { %v698_v27 = vpop.f32.mrf.mxu0  ;;  %v3005_v58 = vmul.f32 %v883_v62, %v739_v21  ;;  %v993_v50 = vadd.f32 %v2990_v14, %v2997_v48  ;;  %v1075_v59 = vmul.f32 %v2990_v14, %v2990_v14  ;;  %v1074_v5 = vmul.f32 %v2997_v48, %v2997_v48 }
 0x1b7   : > { %v2189_v29 = vpop.eup %2188  ;;  %v797_v9 = vmul.f32 0.70710677, %v3001_v35  ;;  %v3009_v20 = vadd.f32 %v698_v27, %v2646_v46  ;;  %v3013_v16 = vmul.f32 %v884_v44, %v740_v42  ;;  %2202 = verf.f32 %v796_v52 }
 0x1b8   : > { %v2191_v3 = vpop.eup %2190  ;;  %v885_v11 = vadd.f32 1.0, %v2189_v29  ;;  %1136 = vadd.xlane.f32.xlu1 %v1135_v13  ;;  %v700_v32 = vpop.f32.mrf.mxu0  ;;  %994 = vadd.xlane.f32.xlu0 %v993_v50 }
 0x1b9   : > { %v886_v21 = vadd.f32 1.0, %v2191_v3  ;;  %2204 = verf.f32 %v797_v9  ;;  %v798_v62 = vmul.f32 0.70710677, %v3009_v20  ;;  %v3023_v42 = vadd.f32 %v700_v32, %v2644_v45 }
 0x1ba   : > { %v2193_v0 = vpop.eup %2192  ;;  %v3020_v27 = vmul.f32 %v885_v11, %v741_v34  ;;  %v702_v44 = vpop.f32.mrf.mxu0  ;;  %v996_v52 = vadd.f32 %v3013_v16, %v3005_v58  ;;  %v1138_v9 = vadd.f32 %v1075_v59, %v1074_v5  ;;  %v1076_v34 = vmul.f32 %v3005_v58, %v3005_v58 }
 0x1bb   : > { %v3027_v13 = vmul.f32 %v886_v21, %v742_v53  ;;  %2206 = verf.f32 %v798_v62  ;;  %v3030_v29 = vadd.f32 %v702_v44, %v2646_v46  ;;  %v887_v3 = vadd.f32 1.0, %v2193_v0 }
 0x1bc   : > { %v799_v48 = vmul.f32 0.70710677, %v3023_v42  ;;  %997 = vadd.xlane.f32.xlu1 %v996_v52  ;;  %v1077_v45 = vmul.f32 %v3013_v16, %v3013_v16  ;;  %v743_v11 = vmul.f32 0.5, %v2940_v43  ;;  %v744_v53 = vmul.f32 0.5, %v2954_v51  ;;  %1139 = vadd.xlane.f32.xlu0 %v1138_v9 }
 0x1bd   : > { %3429 = vst [vmem:[#allocation13_spill] sm:$0xff] %v3027_v13  ;;  %v2195_v50 = vpop.eup %2194  ;;  %v800_v32 = vmul.f32 0.70710677, %v3030_v29  ;;  %v999_v62 = vadd.f32 %v3027_v13, %v3020_v27  ;;  %v1079_v43 = vmul.f32 %v3027_v13, %v3027_v13  ;;  %v746_v51 = vmul.f32 0.5, %v2972_v10 }
 0x1be   : > { %v2197_v46 = vpop.eup %2196  ;;  %v888_v21 = vadd.f32 1.0, %v2195_v50  ;;  %2208 = verf.f32 %v799_v48  ;;  %v1141_v59 = vadd.f32 %v1077_v45, %v1076_v34  ;;  %v3042_v0 = vmul.f32 %v887_v3, %v743_v11 }
 0x1bf   : > { %2210 = verf.f32 %v800_v32  ;;  %v889_v52 = vadd.f32 1.0, %v2197_v46  ;;  %v745_v9 = vmul.f32 0.5, %v2960_v8  ;;  %v1078_v3 = vmul.f32 %v3020_v27, %v3020_v27 }
 0x1c0   : > { %v2199_v5 = vpop.eup %2198  ;;  %v3044_v44 = vmul.f32 %v888_v21, %v744_v53  ;;  %1142 = vadd.xlane.f32.xlu1 %v1141_v59  ;;  %1000 = vadd.xlane.f32.xlu0 %v999_v62  ;;  %v1080_v8 = vmul.f32 %v3042_v0, %v3042_v0  ;;  %v747_v21 = vmul.f32 0.5, %v2980_v49  ;;  %v748_v62 = vmul.f32 0.5, %v2993_v15 }
 0x1c1   : > { %v890_v50 = vadd.f32 1.0, %v2199_v5  ;;  %v3058_v53 = vmul.f32 %v889_v52, %v745_v9  ;;  %v1144_v10 = vadd.f32 %v1079_v43, %v1078_v3  ;;  %v750_v49 = vmul.f32 0.5, %v3009_v20 }
 0x1c2   : > { %3430 = vst [vmem:[#allocation14_spill] sm:$0xff] %v3044_v44  ;;  %v2201_v48 = vpop.eup %2200  ;;  %v1002_v34 = vadd.f32 %v3044_v44, %v3042_v0  ;;  %v1081_v45 = vmul.f32 %v3044_v44, %v3044_v44  ;;  %v749_v15 = vmul.f32 0.5, %v3001_v35 }
 0x1c3   : > { %v3056_v11 = vmul.f32 %v890_v50, %v746_v51  ;;  %3432 = vst [vmem:[#allocation16_spill] sm:$0xff] %v3058_v53  ;;  %v891_v32 = vadd.f32 1.0, %v2201_v48 }
 0x1c4   : > { %1003 = vadd.xlane.f32.xlu1 %v1002_v34  ;;  %v2203_v46 = vpop.eup %2202  ;;  %1145 = vadd.xlane.f32.xlu0 %v1144_v10  ;;  %v1147_v13 = vadd.f32 %v1081_v45, %v1080_v8  ;;  %v1082_v45 = vmul.f32 %v3058_v53, %v3058_v53 }
 0x1c5   : > { %3431 = vst [vmem:[#allocation15_spill] sm:$0xff] %v3056_v11  ;;  %v892_v5 = vadd.f32 1.0, %v2203_v46  ;;  %v1005_v51 = vadd.f32 %v3056_v11, %v3058_v53  ;;  %v3066_v50 = vmul.f32 %v891_v32, %v747_v21  ;;  %v1083_v9 = vmul.f32 %v3056_v11, %v3056_v11 }
 0x1c6   : > { %v2205_v59 = vpop.eup %2204 }
 0x1c7   : > { %3433 = vst [vmem:[#allocation17_spill] sm:$0xff] %v3066_v50  ;;  %v3068_v48 = vmul.f32 %v892_v5, %v748_v62  ;;  %v893_v43 = vadd.f32 1.0, %v2205_v59  ;;  %v1150_v21 = vadd.f32 %v1083_v9, %v1082_v45  ;;  %v1084_v35 = vmul.f32 %v3066_v50, %v3066_v50 }
 0x1c8   : > { %v2207_v52 = vpop.eup %2206  ;;  %1148 = vadd.xlane.f32.xlu1 %v1147_v13  ;;  %1006 = vadd.xlane.f32.xlu0 %v1005_v51  ;;  %v751_v59 = vmul.f32 0.5, %v3023_v42  ;;  %v752_v62 = vmul.f32 0.5, %v3030_v29 }
 0x1c9   : > { %3434 = vst [vmem:[#allocation18_spill] sm:$0xff] %v3068_v48  ;;  %v894_v34 = vadd.f32 1.0, %v2207_v52  ;;  %v1008_v3 = vadd.f32 %v3068_v48, %v3066_v50  ;;  %v1085_v32 = vmul.f32 %v3068_v48, %v3068_v48  ;;  %v3082_v46 = vmul.f32 %v893_v43, %v749_v15 }
 0x1cb   : > { %v2209_v10 = vpop.eup %2208  ;;  %v3080_v13 = vmul.f32 %v894_v34, %v750_v49  ;;  %3436 = vst [vmem:[#allocation20_spill] sm:$0xff] %v3082_v46  ;;  %v1153_v51 = vadd.f32 %v1085_v32, %v1084_v35  ;;  %v1086_v42 = vmul.f32 %v3082_v46, %v3082_v46 }
 0x1cc   : > { %v2211_v8 = vpop.eup %2210  ;;  %v895_v20 = vadd.f32 1.0, %v2209_v10  ;;  %1009 = vadd.xlane.f32.xlu1 %v1008_v3  ;;  %1151 = vadd.xlane.f32.xlu0 %v1150_v21 }
 0x1cd   : > { %3435 = vst [vmem:[#allocation19_spill] sm:$0xff] %v3080_v13  ;;  %v896_v5 = vadd.f32 1.0, %v2211_v8  ;;  %v1011_v52 = vadd.f32 %v3080_v13, %v3082_v46  ;;  %v1087_v9 = vmul.f32 %v3080_v13, %v3080_v13 }
 0x1ce   : > { %v3090_v49 = vmul.f32 %v895_v20, %v751_v59 }
 0x1cf   : > { %v3092_v43 = vmul.f32 %v896_v5, %v752_v62  ;;  %v1156_v15 = vadd.f32 %v1087_v9, %v1086_v42 }
 0x1d0   : > { %3437 = vst [vmem:[#allocation21_spill] sm:$0xff] %v3090_v49  ;;  %1154 = vadd.xlane.f32.xlu1 %v1153_v51  ;;  %1012 = vadd.xlane.f32.xlu0 %v1011_v52  ;;  %v1088_v3 = vmul.f32 %v3090_v49, %v3090_v49 }
 0x1d1   : > { %3438 = vst [vmem:[#allocation22_spill] sm:$0xff] %v3092_v43  ;;  %v1014_v34 = vadd.f32 %v3092_v43, %v3090_v49  ;;  %v1089_v29 = vmul.f32 %v3092_v43, %v3092_v43 }
 0x1d3   : > { %v1159_v45 = vadd.f32 %v1089_v29, %v1088_v3 }
 0x1d4   : > { %1015 = vadd.xlane.f32.xlu1 %v1014_v34  ;;  %1157 = vadd.xlane.f32.xlu0 %v1156_v15 }
 0x1d8   : > { %1160 = vadd.xlane.f32.xlu1 %v1159_v45 }
 0x201   : > { %v947_v32 = vpop.xlane.xlu0 %946 }
 0x202   : > { %v3104_v10 = vmul.f32 0.00390625, %v947_v32 }
 0x203   : > { %v1092_v8 = vpop.xlane.xlu1 %1091 }
 0x204   : > { %v1162_v20 = vmul.f32 0.00390625, %v1092_v8  ;;  %v1186_v21 = vmul.f32 %v3104_v10, %v3104_v10 }
 0x205   : > { %v950_v35 = vpop.xlane.xlu0 %949 }
 0x206   : > { %v1210_v59 = vsub.f32 %v1162_v20, %v1186_v21  ;;  %v1019_v62 = vmul.f32 0.00390625, %v950_v35 }
 0x207   : > { %v1095_v5 = vpop.xlane.xlu1 %1094 }
 0x208   : > { %v1234_v51 = vmax.f32 %v1210_v59, 0.0  ;;  %v1163_v52 = vmul.f32 0.00390625, %v1095_v5  ;;  %v1187_v9 = vmul.f32 %v1019_v62, %v1019_v62 }
 0x209   : > { %v953_v34 = vpop.xlane.xlu0 %952 }
 0x20a   : > { %v1211_v42 = vsub.f32 %v1163_v52, %v1187_v9  ;;  %v3108_v15 = vmul.f32 0.00390625, %v953_v34  ;;  %v1306_v29 = vadd.f32 1e-12, %v1234_v51 }
 0x20c   : > { %v1235_v3 = vmax.f32 %v1211_v42, 0.0  ;;  %v1188_v49 = vmul.f32 %v3108_v15, %v3108_v15  ;;  %2212 = vrsqrt.f32 %v1306_v29 }
 0x20d   : > { %v956_v45 = vpop.xlane.xlu1 %955  ;;  %v1098_v32 = vpop.xlane.xlu0 %1097 }
 0x20e   : > { %v1307_v43 = vadd.f32 1e-12, %v1235_v3  ;;  %v3110_v8 = vmul.f32 0.00390625, %v956_v45  ;;  %v1164_v20 = vmul.f32 0.00390625, %v1098_v32 }
 0x210   : > { %2214 = vrsqrt.f32 %v1307_v43  ;;  %v1212_v21 = vsub.f32 %v1164_v20, %v1188_v49  ;;  %v1189_v52 = vmul.f32 %v3110_v8, %v3110_v8 }
 0x211   : > { %v1101_v35 = vpop.xlane.xlu1 %1100  ;;  %v959_v59 = vpop.xlane.xlu0 %958 }
 0x212   : > { %v1236_v5 = vmax.f32 %v1212_v21, 0.0  ;;  %v1165_v51 = vmul.f32 0.00390625, %v1101_v35  ;;  %v3116_v9 = vmul.f32 0.00390625, %v959_v59 }
 0x214   : > { %v1213_v34 = vsub.f32 %v1165_v51, %v1189_v52  ;;  %v1308_v42 = vadd.f32 1e-12, %v1236_v5  ;;  %v1190_v43 = vmul.f32 %v3116_v9, %v3116_v9 }
 0x215   : > { %v962_v3 = vpop.xlane.xlu1 %961  ;;  %v1104_v45 = vpop.xlane.xlu0 %1103 }
 0x216   : > { %v1237_v13 = vmax.f32 %v1213_v34, 0.0  ;;  %v3118_v46 = vmul.f32 0.00390625, %v962_v3  ;;  %v1166_v49 = vmul.f32 0.00390625, %v1104_v45  ;;  %2216 = vrsqrt.f32 %v1308_v42 }
 0x217   : > { %v1258_v34 = vsub.f32 %v2673_v23, %v3104_v10 }
 0x218   : > { %v1309_v29 = vadd.f32 1e-12, %v1237_v13  ;;  %v1214_v32 = vsub.f32 %v1166_v49, %v1190_v43  ;;  %v1191_v20 = vmul.f32 %v3118_v46, %v3118_v46  ;;  %v1260_v13 = vsub.f32 %v2686_v36, %v1019_v62 }
 0x219   : > { %v1107_v21 = vpop.xlane.xlu1 %1106  ;;  %v965_v35 = vpop.xlane.xlu0 %964  ;;  %v1259_v49 = vsub.f32 %v2679_v31, %v3104_v10 }
 0x21a   : > { %2218 = vrsqrt.f32 %v1309_v29  ;;  %v1238_v59 = vmax.f32 %v1214_v32, 0.0  ;;  %v1167_v5 = vmul.f32 0.00390625, %v1107_v21  ;;  %v3124_v52 = vmul.f32 0.00390625, %v965_v35  ;;  %v2213_v51 = vpop.eup %2212 }
 0x21b   : > { %v1261_v29 = vsub.f32 %v2693_v41, %v1019_v62  ;;  %v1355_v23 = vmul.f32 %v2213_v51, %v1259_v49 }
 0x21c   : > { %v1215_v3 = vsub.f32 %v1167_v5, %v1191_v20  ;;  %v1310_v45 = vadd.f32 1e-12, %v1238_v59  ;;  %v1192_v35 = vmul.f32 %v3124_v52, %v3124_v52  ;;  %v1354_v5 = vmul.f32 %v2213_v51, %v1258_v34 }
 0x21d   : > { %v2215_v48 = vpop.eup %2214  ;;  %v968_v42 = vpop.xlane.xlu1 %967 }
 0x21e   : > { %v1110_v43 = vpop.xlane.xlu0 %1109  ;;  %v1239_v32 = vmax.f32 %v1215_v3, 0.0  ;;  %v3132_v21 = vmul.f32 0.00390625, %v968_v42  ;;  %v1357_v20 = vmul.f32 %v2215_v48, %v1261_v29  ;;  %v1356_v11 = vmul.f32 %v2215_v48, %v1260_v13 }
 0x21f   : > { %v1168_v50 = vmul.f32 0.00390625, %v1110_v43  ;;  %2220 = vrsqrt.f32 %v1310_v45 }
 0x220   : > { %v1311_v36 = vadd.f32 1e-12, %v1239_v32  ;;  %v1193_v53 = vmul.f32 %v3132_v21, %v3132_v21  ;;  %v1403_v41 = vpack.c.bf16 %v1357_v20, %v1355_v23  ;;  %v1402_v62 = vpack.c.bf16 %v1356_v11, %v1354_v5 }
 0x221   : > { %v1216_v59 = vsub.f32 %v1168_v50, %v1192_v35  ;;  %v1113_v31 = vpop.xlane.xlu1 %1112  ;;  %v1262_v50 = vsub.f32 %v2709_v60, %v3108_v15  ;;  %v1263_v35 = vsub.f32 %v2711_v61, %v3108_v15  ;;  %v1265_v60 = vsub.f32 %v2727_v17, %v3110_v8 }
 0x222   : > { %v971_v10 = vpop.xlane.xlu0 %970  ;;  %2222 = vrsqrt.f32 %v1311_v36  ;;  %v1169_v42 = vmul.f32 0.00390625, %v1113_v31  ;;  %1593 = vmatprep.mubr.bf16.mxu1 %v1403_v41 }
 0x223   : > { %v1240_v3 = vmax.f32 %v1216_v59, 0.0  ;;  %v3138_v44 = vmul.f32 0.00390625, %v971_v10  ;;  %1594 = vmatmul.mubr.bf16.vlgmr.msra.gmra.mxu1 %v1402_v62  ;;  %v2217_v34 = vpop.eup %2216 }
 0x224   : > { %v1217_v49 = vsub.f32 %v1169_v42, %v1193_v53  ;;  %v1264_v53 = vsub.f32 %v2731_v22, %v3110_v8  ;;  %v1359_v59 = vmul.f32 %v2217_v34, %v1263_v35  ;;  %v1358_v10 = vmul.f32 %v2217_v34, %v1262_v50 }
 0x225   : > { %v1312_v43 = vadd.f32 1e-12, %v1240_v3  ;;  %v974_v48 = vpop.xlane.xlu1 %973  ;;  %v1194_v11 = vmul.f32 %v3138_v44, %v3138_v44 }
 0x226   : > { %v1116_v51 = vpop.xlane.xlu0 %1115  ;;  %v1241_v13 = vmax.f32 %v1217_v49, 0.0  ;;  %v3142_v45 = vmul.f32 0.00390625, %v974_v48  ;;  %v1266_v48 = vsub.f32 %v2747_v38, %v3116_v9 }
 0x227   : > { %v1170_v29 = vmul.f32 0.00390625, %v1116_v51  ;;  %v2219_v32 = vpop.eup %2218  ;;  %2224 = vrsqrt.f32 %v1312_v43 }
 0x228   : > { %v1313_v23 = vadd.f32 1e-12, %v1241_v13  ;;  %v1361_v31 = vmul.f32 %v2219_v32, %v1265_v60  ;;  %v1360_v41 = vmul.f32 %v2219_v32, %v1264_v53  ;;  %v1195_v61 = vmul.f32 %v3142_v45, %v3142_v45 }
 0x229   : > { %v1218_v20 = vsub.f32 %v1170_v29, %v1194_v11  ;;  %v1119_v5 = vpop.xlane.xlu1 %1118  ;;  %v1267_v13 = vsub.f32 %v2749_v39, %v3116_v9  ;;  %v1268_v11 = vsub.f32 %v2767_v63, %v3118_v46  ;;  %v1269_v29 = vsub.f32 %v2775_v4, %v3118_v46 }
 0x22a   : > { %v977_v36 = vpop.xlane.xlu0 %976  ;;  %2226 = vrsqrt.f32 %v1313_v23  ;;  %v1171_v15 = vmul.f32 0.00390625, %v1119_v5  ;;  %v1405_v3 = vpack.c.bf16 %v1361_v31, %v1359_v59  ;;  %v1404_v22 = vpack.c.bf16 %v1360_v41, %v1358_v10 }
 0x22b   : > { %v1242_v62 = vmax.f32 %v1218_v20, 0.0  ;;  %v3154_v17 = vmul.f32 0.00390625, %v977_v36 }
 0x22c   : > { %v1219_v49 = vsub.f32 %v1171_v15, %v1195_v61  ;;  %1601 = vmatprep.mubr.bf16.mxu1 %v1405_v3  ;;  %v2221_v43 = vpop.eup %2220  ;;  %v1271_v61 = vsub.f32 %v2794_v30, %v3124_v52  ;;  %v1270_v3 = vsub.f32 %v2792_v28, %v3124_v52 }
 0x22d   : > { %v1314_v42 = vadd.f32 1e-12, %v1242_v62  ;;  %v980_v8 = vpop.xlane.xlu1 %979  ;;  %1602 = vmatmul.mubr.bf16.gmra.mxu1 %v1404_v22  ;;  %v1196_v38 = vmul.f32 %v3154_v17, %v3154_v17  ;;  %v1363_v23 = vmul.f32 %v2221_v43, %v1267_v13  ;;  %v1362_v5 = vmul.f32 %v2221_v43, %v1266_v48 }
 0x22e   : > { %v1243_v50 = vmax.f32 %v1219_v49, 0.0  ;;  %v3158_v51 = vmul.f32 0.00390625, %v980_v8  ;;  %v1122_v32 = vpop.xlane.xlu0 %1121  ;;  %v1273_v22 = vsub.f32 %v2810_v57, %v3132_v21  ;;  %v1272_v43 = vsub.f32 %v2807_v1, %v3132_v21 }
 0x22f   : > { %v2223_v34 = vpop.eup %2222  ;;  %2228 = vrsqrt.f32 %v1314_v42  ;;  %v1172_v53 = vmul.f32 0.00390625, %v1122_v32 }
 0x230   : > { %v1315_v35 = vadd.f32 1e-12, %v1243_v50  ;;  %v1365_v20 = vmul.f32 %v2223_v34, %v1269_v29  ;;  %v1364_v36 = vmul.f32 %v2223_v34, %v1268_v11  ;;  %v1197_v63 = vmul.f32 %v3158_v51, %v3158_v51 }
 0x231   : > { %v1125_v60 = vpop.xlane.xlu1 %1124  ;;  %v1220_v39 = vsub.f32 %v1172_v53, %v1196_v38 }
 0x232   : > { %2230 = vrsqrt.f32 %v1315_v35  ;;  %v1173_v9 = vmul.f32 0.00390625, %v1125_v60  ;;  %v983_v59 = vpop.xlane.xlu0 %982  ;;  %v1407_v4 = vpack.c.bf16 %v1365_v20, %v1363_v23  ;;  %v1406_v46 = vpack.c.bf16 %v1364_v36, %v1362_v5 }
 0x233   : > { %v1244_v10 = vmax.f32 %v1220_v39, 0.0  ;;  %v3170_v62 = vmul.f32 0.00390625, %v983_v59  ;;  %v1275_v36 = vsub.f32 %v2834_v24, %v3138_v44 }
 0x234   : > { %v2225_v31 = vpop.eup %2224  ;;  %v1221_v41 = vsub.f32 %v1173_v9, %v1197_v63  ;;  %1609 = vmatprep.mubr.bf16.mxu1 %v1407_v4  ;;  %v1274_v63 = vsub.f32 %v2826_v33, %v3138_v44  ;;  %v1277_v9 = vsub.f32 %v2855_v56, %v3142_v45 }
 0x235   : > { %v986_v15 = vpop.xlane.xlu1 %985  ;;  %v1316_v42 = vadd.f32 1e-12, %v1244_v10  ;;  %1610 = vmatmul.mubr.bf16.gmra.mxu1 %v1406_v46  ;;  %v1198_v30 = vmul.f32 %v3170_v62, %v3170_v62  ;;  %v1367_v34 = vmul.f32 %v2225_v31, %v1271_v61  ;;  %v1366_v29 = vmul.f32 %v2225_v31, %v1270_v3 }
 0x236   : > { %v1245_v49 = vmax.f32 %v1221_v41, 0.0  ;;  %v3180_v48 = vmul.f32 0.00390625, %v986_v15  ;;  %v1128_v50 = vpop.xlane.xlu0 %1127  ;;  %v1276_v31 = vsub.f32 %v2853_v55, %v3142_v45 }
 0x237   : > { %v2227_v8 = vpop.eup %2226  ;;  %2232 = vrsqrt.f32 %v1316_v42  ;;  %v1174_v28 = vmul.f32 0.00390625, %v1128_v50 }
 0x238   : > { %v1317_v13 = vadd.f32 1e-12, %v1245_v49  ;;  %v1369_v52 = vmul.f32 %v2227_v8, %v1273_v22  ;;  %v1199_v57 = vmul.f32 %v3180_v48, %v3180_v48  ;;  %v1368_v32 = vmul.f32 %v2227_v8, %v1272_v43 }
 0x239   : > { %v1131_v11 = vpop.xlane.xlu1 %1130  ;;  %v1222_v35 = vsub.f32 %v1174_v28, %v1198_v30  ;;  %v1279_v28 = vsub.f32 %v2866_v2, %v3154_v17 }
 0x23a   : > { %2234 = vrsqrt.f32 %v1317_v13  ;;  %v1175_v1 = vmul.f32 0.00390625, %v1131_v11  ;;  %v1409_v21 = vpack.c.bf16 %v1369_v52, %v1367_v34  ;;  %v989_v38 = vpop.xlane.xlu0 %988  ;;  %v1408_v53 = vpack.c.bf16 %v1368_v32, %v1366_v29 }
 0x23b   : > { %v1246_v23 = vmax.f32 %v1222_v35, 0.0  ;;  %v3186_v5 = vmul.f32 0.00390625, %v989_v38  ;;  %v1281_v11 = vsub.f32 %v2888_v26, %v3158_v51 }
 0x23c   : > { %v2229_v60 = vpop.eup %2228  ;;  %v1223_v20 = vsub.f32 %v1175_v1, %v1199_v57  ;;  %1617 = vmatprep.mubr.bf16.mxu1 %v1409_v21  ;;  %v1278_v57 = vsub.f32 %v2873_v25, %v3154_v17  ;;  %v1280_v1 = vsub.f32 %v2886_v54, %v3158_v51 }
 0x23d   : > { %v992_v39 = vpop.xlane.xlu1 %991  ;;  %v1318_v59 = vadd.f32 1e-12, %v1246_v23  ;;  %1618 = vmatmul.mubr.bf16.gmra.mxu1 %v1408_v53  ;;  %v1200_v41 = vmul.f32 %v3186_v5, %v3186_v5  ;;  %v1371_v61 = vmul.f32 %v2229_v60, %v1275_v36  ;;  %v1370_v22 = vmul.f32 %v2229_v60, %v1274_v63 }
 0x23e   : > { %v1247_v4 = vmax.f32 %v1223_v20, 0.0  ;;  %v3196_v10 = vmul.f32 0.00390625, %v992_v39  ;;  %v1134_v24 = vpop.xlane.xlu0 %1133 }
 0x23f   : > { %v2231_v46 = vpop.eup %2230  ;;  %2236 = vrsqrt.f32 %v1318_v59  ;;  %v1176_v33 = vmul.f32 0.00390625, %v1134_v24 }
 0x240   : > { %v1319_v15 = vadd.f32 1e-12, %v1247_v4  ;;  %v1373_v44 = vmul.f32 %v2231_v46, %v1277_v9  ;;  %v1201_v56 = vmul.f32 %v3196_v10, %v3196_v10  ;;  %v1372_v42 = vmul.f32 %v2231_v46, %v1276_v31 }
 0x241   : > { %v1137_v3 = vpop.xlane.xlu1 %1136  ;;  %v1224_v49 = vsub.f32 %v1176_v33, %v1200_v41  ;;  %v1283_v41 = vsub.f32 %v2916_v40, %v3170_v62 }
 0x242   : > { %2238 = vrsqrt.f32 %v1319_v15  ;;  %v1177_v55 = vmul.f32 0.00390625, %v1137_v3  ;;  %v1411_v45 = vpack.c.bf16 %v1373_v44, %v1371_v61  ;;  %v995_v8 = vpop.xlane.xlu0 %994  ;;  %v1410_v43 = vpack.c.bf16 %v1372_v42, %v1370_v22 }
 0x243   : > { %v1248_v30 = vmax.f32 %v1224_v49, 0.0  ;;  %v3202_v34 = vmul.f32 0.00390625, %v995_v8  ;;  %v1282_v61 = vsub.f32 %v2914_v12, %v3170_v62  ;;  %v1285_v15 = vsub.f32 %v2927_v6, %v3180_v48 }
 0x244   : > { %v1225_v50 = vsub.f32 %v1177_v55, %v1201_v56  ;;  %1625 = vmatprep.mubr.bf16.mxu1 %v1411_v45  ;;  %v2233_v13 = vpop.eup %2232  ;;  %v1284_v3 = vsub.f32 %v2919_v18, %v3180_v48 }
 0x245   : > { %v998_v52 = vpop.xlane.xlu1 %997  ;;  %v1320_v29 = vadd.f32 1e-12, %v1248_v30  ;;  %1626 = vmatmul.mubr.bf16.gmra.mxu1 %v1410_v43  ;;  %v1202_v38 = vmul.f32 %v3202_v34, %v3202_v34  ;;  %v1375_v53 = vmul.f32 %v2233_v13, %v1279_v28  ;;  %v1374_v20 = vmul.f32 %v2233_v13, %v1278_v57 }
 0x246   : > { %v1249_v32 = vmax.f32 %v1225_v50, 0.0  ;;  %v3212_v21 = vmul.f32 0.00390625, %v998_v52  ;;  %v1140_v2 = vpop.xlane.xlu0 %1139 }
 0x247   : > { %v2235_v35 = vpop.eup %2234  ;;  %2240 = vrsqrt.f32 %v1320_v29  ;;  %v1178_v25 = vmul.f32 0.00390625, %v1140_v2  ;;  %v1287_v29 = vsub.f32 %v2950_v7, %v3186_v5 }
 0x248   : > { %v1321_v60 = vadd.f32 1e-12, %v1249_v32  ;;  %v1377_v17 = vmul.f32 %v2235_v35, %v1281_v11  ;;  %v1203_v26 = vmul.f32 %v3212_v21, %v3212_v21  ;;  %v1376_v36 = vmul.f32 %v2235_v35, %v1280_v1 }
 0x249   : > { %v1143_v23 = vpop.xlane.xlu1 %1142  ;;  %v1226_v39 = vsub.f32 %v1178_v25, %v1202_v38  ;;  %v1286_v35 = vsub.f32 %v2948_v37, %v3186_v5  ;;  %v1289_v1 = vsub.f32 %v2968_v47, %v3196_v10 }
 0x24a   : > { %2242 = vrsqrt.f32 %v1321_v60  ;;  %v1179_v54 = vmul.f32 0.00390625, %v1143_v23  ;;  %v1413_v51 = vpack.c.bf16 %v1377_v17, %v1375_v53  ;;  %v1001_v63 = vpop.xlane.xlu0 %1000  ;;  %v1412_v9 = vpack.c.bf16 %v1376_v36, %v1374_v20 }
 0x24b   : > { %v1250_v59 = vmax.f32 %v1226_v39, 0.0  ;;  %v3218_v46 = vmul.f32 0.00390625, %v1001_v63  ;;  %v1288_v60 = vsub.f32 %v2966_v19, %v3196_v10 }
 0x24c   : > { %v1227_v4 = vsub.f32 %v1179_v54, %v1203_v26  ;;  %1633 = vmatprep.mubr.bf16.mxu1 %v1413_v51  ;;  %v2237_v31 = vpop.eup %2236 }
 0x24d   : > { %v1004_v24 = vpop.xlane.xlu1 %1003  ;;  %v1322_v33 = vadd.f32 1e-12, %v1250_v59  ;;  %1634 = vmatmul.mubr.bf16.gmra.mxu1 %v1412_v9  ;;  %v1204_v42 = vmul.f32 %v3218_v46, %v3218_v46  ;;  %v1379_v49 = vmul.f32 %v2237_v31, %v1283_v41  ;;  %v1378_v8 = vmul.f32 %v2237_v31, %v1282_v61  ;;  %v3439_v61 = vld [vmem:[#allocation12_spill] sm:$0xff] }
 0x24e   : > { %v1251_v44 = vmax.f32 %v1227_v4, 0.0  ;;  %v3228_v22 = vmul.f32 0.00390625, %v1004_v24  ;;  %v1146_v40 = vpop.xlane.xlu0 %1145  ;;  %v1291_v41 = vsub.f32 %v2990_v14, %v3202_v34 }
 0x24f   : > { %v2239_v56 = vpop.eup %2238  ;;  %2244 = vrsqrt.f32 %v1322_v33  ;;  %v1180_v12 = vmul.f32 0.00390625, %v1146_v40  ;;  %v1293_v33 = vsub.f32 %v3013_v16, %v3212_v21 }
 0x250   : > { %v1323_v55 = vadd.f32 1e-12, %v1251_v44  ;;  %v1381_v62 = vmul.f32 %v2239_v56, %v1285_v15  ;;  %v1205_v6 = vmul.f32 %v3228_v22, %v3228_v22  ;;  %v1380_v43 = vmul.f32 %v2239_v56, %v1284_v3 }
 0x251   : > { %v1149_v45 = vpop.xlane.xlu1 %1148  ;;  %v1228_v30 = vsub.f32 %v1180_v12, %v1204_v42  ;;  %v1290_v15 = vsub.f32 %v3439_v61, %v3202_v34  ;;  %v1292_v42 = vsub.f32 %v3005_v58, %v3212_v21  ;;  %v3448_v61 = vld [vmem:[#allocation21_spill] sm:$0xff] }
 0x252   : > { %2246 = vrsqrt.f32 %v1323_v55  ;;  %v1181_v18 = vmul.f32 0.00390625, %v1149_v45  ;;  %v1415_v48 = vpack.c.bf16 %v1381_v62, %v1379_v49  ;;  %v1007_v50 = vpop.xlane.xlu0 %1006  ;;  %v1414_v13 = vpack.c.bf16 %v1380_v43, %v1378_v8 }
 0x253   : > { %v1252_v28 = vmax.f32 %v1228_v30, 0.0  ;;  %v3234_v57 = vmul.f32 0.00390625, %v1007_v50 }
 0x254   : > { %v1229_v52 = vsub.f32 %v1181_v18, %v1205_v6  ;;  %1641 = vmatprep.mubr.bf16.mxu1 %v1415_v48  ;;  %v2241_v11 = vpop.eup %2240 }
 0x255   : > { %v1010_v32 = vpop.xlane.xlu1 %1009  ;;  %v1324_v38 = vadd.f32 1e-12, %v1252_v28  ;;  %1642 = vmatmul.mubr.bf16.gmra.mxu1 %v1414_v13  ;;  %v1206_v17 = vmul.f32 %v3234_v57, %v3234_v57  ;;  %v1383_v26 = vmul.f32 %v2241_v11, %v1287_v29  ;;  %v1382_v36 = vmul.f32 %v2241_v11, %v1286_v35  ;;  %v3440_v28 = vld [vmem:[#allocation13_spill] sm:$0xff]  ;;  %v3441_v29 = vld [vmem:[#allocation14_spill] sm:$0xff] }
 0x256   : > { %v1253_v2 = vmax.f32 %v1229_v52, 0.0  ;;  %v3244_v25 = vmul.f32 0.00390625, %v1010_v32  ;;  %v1152_v7 = vpop.xlane.xlu0 %1151  ;;  %v1294_v13 = vsub.f32 %v3020_v27, %v3218_v46  ;;  %v1295_v52 = vsub.f32 %v3440_v28, %v3218_v46 }
 0x257   : > { %v2243_v53 = vpop.eup %2242  ;;  %2248 = vrsqrt.f32 %v1324_v38  ;;  %v1182_v37 = vmul.f32 0.00390625, %v1152_v7  ;;  %v1296_v11 = vsub.f32 %v3042_v0, %v3228_v22  ;;  %v1297_v32 = vsub.f32 %v3441_v29, %v3228_v22  ;;  %v3442_v0 = vld [vmem:[#allocation16_spill] sm:$0xff]  ;;  %v3443_v22 = vld [vmem:[#allocation15_spill] sm:$0xff] }
 0x258   : > { %v1325_v23 = vadd.f32 1e-12, %v1253_v2  ;;  %v1385_v5 = vmul.f32 %v2243_v53, %v1289_v1  ;;  %v1207_v47 = vmul.f32 %v3244_v25, %v3244_v25  ;;  %v1384_v39 = vmul.f32 %v2243_v53, %v1288_v60 }
 0x259   : > { %v1155_v20 = vpop.xlane.xlu1 %1154  ;;  %v1230_v54 = vsub.f32 %v1182_v37, %v1206_v17  ;;  %v1299_v37 = vsub.f32 %v3443_v22, %v3234_v57 }
 0x25a   : > { %2250 = vrsqrt.f32 %v1325_v23  ;;  %v1183_v19 = vmul.f32 0.00390625, %v1155_v20  ;;  %v1417_v10 = vpack.c.bf16 %v1385_v5, %v1383_v26  ;;  %v1013_v51 = vpop.xlane.xlu0 %1012  ;;  %v1416_v63 = vpack.c.bf16 %v1384_v39, %v1382_v36  ;;  %v3444_v5 = vld [vmem:[#allocation17_spill] sm:$0xff]  ;;  %v3445_v20 = vld [vmem:[#allocation18_spill] sm:$0xff] }
 0x25b   : > { %v1254_v9 = vmax.f32 %v1230_v54, 0.0  ;;  %v3250_v4 = vmul.f32 0.00390625, %v1013_v51  ;;  %v1298_v23 = vsub.f32 %v3442_v0, %v3234_v57  ;;  %v1301_v36 = vsub.f32 %v3445_v20, %v3244_v25 }
 0x25c   : > { %v1231_v59 = vsub.f32 %v1183_v19, %v1207_v47  ;;  %1649 = vmatprep.mubr.bf16.mxu1 %v1417_v10  ;;  %v2245_v31 = vpop.eup %2244  ;;  %v1300_v47 = vsub.f32 %v3444_v5, %v3244_v25 }
 0x25d   : > { %v1016_v24 = vpop.xlane.xlu1 %1015  ;;  %v1326_v44 = vadd.f32 1e-12, %v1254_v9  ;;  %1650 = vmatmul.mubr.bf16.gmra.mxu1 %v1416_v63  ;;  %v1208_v49 = vmul.f32 %v3250_v4, %v3250_v4  ;;  %v1387_v55 = vmul.f32 %v2245_v31, %v1291_v41  ;;  %v1386_v45 = vmul.f32 %v2245_v31, %v1290_v15  ;;  %v3446_v31 = vld [vmem:[#allocation20_spill] sm:$0xff]  ;;  %v3447_v41 = vld [vmem:[#allocation19_spill] sm:$0xff]  ;;  %v3449_v15 = vld [vmem:[#allocation22_spill] sm:$0xff] }
 0x25e   : > { %v1255_v56 = vmax.f32 %v1231_v59, 0.0  ;;  %v3260_v40 = vmul.f32 0.00390625, %v1016_v24  ;;  %v1158_v14 = vpop.xlane.xlu0 %1157  ;;  %v1302_v57 = vsub.f32 %v3446_v31, %v3250_v4  ;;  %v1303_v24 = vsub.f32 %v3447_v41, %v3250_v4  ;;  %v3294_v4 = vld [vmem:[%s3400_s4] ss:$0 sm:$0xff] }
 0x25f   : > { %v2247_v3 = vpop.eup %2246  ;;  %2252 = vrsqrt.f32 %v1326_v44  ;;  %v1184_v34 = vmul.f32 0.00390625, %v1158_v14 }
 0x260   : > { %v1327_v12 = vadd.f32 1e-12, %v1255_v56  ;;  %v1389_v62 = vmul.f32 %v2247_v3, %v1293_v33  ;;  %v1209_v16 = vmul.f32 %v3260_v40, %v3260_v40  ;;  %v1388_v8 = vmul.f32 %v2247_v3, %v1292_v42 }
 0x261   : > { %v1161_v6 = vpop.xlane.xlu1 %1160  ;;  %v1232_v43 = vsub.f32 %v1184_v34, %v1208_v49  ;;  %v1304_v25 = vsub.f32 %v3448_v61, %v3260_v40  ;;  %v1305_v33 = vsub.f32 %v3449_v15, %v3260_v40 }
 0x262   : > { %2254 = vrsqrt.f32 %v1327_v12  ;;  %v1185_v58 = vmul.f32 0.00390625, %v1161_v6  ;;  %v1419_v21 = vpack.c.bf16 %v1389_v62, %v1387_v55  ;;  %v1418_v30 = vpack.c.bf16 %v1388_v8, %v1386_v45 }
 0x263   : > { %v1256_v18 = vmax.f32 %v1232_v43, 0.0 }
 0x264   : > { %v1233_v48 = vsub.f32 %v1185_v58, %v1209_v16  ;;  %1657 = vmatprep.mubr.bf16.mxu1 %v1419_v21  ;;  %v2249_v50 = vpop.eup %2248 }
 0x265   : > { %v1328_v35 = vadd.f32 1e-12, %v1256_v18  ;;  %1658 = vmatmul.mubr.bf16.gmra.mxu1 %v1418_v30  ;;  %v1391_v2 = vmul.f32 %v2249_v50, %v1295_v52  ;;  %v1390_v53 = vmul.f32 %v2249_v50, %v1294_v13 }
 0x266   : > { %v1257_v1 = vmax.f32 %v1233_v48, 0.0 }
 0x267   : > { %v2251_v38 = vpop.eup %2250  ;;  %2256 = vrsqrt.f32 %v1328_v35 }
 0x268   : > { %v1329_v60 = vadd.f32 1e-12, %v1257_v1  ;;  %v1393_v17 = vmul.f32 %v2251_v38, %v1297_v32  ;;  %v1392_v7 = vmul.f32 %v2251_v38, %v1296_v11 }
 0x26a   : > { %2258 = vrsqrt.f32 %v1329_v60  ;;  %v1421_v27 = vpack.c.bf16 %v1393_v17, %v1391_v2  ;;  %v1420_v26 = vpack.c.bf16 %v1392_v7, %v1390_v53 }
 0x26c   : > { %1665 = vmatprep.mubr.bf16.mxu1 %v1421_v27  ;;  %v2253_v46 = vpop.eup %2252 }
 0x26d   : > { %1666 = vmatmul.mubr.bf16.gmra.mxu1 %v1420_v26  ;;  %v1395_v54 = vmul.f32 %v2253_v46, %v1299_v37  ;;  %v1394_v10 = vmul.f32 %v2253_v46, %v1298_v23 }
 0x26f   : > { %v2255_v39 = vpop.eup %2254 }
 0x270   : > { %v1397_v19 = vmul.f32 %v2255_v39, %v1301_v36  ;;  %v1396_v51 = vmul.f32 %v2255_v39, %v1300_v47 }
 0x272   : > { %v1423_v63 = vpack.c.bf16 %v1397_v19, %v1395_v54  ;;  %v1422_v9 = vpack.c.bf16 %v1396_v51, %v1394_v10 }
 0x274   : > { %1673 = vmatprep.mubr.bf16.mxu1 %v1423_v63  ;;  %v2257_v59 = vpop.eup %2256 }
 0x275   : > { %1674 = vmatmul.mubr.bf16.gmra.mxu1 %v1422_v9  ;;  %v1399_v56 = vmul.f32 %v2257_v59, %v1303_v24  ;;  %v1398_v42 = vmul.f32 %v2257_v59, %v1302_v57 }
 0x277   : > { %v2259_v44 = vpop.eup %2258 }
 0x278   : > { %v1401_v3 = vmul.f32 %v2259_v44, %v1305_v33  ;;  %v1400_v49 = vmul.f32 %v2259_v44, %v1304_v25 }
 0x27a   : > { %v1425_v14 = vpack.c.bf16 %v1401_v3, %v1399_v56  ;;  %v1424_v55 = vpack.c.bf16 %v1400_v49, %v1398_v42 }
 0x27c   : > { %1681 = vmatprep.mubr.bf16.mxu1 %v1425_v14 }
 0x27d   : > { %1682 = vmatmul.mubr.bf16.gmra.mxu1 %v1424_v55 }
 0x2e3   : > { %v1902_v12 = vpop.f32.mrf.mxu1 }
 0x2e5   : > { %v1903_v34 = vpop.f32.mrf.mxu1 }
 0x2e6   : > { %v1904_v62 = vadd.f32 %v1903_v34, %v1902_v12 }
 0x2e7   : > { %v1905_v40 = vpop.f32.mrf.mxu1 }
 0x2e8   : > { %v1596_v16 = vadd.f32 %v1904_v62, %v3294_v4 }
 0x2e9   : > { %v1906_v6 = vpop.f32.mrf.mxu1 }
 0x2ea   : > { %1690 = vst [vmem:[%s3297_s14] sm:$0xff] %v1596_v16  ;;  %v1907_v45 = vadd.f32 %v1906_v6, %v1905_v40 }
 0x2ec   : > { %v1599_v8 = vadd.f32 %v1907_v45, %v3294_v4 }
 0x2ed   : > { %v1908_v43 = vpop.f32.mrf.mxu1 }
 0x2ee   : > { %1691 = vst [vmem:[%s3297_s14 + $0x8] sm:$0xff] %v1599_v8 }
 0x2ef   : > { %v1909_v58 = vpop.f32.mrf.mxu1 }
 0x2f0   : > { %v1910_v21 = vadd.f32 %v1909_v58, %v1908_v43 }
 0x2f1   : > { %v1911_v30 = vpop.f32.mrf.mxu1 }
 0x2f2   : > { %v1604_v18 = vadd.f32 %v1910_v21, %v3294_v4 }
 0x2f3   : > { %v1912_v48 = vpop.f32.mrf.mxu1 }
 0x2f4   : > { %1692 = vst [vmem:[%s3297_s14 + $0x10] sm:$0xff] %v1604_v18  ;;  %v1913_v50 = vadd.f32 %v1912_v48, %v1911_v30 }
 0x2f5   : > { %v1914_v13 = vpop.f32.mrf.mxu1 }
 0x2f6   : > { %v1607_v28 = vadd.f32 %v1913_v50, %v3294_v4 }
 0x2f7   : > { %v1915_v52 = vpop.f32.mrf.mxu1 }
 0x2f8   : > { %1693 = vst [vmem:[%s3297_s14 + $0x18] sm:$0xff] %v1607_v28  ;;  %v1916_v11 = vadd.f32 %v1915_v52, %v1914_v13 }
 0x2f9   : > { %v1917_v29 = vpop.f32.mrf.mxu1 }
 0x2fa   : > { %v1612_v32 = vadd.f32 %v1916_v11, %v3294_v4 }
 0x2fb   : > { %v1918_v35 = vpop.f32.mrf.mxu1 }
 0x2fc   : > { %1694 = vst [vmem:[%s3297_s14 + $0x20] sm:$0xff] %v1612_v32  ;;  %v1919_v1 = vadd.f32 %v1918_v35, %v1917_v29 }
 0x2fd   : > { %v1920_v38 = vpop.f32.mrf.mxu1 }
 0x2fe   : > { %v1615_v2 = vadd.f32 %v1919_v1, %v3294_v4 }
 0x2ff   : > { %v1921_v53 = vpop.f32.mrf.mxu1 }
 0x300   : > { %1695 = vst [vmem:[%s3297_s14 + $0x28] sm:$0xff] %v1615_v2  ;;  %v1922_v60 = vadd.f32 %v1921_v53, %v1920_v38 }
 0x301   : > { %v1923_v17 = vpop.f32.mrf.mxu1 }
 0x302   : > { %v1620_v7 = vadd.f32 %v1922_v60, %v3294_v4 }
 0x303   : > { %v1924_v27 = vpop.f32.mrf.mxu1 }
 0x304   : > { %1696 = vst [vmem:[%s3297_s14 + $0x30] sm:$0xff] %v1620_v7  ;;  %v1925_v26 = vadd.f32 %v1924_v27, %v1923_v17 }
 0x305   : > { %v1926_v46 = vpop.f32.mrf.mxu1 }
 0x306   : > { %v1623_v0 = vadd.f32 %v1925_v26, %v3294_v4 }
 0x307   : > { %v1927_v23 = vpop.f32.mrf.mxu1 }
 0x308   : > { %1697 = vst [vmem:[%s3297_s14 + $0x38] sm:$0xff] %v1623_v0  ;;  %v1928_v22 = vadd.f32 %v1927_v23, %v1926_v46 }
 0x309   : > { %v1929_v37 = vpop.f32.mrf.mxu1 }
 0x30a   : > { %v1628_v5 = vadd.f32 %v1928_v22, %v3294_v4 }
 0x30b   : > { %v1930_v47 = vpop.f32.mrf.mxu1 }
 0x30c   : > { %1698 = vst [vmem:[%s3297_s14 + $0x40] sm:$0xff] %v1628_v5  ;;  %v1931_v20 = vadd.f32 %v1930_v47, %v1929_v37 }
 0x30d   : > { %v1932_v36 = vpop.f32.mrf.mxu1 }
 0x30e   : > { %v1631_v39 = vadd.f32 %v1931_v20, %v3294_v4 }
 0x30f   : > { %v1933_v54 = vpop.f32.mrf.mxu1 }
 0x310   : > { %1699 = vst [vmem:[%s3297_s14 + $0x48] sm:$0xff] %v1631_v39  ;;  %v1934_v19 = vadd.f32 %v1933_v54, %v1932_v36 }
 0x311   : > { %v1935_v10 = vpop.f32.mrf.mxu1 }
 0x312   : > { %v1636_v51 = vadd.f32 %v1934_v19, %v3294_v4 }
 0x313   : > { %v1936_v63 = vpop.f32.mrf.mxu1 }
 0x314   : > { %1700 = vst [vmem:[%s3297_s14 + $0x50] sm:$0xff] %v1636_v51  ;;  %v1937_v9 = vadd.f32 %v1936_v63, %v1935_v10 }
 0x315   : > { %v1938_v59 = vpop.f32.mrf.mxu1 }
 0x316   : > { %v1639_v31 = vadd.f32 %v1937_v9, %v3294_v4 }
 0x317   : > { %v1939_v57 = vpop.f32.mrf.mxu1 }
 0x318   : > { %1701 = vst [vmem:[%s3297_s14 + $0x58] sm:$0xff] %v1639_v31  ;;  %v1940_v41 = vadd.f32 %v1939_v57, %v1938_v59 }
 0x319   : > { %v1941_v24 = vpop.f32.mrf.mxu1 }
 0x31a   : > { %v1644_v61 = vadd.f32 %v1940_v41, %v3294_v4 }
 0x31b   : > { %v1942_v25 = vpop.f32.mrf.mxu1 }
 0x31c   : > { %1702 = vst [vmem:[%s3297_s14 + $0x60] sm:$0xff] %v1644_v61  ;;  %v1943_v15 = vadd.f32 %v1942_v25, %v1941_v24 }
 0x31d   : > { %v1944_v33 = vpop.f32.mrf.mxu1 }
 0x31e   : > { %v1647_v44 = vadd.f32 %v1943_v15, %v3294_v4 }
 0x31f   : > { %v1945_v56 = vpop.f32.mrf.mxu1 }
 0x320   : > { %1703 = vst [vmem:[%s3297_s14 + $0x68] sm:$0xff] %v1647_v44  ;;  %v1946_v3 = vadd.f32 %v1945_v56, %v1944_v33 }
 0x321   : > { %v1947_v42 = vpop.f32.mrf.mxu1 }
 0x322   : > { %v1652_v49 = vadd.f32 %v1946_v3, %v3294_v4 }
 0x323   : > { %v1948_v14 = vpop.f32.mrf.mxu1 }
 0x324   : > { %1704 = vst [vmem:[%s3297_s14 + $0x70] sm:$0xff] %v1652_v49  ;;  %v1949_v55 = vadd.f32 %v1948_v14, %v1947_v42 }
 0x325   : > { %v1950_v12 = vpop.f32.mrf.mxu1 }
 0x326   : > { %v1655_v34 = vadd.f32 %v1949_v55, %v3294_v4 }
 0x327   : > { %v1951_v62 = vpop.f32.mrf.mxu1 }
 0x328   : > { %1705 = vst [vmem:[%s3297_s14 + $0x78] sm:$0xff] %v1655_v34  ;;  %v1952_v40 = vadd.f32 %v1951_v62, %v1950_v12 }
 0x329   : > { %v1953_v16 = vpop.f32.mrf.mxu1 }
 0x32a   : > { %v1660_v6 = vadd.f32 %v1952_v40, %v3294_v4 }
 0x32b   : > { %v1954_v45 = vpop.f32.mrf.mxu1 }
 0x32c   : > { %1706 = vst [vmem:[%s3297_s14 + $0x80] sm:$0xff] %v1660_v6  ;;  %v1955_v8 = vadd.f32 %v1954_v45, %v1953_v16 }
 0x32d   : > { %v1956_v43 = vpop.f32.mrf.mxu1 }
 0x32e   : > { %v1663_v58 = vadd.f32 %v1955_v8, %v3294_v4 }
 0x32f   : > { %v1957_v21 = vpop.f32.mrf.mxu1 }
 0x330   : > { %1707 = vst [vmem:[%s3297_s14 + $0x88] sm:$0xff] %v1663_v58  ;;  %v1958_v30 = vadd.f32 %v1957_v21, %v1956_v43 }
 0x331   : > { %v1959_v18 = vpop.f32.mrf.mxu1 }
 0x332   : > { %v1668_v48 = vadd.f32 %v1958_v30, %v3294_v4 }
 0x333   : > { %v1960_v50 = vpop.f32.mrf.mxu1 }
 0x334   : > { %1708 = vst [vmem:[%s3297_s14 + $0x90] sm:$0xff] %v1668_v48  ;;  %v1961_v13 = vadd.f32 %v1960_v50, %v1959_v18 }
 0x335   : > { %v1962_v28 = vpop.f32.mrf.mxu1 }
 0x336   : > { %v1671_v52 = vadd.f32 %v1961_v13, %v3294_v4 }
 0x337   : > { %v1963_v11 = vpop.f32.mrf.mxu1 }
 0x338   : > { %1709 = vst [vmem:[%s3297_s14 + $0x98] sm:$0xff] %v1671_v52  ;;  %v1964_v29 = vadd.f32 %v1963_v11, %v1962_v28 }
 0x339   : > { %v1965_v32 = vpop.f32.mrf.mxu1 }
 0x33a   : > { %v1676_v35 = vadd.f32 %v1964_v29, %v3294_v4 }
 0x33b   : > { %v1966_v1 = vpop.f32.mrf.mxu1 }
 0x33c   : > { %1710 = vst [vmem:[%s3297_s14 + $0xa0] sm:$0xff] %v1676_v35  ;;  %v1967_v38 = vadd.f32 %v1966_v1, %v1965_v32 }
 0x33d   : > { %v1968_v2 = vpop.f32.mrf.mxu1 }
 0x33e   : > { %v1679_v53 = vadd.f32 %v1967_v38, %v3294_v4 }
 0x33f   : > { %v1969_v60 = vpop.f32.mrf.mxu1 }
 0x340   : > { %1711 = vst [vmem:[%s3297_s14 + $0xa8] sm:$0xff] %v1679_v53  ;;  %v1970_v17 = vadd.f32 %v1969_v60, %v1968_v2 }
 0x341   : > { %v1971_v7 = vpop.f32.mrf.mxu1 }
 0x342   : > { %v1684_v27 = vadd.f32 %v1970_v17, %v3294_v4 }
 0x343   : > { %v1972_v26 = vpop.f32.mrf.mxu1 }
 0x344   : > { %1712 = vst [vmem:[%s3297_s14 + $0xb0] sm:$0xff] %v1684_v27  ;;  %v1973_v46 = vadd.f32 %v1972_v26, %v1971_v7 }
 0x346   : > { %v1687_v0 = vadd.f32 %v1973_v46, %v3294_v4 }
 0x348   : > { %1713 = vst [vmem:[%s3297_s14 + $0xb8] sm:$0xff] %v1687_v0 }
 0x349   : > { %2353 = shalt.err (!%p2350_p9)
}
 0x34a   : > { %s2354_s24 = scalar_lea.hbm %s3349_s15, 3072  ;;  %s2358_s11 = scalar_lea.hbm %s3401_s5, 6144 }
 0x34b   : > { %p2355_p13 = scmp.ne.s32.totalorder %s3349_s15, %s2354_s24  ;;  %p2359_p4 = scmp.lt.s32.totalorder %s3349_s15, %s3401_s5 }
 0x34c   : > { %p2360_p8 = scmp.lt.s32.totalorder %s2358_s11, %s2354_s24 }
 0x34d   : > { %p2356_p5 = pnand %p2355_p13, %p3450_p10 }
 0x34e   : > { %p2361_p7 = por %p2360_p8, %p2359_p4 }
 0x34f   : > { %p2357_p0 = pneg %p2356_p5 }
 0x351   : > { %p2362_p11 = pnand %p2361_p7, %p2357_p0 }
 0x353   : > { %2365 = shalt.err (!%p2362_p11)
}
 0x354   : > { %s2420_s29 = smov 128   ;;  %s2421_s10 = smov 8  }
 0x355   : > { %1987 = dma.vmem_to_hbm [thread:$0]  (%p3450_p10), %s3352_s7, 3072, %s3349_s15, %s1715_s22, %s2420_s29, %s2420_s29, %s2421_s10  }
 0x356 PF: > { %s1743_s12 = sand.u32 1, %s2396_s18   ;;  %p3451_p1 = scmp.ne.s32.totalorder %s3418_s25, 0 }
 0x357   : > { %p3452_p2 = scmp.ge.s32.totalorder %s2408_s21, 2  ;;  %s1744_s16 = scalar_lea.sflag [#allocation4], %s1743_s12 }
 0x359   : > { %p2001_p6 = pnand %p3452_p2, %p3451_p1 }
 0x35b   : > { %p2002_p12 = pneg %p2001_p6 }
 0x35d   : > { %2391 = dma.done.wait (%p2002_p12), %s1744_s16, 3072  }
 0x35e   : > { %2393 = vsyncadd (%p2002_p12), %s1744_s16, 4294964224  ;;  %p19_p3 = scmp.ge.s32.totalorder %s2524_s17, 4   ;;  %s3453_s18 = smov %s2400_s19 }
 0x35f   : > { %s3454_s19 = smov %s2404_s20  ;;  %s3455_s20 = smov %s2533_s28 }
 0x360   : > { %s3456_s21 = smov %s2524_s17  ;;  %21 = sbr.rel (!%p19_p3) target bundleno = 6 (0x6), region = 93 }
 0x365   :  { %1749 = vsyncpa [#allocation3], 1 }
 0x366   :  { %1751 = vsyncpa [#allocation3 + $0x1], 1 }
 0x367   :  { %1752 = vsyncpa [#allocation6], 1 }
 0x368   :  { %1753 = vsyncpa [#allocation4], 1 }
 0x369   :  { %1755 = vsyncpa [#allocation4 + $0x1], 1 }

// kernel: tpu_custom_call.1
= control target key start
LH: loop header
LB: loop body
LE: loop exit
PB: predicated region body
PF: predicated region fallthrough
CT: control target
= control target key end

     0   :  { %10 = vsyncpa [#allocation3], 0  ;;  %s3396_s0 = inlined_call_operand.hbm [shape: f32[384,256], index: 0, kind: input, shape index: {}]   ;;  %s3397_s1 = inlined_call_operand.hbm [shape: bf16[256,256], index: 1, kind: input, shape index: {}]   ;;  %s3398_s2 = inlined_call_operand.vmem [shape: f32[1,256], index: 2, kind: input, shape index: {}]   ;;  %s3399_s3 = inlined_call_operand.hbm [shape: bf16[256,128], index: 3, kind: input, shape index: {}]   ;;  %s3400_s4 = inlined_call_operand.vmem [shape: f32[1,128], index: 4, kind: input, shape index: {}]   ;;  %s3401_s5 = inlined_call_operand.hbm [shape: f32[384,128], index: 5, kind: output, shape index: {}]  }
   0x1   :  { %12 = vsyncpa [#allocation3 + $0x1], 0 }
   0x2   :  { %13 = vsyncpa [#allocation6], 0 }
   0x3   :  { %14 = vsyncpa [#allocation4], 0 }
   0x4   :  { %16 = vsyncpa [#allocation4 + $0x1], 0  ;;  %s2452_s18 = smov 0   ;;  %s2454_s19 = smov 0  }
   0x5   :  { %s2456_s20 = smov 0   ;;  %s2458_s21 = smov 0  }
   0x6 LB: > { %s2473_s22 = sadd.s32 4294967295, %s2408_s21   ;;  %s1820_s23 = sadd.s32 4294967294, %s2408_s21   ;;  %s2408_s21 = sphi %s2458_s21, %s3456_s21   ;;  %s2404_s20 = sphi %s2456_s20, %s3455_s20   ;;  %s2400_s19 = sphi %s2454_s19, %s3454_s19   ;;  %s2396_s18 = sphi %s2452_s18, %s3453_s18  }
   0x7   : > { %p42_p0 = scmp.ne.s32.totalorder %s2400_s19, %s2396_s18  ;;  %p3402_p1 = scmp.eq.s32.totalorder %s2473_s22, 0 }
   0x8   : > { %p156_p3 = scmp.eq.s32.totalorder %s1820_s23, 1  ;;  %p1821_p5 = scmp.ge.s32.totalorder %s2408_s21, 1 }
   0x9   : > { %p2482_p4 = por %p3402_p1, %p42_p0  ;;  %p163_p7 = scmp.lt.s32.totalorder %s2408_s21, 3 }
   0xa   : > { %p2487_p6 = por %p156_p3, %p42_p0  ;;  %s2410_s27 = smov [#allocation5]  }
   0xb   : > { %s3417_s24 = scalar_select %p2482_p4, 1, 0 }
   0xc   : > { %s3418_s25 = scalar_select %p2487_p6, 1, 0 }
   0xd   : > { %p2492_p8 = pnand %p1821_p5, %p163_p7  ;;  %s175_s28 = sshll.u32 %s2410_s27, 4  ;;  %s176_s28 = int_to_ptr.vmem [resolvable:$true] %s175_s28 }
   0xe   : > { %s2411_s30 = smov [#allocation7]   ;;  %s2271_s7 = scalar_lea.vmem %s176_s28, 4096 }
   0xf   : > { %s3419_s26 = scalar_select %p2492_p8, 1, 0 }
  0x10   : > { %p1989_p9 = pneg %p2492_p8  ;;  %s191_s6 = sshll.u32 %s2411_s30, 4  ;;  %s192_s6 = int_to_ptr.vmem [resolvable:$true] %s191_s6 }
  0x11   : > { %p2272_p13 = scmp.ne.s32.totalorder %s176_s28, %s2271_s7  ;;  %p2279_p5 = scmp.lt.s32.totalorder %s176_s28, %s176_s28 }
  0x12   : > { %p2501_p11 = pnand %p1989_p9, %p3402_p1  ;;  %p2280_p7 = scmp.lt.s32.totalorder %s2271_s7, %s2271_s7 }
  0x14   : > { %p2262_p12 = pneg %p2501_p11  ;;  %p2281_p10 = por %p2280_p7, %p2279_p5 }
  0x16   : > { %p2274_p0 = pnand %p2272_p13, %p2262_p12 }
  0x18   : > { %p2275_p3 = pneg %p2274_p0 }
  0x1a   : > { %p2282_p9 = pnand %p2281_p10, %p2275_p3 }
  0x1c   : > { %2285 = shalt.err (!%p2282_p9)
}
  0x1d   : > { %s2412_s8 = smov 128   ;;  %s2413_s9 = smov 8  }
  0x1e   : > { %1992 = dma.hbm_to_vmem [thread:$0]  (!%p2501_p11), %s3397_s1, 4096, %s176_s28, [#allocation6], %s2412_s8, %s2412_s8, %s2413_s9  }
  0x1f   : > { %s2297_s12 = scalar_lea.vmem %s192_s6, 2048  ;;  %p2305_p2 = scmp.lt.s32.totalorder %s192_s6, %s192_s6 }
  0x20   : > { %p2298_p1 = scmp.ne.s32.totalorder %s192_s6, %s2297_s12  ;;  %p2306_p6 = scmp.lt.s32.totalorder %s2297_s12, %s2297_s12 }
  0x22   : > { %p2300_p13 = pnand %p2298_p1, %p2262_p12  ;;  %p2307_p5 = por %p2306_p6, %p2305_p2 }
  0x24   : > { %p2301_p0 = pneg %p2300_p13 }
  0x26   : > { %p2308_p10 = pnand %p2307_p5, %p2301_p0 }
  0x28   : > { %2311 = shalt.err (!%p2308_p10)
}
  0x29   : > { %s2414_s13 = smov 64   ;;  %s2415_s14 = smov 4  }
  0x2a   : > { %1995 = dma.hbm_to_vmem [thread:$0]  (!%p2501_p11), %s3399_s3, 2048, %s192_s6, [#allocation6], %s2414_s13, %s2414_s13, %s2415_s14  }
  0x2b   : > { %s2524_s17 = sadd.s32 1, %s2408_s21   ;;  %s29_s27 = sadd.s32 1, %s2404_s20 }
  0x2c   : > { %s26_s23 = ssub.s32 %s2408_s21, %s2524_s17  ;;  %p36_p2 = scmp.ne.s32.totalorder %s2404_s20, %s2400_s19 }
  0x2d   : > { %p27_p1 = scmp.eq.s32.totalorder %s26_s23, 0  ;;  %p37_p6 = scmp.eq.s32.totalorder %s2408_s21, 0 }
  0x2e   : > { %p3421_p3 = scmp.eq.s32.totalorder %s2473_s22, 1  ;;  %p2006_p9 = scmp.lt.s32.totalorder %s2408_s21, 2 }
  0x2f   : > { %s2533_s28 = scalar_select %p27_p1, %s2404_s20, %s29_s27  }
  0x30   : > { %p38_p12 = por %p37_p6, %p36_p2  ;;  %p2537_p7 = por %p3421_p3, %p36_p2 }
  0x31   : > { %s208_s29 = sand.u32 1, %s2404_s20   ;;  %s1885_s6 = smul.u32 6144, %s2408_s21 }
  0x32   : > { %s3422_s30 = scalar_select %p2537_p7, 1, 0 }
  0x33   : > { %s1974_s7 = smul.u32 384, %s208_s29  ;;  %p2544_p11 = pnand %p2006_p9, %p38_p12 }
  0x34   : > { %s2551_s11 = scalar_lea.hbm %s3396_s0, %s1885_s6  ;;  %s2555_s14 = scalar_lea.sflag [#allocation3], %s208_s29 }
  0x35   : > { %s212_s12 = scalar_lea.vmem [#allocation2], %s1974_s7  ;;  %s2312_s15 = scalar_lea.hbm %s2551_s11, 6144 }
  0x36   : > { %s220_s13 = sshll.u32 %s212_s12, 4  ;;  %p2313_p13 = scmp.ne.s32.totalorder %s2551_s11, %s2312_s15  ;;  %s2553_s13 = int_to_ptr.vmem [resolvable:$true] %s220_s13 }
  0x37   : > { %p2314_p0 = pneg %p2544_p11  ;;  %s2317_s27 = scalar_lea.hbm %s3396_s0, 12288 }
  0x38   : > { %p2318_p1 = scmp.lt.s32.totalorder %s2551_s11, %s3396_s0  ;;  %p2319_p2 = scmp.lt.s32.totalorder %s2317_s27, %s2312_s15 }
  0x39   : > { %p2315_p5 = pnand %p2314_p0, %p2313_p13 }
  0x3a   : > { %p2320_p6 = por %p2319_p2, %p2318_p1 }
  0x3b   : > { %p2316_p10 = pneg %p2315_p5 }
  0x3d   : > { %p2321_p12 = pnand %p2320_p6, %p2316_p10 }
  0x3f   : > { %2324 = shalt.err (!%p2321_p12)
}
  0x40   : > { %s2325_s29 = scalar_lea.vmem %s2553_s13, 6144  ;;  %s2416_s7 = smov [#allocation2]  }
  0x41   : > { %p2326_p3 = scmp.ne.s32.totalorder %s2553_s13, %s2325_s29  ;;  %s2330_s10 = sshll.u32 %s2416_s7, 4  ;;  %s2331_s10 = int_to_ptr.vmem [resolvable:$false] %s2330_s10 }
  0x42   : > { %s2332_s12 = scalar_lea.vmem %s2331_s10, 12288  ;;  %p2333_p5 = scmp.lt.s32.totalorder %s2553_s13, %s2331_s10 }
  0x43   : > { %p2328_p9 = pnand %p2326_p3, %p2314_p0  ;;  %p2334_p7 = scmp.lt.s32.totalorder %s2332_s12, %s2325_s29 }
  0x45   : > { %p2329_p13 = pneg %p2328_p9  ;;  %p2335_p4 = por %p2334_p7, %p2333_p5 }
  0x47   : > { %p2336_p8 = pnand %p2335_p4, %p2329_p13 }
  0x49   : > { %2339 = shalt.err (!%p2336_p8)
}
  0x4a   : > { %s2417_s15 = smov 256   ;;  %s2418_s16 = smov 16  }
  0x4b   : > { %1999 = dma.hbm_to_vmem [thread:$0]  (!%p2544_p11), %s2551_s11, 6144, %s2553_s13, %s2555_s14, %s2417_s15, %s2417_s15, %s2418_s16  }
  0x4c   : > { %p3424_p0 = scmp.ne.s32.totalorder %s3419_s26, 0 }
  0x4e   : > { %232 = sbr.rel (%p3424_p0) target bundleno = 854 (0x356), region = 40 }
  0x53   : > { %s2579_s23 = sand.u32 1, %s2400_s19   ;;  %p3425_p4 = scmp.ne.s32.totalorder %s3417_s24, 0 }
  0x54   : > { %s1975_s27 = smul.u32 384, %s2579_s23  ;;  %s235_s6 = scalar_lea.sflag [#allocation3], %s2579_s23 }
  0x56   : > { %s2583_s9 = scalar_lea.vmem [#allocation2], %s1975_s27 }
  0x57   : > { %2383 = dma.done.wait (%p3425_p4), %s235_s6, 6144  }
  0x58   : > { %2385 = vsyncadd (%p3425_p4), %s235_s6, 4294961152  ;;  %p3426_p8 = scmp.eq.s32.totalorder %s2473_s22, 0 }
  0x5a   : > { %2387 = dma.done.wait (%p3426_p8), [#allocation6], 6144   ;;  %p3427_p7 = pmov %p3426_p8 }
  0x5b   : > { %v2052_v0 = vld [vmem:[#allocation5 + $0x74] ss:$8 sps:$4 sm:$0xff]   ;;  %v2054_v1 = vld [vmem:[#allocation5 + $0x70] ss:$8 sps:$4 sm:$0xff]   ;;  %v2055_v2 = vld [vmem:[#allocation5 + $0x64] ss:$8 sps:$4 sm:$0xff]  }
  0x5c   : > { %2389 = vsyncadd (%p3427_p7), [#allocation6], 4294961152  ;;  %552 = vmatprep.subr.bf16.mxu0 %v2052_v0  ;;  %v2057_v3 = vld [vmem:[#allocation5 + $0x60] ss:$8 sps:$4 sm:$0xff]   ;;  %v2058_v4 = vld [vmem:[#allocation5 + $0x54] ss:$8 sps:$4 sm:$0xff]  }
  0x5d   : > { %553 = vmatpush1.bf16.msra.mxu0 %v2054_v1  ;;  %v2060_v5 = vld [vmem:[#allocation5 + $0x50] ss:$8 sps:$4 sm:$0xff]   ;;  %v2061_v6 = vld [vmem:[#allocation5 + $0x44] ss:$8 sps:$4 sm:$0xff]   ;;  %v2063_v7 = vld [vmem:[#allocation5 + $0x40] ss:$8 sps:$4 sm:$0xff]  }
  0x5e   : > { %554 = vmatprep.subr.bf16.mxu0 %v2055_v2  ;;  %v2064_v8 = vld [vmem:[#allocation5 + $0x34] ss:$8 sps:$4 sm:$0xff]   ;;  %v2066_v9 = vld [vmem:[#allocation5 + $0x30] ss:$8 sps:$4 sm:$0xff]   ;;  %v2067_v10 = vld [vmem:[#allocation5 + $0x24] ss:$8 sps:$4 sm:$0xff]  }
  0x5f   : > { %v2069_v11 = vld [vmem:[#allocation5 + $0x20] ss:$8 sps:$4 sm:$0xff]   ;;  %v2070_v12 = vld [vmem:[#allocation5 + $0x14] ss:$8 sps:$4 sm:$0xff]   ;;  %v2072_v16 = vld [vmem:[#allocation5 + $0x10] ss:$8 sps:$4 sm:$0xff]  }
  0x60   : > { %v277_v13 = vld [vmem:[%s2583_s9 + $0x8] sm:$0xff]  ;;  %v279_v14 = vld [vmem:[%s2583_s9 + $0x18] sm:$0xff]  ;;  %v276_v35 = vld [vmem:[%s2583_s9] sm:$0xff]  ;;  %s1976_s8 = smul.u32 192, %s2579_s23  ;;  %p3450_p10 = scmp.ne.s32.totalorder %s3422_s30, 0 }
  0x61   : > { %555 = vmatpush1.bf16.msra.mxu0 %v2057_v3  ;;  %v325_v15 = vpack.c.bf16 %v279_v14, %v277_v13  ;;  %v2073_v17 = vld [vmem:[#allocation5 + $0x4] ss:$8 sps:$4 sm:$0xff]   ;;  %v2075_v18 = vld [vmem:[#allocation5] ss:$8 sps:$4 sm:$0xff]   ;;  %v2076_v19 = vld [vmem:[#allocation5 + $0xf4] ss:$8 sps:$4 sm:$0xff]  }
  0x62   : > { %556 = vmatprep.subr.bf16.mxu0 %v2058_v4  ;;  %v2078_v20 = vld [vmem:[#allocation5 + $0xf0] ss:$8 sps:$4 sm:$0xff]   ;;  %v2079_v21 = vld [vmem:[#allocation5 + $0xe4] ss:$8 sps:$4 sm:$0xff]   ;;  %v2081_v22 = vld [vmem:[#allocation5 + $0xe0] ss:$8 sps:$4 sm:$0xff]  }
  0x63   : > { %584 = vmatprep.mubr.bf16.mxu0 %v325_v15  ;;  %v2082_v23 = vld [vmem:[#allocation5 + $0xd4] ss:$8 sps:$4 sm:$0xff]   ;;  %v2084_v24 = vld [vmem:[#allocation5 + $0xd0] ss:$8 sps:$4 sm:$0xff]   ;;  %v2085_v25 = vld [vmem:[#allocation5 + $0xc4] ss:$8 sps:$4 sm:$0xff]  }
  0x64   : > { %v2087_v26 = vld [vmem:[#allocation5 + $0xc0] ss:$8 sps:$4 sm:$0xff]   ;;  %v2088_v27 = vld [vmem:[#allocation5 + $0xb4] ss:$8 sps:$4 sm:$0xff]   ;;  %v2090_v28 = vld [vmem:[#allocation5 + $0xb0] ss:$8 sps:$4 sm:$0xff]  }
  0x65   : > { %557 = vmatpush1.bf16.msra.mxu0 %v2060_v5  ;;  %v2091_v29 = vld [vmem:[#allocation5 + $0xa4] ss:$8 sps:$4 sm:$0xff]   ;;  %v2093_v30 = vld [vmem:[#allocation5 + $0xa0] ss:$8 sps:$4 sm:$0xff]   ;;  %v2094_v31 = vld [vmem:[#allocation5 + $0x94] ss:$8 sps:$4 sm:$0xff]  }
  0x66   : > { %558 = vmatprep.subr.bf16.mxu0 %v2061_v6  ;;  %v2096_v32 = vld [vmem:[#allocation5 + $0x90] ss:$8 sps:$4 sm:$0xff]   ;;  %v2097_v33 = vld [vmem:[#allocation5 + $0x84] ss:$8 sps:$4 sm:$0xff]   ;;  %v2099_v34 = vld [vmem:[#allocation5 + $0x80] ss:$8 sps:$4 sm:$0xff]  }
  0x67   : > { %v278_v36 = vld [vmem:[%s2583_s9 + $0x10] sm:$0xff]  ;;  %v281_v37 = vld [vmem:[%s2583_s9 + $0x28] sm:$0xff]  ;;  %v283_v38 = vld [vmem:[%s2583_s9 + $0x38] sm:$0xff]  ;;  %s3297_s14 = scalar_lea.vmem [#allocation8], %s1976_s8  ;;  %s1884_s29 = smul.u32 3072, %s2473_s22 }
  0x68   : > { %v324_v39 = vpack.c.bf16 %v278_v36, %v276_v35  ;;  %v327_v40 = vpack.c.bf16 %v283_v38, %v281_v37  ;;  %v280_v41 = vld [vmem:[%s2583_s9 + $0x20] sm:$0xff]  ;;  %v282_v42 = vld [vmem:[%s2583_s9 + $0x30] sm:$0xff]  ;;  %v285_v43 = vld [vmem:[%s2583_s9 + $0x48] sm:$0xff]  ;;  %s1728_s7 = sshll.u32 %s3297_s14, 4  ;;  %s1715_s22 = scalar_lea.sflag [#allocation4], %s2579_s23  ;;  %s3352_s7 = int_to_ptr.vmem [resolvable:$true] %s1728_s7 }
  0x69   : > { %559 = vmatpush1.bf16.msra.mxu0 %v2063_v7  ;;  %v287_v44 = vld [vmem:[%s2583_s9 + $0x58] sm:$0xff]  ;;  %v326_v45 = vpack.c.bf16 %v282_v42, %v280_v41  ;;  %v284_v47 = vld [vmem:[%s2583_s9 + $0x40] sm:$0xff]  ;;  %v286_v48 = vld [vmem:[%s2583_s9 + $0x50] sm:$0xff]  ;;  %s3349_s15 = scalar_lea.hbm %s3401_s5, %s1884_s29  ;;  %s2340_s16 = scalar_lea.vmem %s3352_s7, 3072 }
  0x6a   : > { %560 = vmatprep.subr.bf16.mxu0 %v2064_v8  ;;  %v329_v46 = vpack.c.bf16 %v287_v44, %v285_v43  ;;  %v289_v49 = vld [vmem:[%s2583_s9 + $0x68] sm:$0xff]  ;;  %v291_v50 = vld [vmem:[%s2583_s9 + $0x78] sm:$0xff]  ;;  %v328_v51 = vpack.c.bf16 %v286_v48, %v284_v47  ;;  %v288_v53 = vld [vmem:[%s2583_s9 + $0x60] sm:$0xff]  ;;  %p2341_p11 = scmp.ne.s32.totalorder %s3352_s7, %s2340_s16  ;;  %s2419_s27 = smov [#allocation8]  }
  0x6b   : > { %v331_v52 = vpack.c.bf16 %v291_v50, %v289_v49  ;;  %v290_v54 = vld [vmem:[%s2583_s9 + $0x70] sm:$0xff]  ;;  %v293_v55 = vld [vmem:[%s2583_s9 + $0x88] sm:$0xff]  ;;  %v295_v56 = vld [vmem:[%s2583_s9 + $0x98] sm:$0xff]  ;;  %s2344_s6 = sshll.u32 %s2419_s27, 4  ;;  %s2345_s6 = int_to_ptr.vmem [resolvable:$false] %s2344_s6 }
  0x6c   : > { %v330_v57 = vpack.c.bf16 %v290_v54, %v288_v53  ;;  %v333_v58 = vpack.c.bf16 %v295_v56, %v293_v55  ;;  %v292_v59 = vld [vmem:[%s2583_s9 + $0x80] sm:$0xff]  ;;  %v294_v60 = vld [vmem:[%s2583_s9 + $0x90] sm:$0xff]  ;;  %v297_v61 = vld [vmem:[%s2583_s9 + $0xa8] sm:$0xff]  ;;  %p2342_p1 = pnand %p2341_p11, %p3450_p10  ;;  %p2347_p6 = scmp.lt.s32.totalorder %s3352_s7, %s2345_s6 }
  0x6d   : > { %561 = vmatpush1.bf16.msra.mxu0 %v2066_v9  ;;  %v299_v62 = vld [vmem:[%s2583_s9 + $0xb8] sm:$0xff]  ;;  %v332_v63 = vpack.c.bf16 %v294_v60, %v292_v59  ;;  %v296_v1 = vld [vmem:[%s2583_s9 + $0xa0] sm:$0xff]  ;;  %v298_v2 = vld [vmem:[%s2583_s9 + $0xb0] sm:$0xff] }
  0x6e   : > { %562 = vmatprep.subr.bf16.mxu0 %v2067_v10  ;;  %v335_v0 = vpack.c.bf16 %v299_v62, %v297_v61  ;;  %v301_v3 = vld [vmem:[%s2583_s9 + $0xc8] sm:$0xff]  ;;  %v303_v4 = vld [vmem:[%s2583_s9 + $0xd8] sm:$0xff]  ;;  %v334_v5 = vpack.c.bf16 %v298_v2, %v296_v1  ;;  %v300_v7 = vld [vmem:[%s2583_s9 + $0xc0] sm:$0xff]  ;;  %p2343_p2 = pneg %p2342_p1 }
  0x6f   : > { %v337_v6 = vpack.c.bf16 %v303_v4, %v301_v3  ;;  %v302_v8 = vld [vmem:[%s2583_s9 + $0xd0] sm:$0xff]  ;;  %v305_v9 = vld [vmem:[%s2583_s9 + $0xe8] sm:$0xff]  ;;  %v307_v10 = vld [vmem:[%s2583_s9 + $0xf8] sm:$0xff] }
  0x70   : > { %v304_v13 = vld [vmem:[%s2583_s9 + $0xe0] sm:$0xff]  ;;  %v306_v14 = vld [vmem:[%s2583_s9 + $0xf0] sm:$0xff]  ;;  %v309_v15 = vld [vmem:[%s2583_s9 + $0x108] sm:$0xff] }
  0x71   : > { %563 = vmatpush1.bf16.msra.mxu0 %v2069_v11  ;;  %v336_v11 = vpack.c.bf16 %v302_v8, %v300_v7  ;;  %v320_v37 = vld [vmem:[%s2583_s9 + $0x160] sm:$0xff]  ;;  %v322_v38 = vld [vmem:[%s2583_s9 + $0x170] sm:$0xff] }
  0x72   : > { %564 = vmatprep.subr.bf16.mxu0 %v2070_v12  ;;  %v339_v12 = vpack.c.bf16 %v307_v10, %v305_v9  ;;  %v380_v43 = vld [vmem:[%s3398_s2] sm:$0x3] }
  0x75   : > { %565 = vmatpush1.bf16.msra.mxu0 %v2072_v16  ;;  %v311_v16 = vld [vmem:[%s2583_s9 + $0x118] sm:$0xff] }
  0x76   : > { %566 = vmatprep.subr.bf16.mxu0 %v2073_v17  ;;  %v338_v17 = vpack.c.bf16 %v306_v14, %v304_v13 }
  0x79   : > { %567 = vmatpush1.bf16.msra.mxu0 %v2075_v18  ;;  %v341_v18 = vpack.c.bf16 %v311_v16, %v309_v15 }
  0x7a   : > { %568 = vmatprep.subr.bf16.mxu0 %v2076_v19  ;;  %v308_v19 = vld [vmem:[%s2583_s9 + $0x100] sm:$0xff] }
  0x7d   : > { %569 = vmatpush2.bf16.msra.mxu0 %v2078_v20  ;;  %v310_v20 = vld [vmem:[%s2583_s9 + $0x110] sm:$0xff] }
  0x7e   : > { %570 = vmatprep.subr.bf16.mxu0 %v2079_v21  ;;  %v313_v21 = vld [vmem:[%s2583_s9 + $0x128] sm:$0xff] }
  0x81   : > { %571 = vmatpush2.bf16.msra.mxu0 %v2081_v22  ;;  %v315_v22 = vld [vmem:[%s2583_s9 + $0x138] sm:$0xff] }
  0x82   : > { %572 = vmatprep.subr.bf16.mxu0 %v2082_v23  ;;  %v340_v23 = vpack.c.bf16 %v310_v20, %v308_v19 }
  0x85   : > { %573 = vmatpush2.bf16.msra.mxu0 %v2084_v24  ;;  %v343_v24 = vpack.c.bf16 %v315_v22, %v313_v21 }
  0x86   : > { %574 = vmatprep.subr.bf16.mxu0 %v2085_v25  ;;  %v312_v25 = vld [vmem:[%s2583_s9 + $0x120] sm:$0xff] }
  0x89   : > { %575 = vmatpush2.bf16.msra.mxu0 %v2087_v26  ;;  %v314_v26 = vld [vmem:[%s2583_s9 + $0x130] sm:$0xff] }
  0x8a   : > { %576 = vmatprep.subr.bf16.mxu0 %v2088_v27  ;;  %v317_v27 = vld [vmem:[%s2583_s9 + $0x148] sm:$0xff] }
  0x8d   : > { %577 = vmatpush2.bf16.msra.mxu0 %v2090_v28  ;;  %v319_v28 = vld [vmem:[%s2583_s9 + $0x158] sm:$0xff] }
  0x8e   : > { %578 = vmatprep.subr.bf16.mxu0 %v2091_v29  ;;  %v342_v29 = vpack.c.bf16 %v314_v26, %v312_v25 }
  0x91   : > { %579 = vmatpush2.bf16.msra.mxu0 %v2093_v30  ;;  %v345_v30 = vpack.c.bf16 %v319_v28, %v317_v27 }
  0x92   : > { %580 = vmatprep.subr.bf16.mxu0 %v2094_v31  ;;  %v316_v31 = vld [vmem:[%s2583_s9 + $0x140] sm:$0xff] }
  0x95   : > { %581 = vmatpush2.bf16.msra.mxu0 %v2096_v32  ;;  %v318_v32 = vld [vmem:[%s2583_s9 + $0x150] sm:$0xff] }
  0x96   : > { %582 = vmatprep.subr.bf16.mxu0 %v2097_v33  ;;  %v321_v33 = vld [vmem:[%s2583_s9 + $0x168] sm:$0xff]  ;;  %v344_v35 = vpack.c.bf16 %v318_v32, %v316_v31 }
  0x99   : > { %583 = vmatpush2.bf16.msra.mxu0 %v2099_v34  ;;  %v323_v34 = vld [vmem:[%s2583_s9 + $0x178] sm:$0xff]  ;;  %s2346_s9 = scalar_lea.vmem %s2345_s6, 6144 }
  0x9a   : > { %v347_v36 = vpack.c.bf16 %v323_v34, %v321_v33  ;;  %p2348_p12 = scmp.lt.s32.totalorder %s2346_s9, %s2340_s16 }
  0x9c   : > { %585 = vmatmul.mubr.bf16.vlgmr.msra.gmra.mxu0 %v324_v39  ;;  %v346_v39 = vpack.c.bf16 %v322_v38, %v320_v37  ;;  %p2349_p3 = por %p2348_p12, %p2347_p6 }
  0x9d   : > { %594 = vmatprep.mubr.bf16.mxu0 %v327_v40  ;;  %v382_v40 = vlaneseq }
  0x9e   : > { %p2350_p9 = pnand %p2349_p3, %p2343_p2 }
  0x9f   : > { %v383_v41 = vshrl.u32 %v382_v40, 7 }
  0xa1   : > { %v384_v42 = vsub.s32 0, %v383_v41  ;;  %v388_v44 = vsub.s32 1, %v383_v41 }
  0xa4   : > { %595 = vmatmul.mubr.bf16.gmra.mxu0 %v326_v45  ;;  %v2644_v45 = vrot.slane %v380_v43, %v384_v42 }
  0xa5   : > { %604 = vmatprep.mubr.bf16.mxu0 %v329_v46  ;;  %v2646_v46 = vrot.slane %v380_v43, %v388_v44 }
  0xac   : > { %605 = vmatmul.mubr.bf16.gmra.mxu0 %v328_v51 }
  0xad   : > { %614 = vmatprep.mubr.bf16.mxu0 %v331_v52 }
  0xb4   : > { %615 = vmatmul.mubr.bf16.gmra.mxu0 %v330_v57 }
  0xb5   : > { %624 = vmatprep.mubr.bf16.mxu0 %v333_v58 }
  0xbc   : > { %625 = vmatmul.mubr.bf16.gmra.mxu0 %v332_v63 }
  0xbd   : > { %634 = vmatprep.mubr.bf16.mxu0 %v335_v0 }
  0xc4   : > { %635 = vmatmul.mubr.bf16.gmra.mxu0 %v334_v5 }
  0xc5   : > { %644 = vmatprep.mubr.bf16.mxu0 %v337_v6 }
  0xcc   : > { %645 = vmatmul.mubr.bf16.gmra.mxu0 %v336_v11 }
  0xcd   : > { %654 = vmatprep.mubr.bf16.mxu0 %v339_v12 }
  0xd4   : > { %655 = vmatmul.mubr.bf16.gmra.mxu0 %v338_v17 }
  0xd5   : > { %664 = vmatprep.mubr.bf16.mxu0 %v341_v18 }
  0xdc   : > { %665 = vmatmul.mubr.bf16.gmra.mxu0 %v340_v23 }
  0xdd   : > { %674 = vmatprep.mubr.bf16.mxu0 %v343_v24 }
  0xe4   : > { %675 = vmatmul.mubr.bf16.gmra.mxu0 %v342_v29 }
  0xe5   : > { %684 = vmatprep.mubr.bf16.mxu0 %v345_v30 }
  0xec   : > { %685 = vmatmul.mubr.bf16.gmra.mxu0 %v344_v35 }
  0xed   : > { %694 = vmatprep.mubr.bf16.mxu0 %v347_v36 }
  0xf4   : > { %695 = vmatmul.mubr.bf16.gmra.mxu0 %v346_v39 }
 0x15c   : > { %v586_v47 = vpop.f32.mrf.mxu0 }
 0x15d   : > { %v587_v48 = vadd.f32 %v586_v47, %v2644_v45 }
 0x15e   : > { %v588_v49 = vpop.f32.mrf.mxu0 }
 0x15f   : > { %v753_v50 = vmul.f32 0.70710677, %v587_v48  ;;  %v589_v51 = vadd.f32 %v588_v49, %v2646_v46  ;;  %v705_v14 = vmul.f32 0.5, %v587_v48 }
 0x160   : > { %v590_v52 = vpop.f32.mrf.mxu0 }
 0x161   : > { %2116 = verf.f32 %v753_v50  ;;  %v754_v53 = vmul.f32 0.70710677, %v589_v51  ;;  %v591_v54 = vadd.f32 %v590_v52, %v2644_v45  ;;  %v706_v20 = vmul.f32 0.5, %v589_v51 }
 0x162   : > { %v592_v55 = vpop.f32.mrf.mxu0 }
 0x163   : > { %2118 = verf.f32 %v754_v53  ;;  %v755_v56 = vmul.f32 0.70710677, %v591_v54  ;;  %v593_v57 = vadd.f32 %v592_v55, %v2646_v46  ;;  %v707_v27 = vmul.f32 0.5, %v591_v54 }
 0x164   : > { %v596_v58 = vpop.f32.mrf.mxu0 }
 0x165   : > { %2120 = verf.f32 %v755_v56  ;;  %v756_v59 = vmul.f32 0.70710677, %v593_v57  ;;  %v597_v60 = vadd.f32 %v596_v58, %v2644_v45  ;;  %v708_v28 = vmul.f32 0.5, %v593_v57 }
 0x166   : > { %v598_v61 = vpop.f32.mrf.mxu0 }
 0x167   : > { %2122 = verf.f32 %v756_v59  ;;  %v757_v62 = vmul.f32 0.70710677, %v597_v60  ;;  %v599_v63 = vadd.f32 %v598_v61, %v2646_v46  ;;  %v709_v47 = vmul.f32 0.5, %v597_v60 }
 0x168   : > { %v600_v0 = vpop.f32.mrf.mxu0 }
 0x169   : > { %2124 = verf.f32 %v757_v62  ;;  %v758_v1 = vmul.f32 0.70710677, %v599_v63  ;;  %v2655_v2 = vadd.f32 %v600_v0, %v2644_v45  ;;  %v710_v51 = vmul.f32 0.5, %v599_v63 }
 0x16a   : > { %v602_v3 = vpop.f32.mrf.mxu0 }
 0x16b   : > { %2126 = verf.f32 %v758_v1  ;;  %v759_v4 = vmul.f32 0.70710677, %v2655_v2  ;;  %v2659_v5 = vadd.f32 %v602_v3, %v2646_v46 }
 0x16c   : > { %v606_v6 = vpop.f32.mrf.mxu0 }
 0x16d   : > { %2128 = verf.f32 %v759_v4  ;;  %v760_v7 = vmul.f32 0.70710677, %v2659_v5  ;;  %v2663_v8 = vadd.f32 %v606_v6, %v2644_v45  ;;  %v712_v6 = vmul.f32 0.5, %v2659_v5 }
 0x16e   : > { %v2117_v9 = vpop.eup %2116  ;;  %v608_v10 = vpop.f32.mrf.mxu0 }
 0x16f   : > { %2130 = verf.f32 %v760_v7  ;;  %v761_v11 = vmul.f32 0.70710677, %v2663_v8  ;;  %v2667_v12 = vadd.f32 %v608_v10, %v2646_v46  ;;  %v849_v16 = vadd.f32 1.0, %v2117_v9 }
 0x170   : > { %v2119_v13 = vpop.eup %2118  ;;  %v610_v15 = vpop.f32.mrf.mxu0  ;;  %v713_v5 = vmul.f32 0.5, %v2663_v8 }
 0x171   : > { %2132 = verf.f32 %v761_v11  ;;  %v762_v17 = vmul.f32 0.70710677, %v2667_v12  ;;  %v2671_v18 = vadd.f32 %v610_v15, %v2644_v45  ;;  %v850_v22 = vadd.f32 1.0, %v2119_v13 }
 0x172   : > { %v2121_v19 = vpop.eup %2120  ;;  %v612_v21 = vpop.f32.mrf.mxu0  ;;  %v2673_v23 = vmul.f32 %v849_v16, %v705_v14  ;;  %v711_v11 = vmul.f32 0.5, %v2655_v2 }
 0x173   : > { %v851_v24 = vadd.f32 1.0, %v2121_v19  ;;  %2134 = verf.f32 %v762_v17  ;;  %v763_v25 = vmul.f32 0.70710677, %v2671_v18  ;;  %v2677_v29 = vadd.f32 %v612_v21, %v2646_v46 }
 0x174   : > { %v2123_v26 = vpop.eup %2122  ;;  %v616_v30 = vpop.f32.mrf.mxu0  ;;  %v2679_v31 = vmul.f32 %v850_v22, %v706_v20  ;;  %v1042_v34 = vmul.f32 %v2673_v23, %v2673_v23 }
 0x175   : > { %v852_v32 = vadd.f32 1.0, %v2123_v26  ;;  %2136 = verf.f32 %v763_v25  ;;  %v2682_v33 = vadd.f32 %v616_v30, %v2644_v45  ;;  %v2686_v36 = vmul.f32 %v851_v24, %v707_v27 }
 0x176   : > { %v2125_v35 = vpop.eup %2124  ;;  %v764_v37 = vmul.f32 0.70710677, %v2677_v29  ;;  %v618_v38 = vpop.f32.mrf.mxu0  ;;  %v945_v39 = vadd.f32 %v2679_v31, %v2673_v23  ;;  %v1043_v40 = vmul.f32 %v2679_v31, %v2679_v31  ;;  %v714_v26 = vmul.f32 0.5, %v2667_v12 }
 0x177   : > { %v2693_v41 = vmul.f32 %v852_v32, %v708_v28  ;;  %v853_v42 = vadd.f32 1.0, %v2125_v35  ;;  %v765_v43 = vmul.f32 0.70710677, %v2682_v33  ;;  %v2697_v48 = vadd.f32 %v618_v38, %v2646_v46 }
 0x178   : > { %v2127_v44 = vpop.eup %2126  ;;  %2138 = verf.f32 %v764_v37  ;;  %946 = vadd.xlane.f32.xlu0 %v945_v39  ;;  %v620_v49 = vpop.f32.mrf.mxu0  ;;  %v1090_v50 = vadd.f32 %v1043_v40, %v1042_v34  ;;  %v1044_v58 = vmul.f32 %v2686_v36, %v2686_v36 }
 0x179   : > { %v854_v52 = vadd.f32 1.0, %v2127_v44  ;;  %2140 = verf.f32 %v765_v43  ;;  %v2700_v53 = vadd.f32 %v620_v49, %v2644_v45  ;;  %v766_v55 = vmul.f32 0.70710677, %v2697_v48  ;;  %v2100_v49 = vld [vmem:[#allocation7 + $0x78] sm:$0xff]  }
 0x17a   : > { %v2129_v54 = vpop.eup %2128  ;;  %1091 = vadd.xlane.f32.xlu1 %v1090_v50  ;;  %v622_v56 = vpop.f32.mrf.mxu0  ;;  %v948_v57 = vadd.f32 %v2693_v41, %v2686_v36  ;;  %v1045_v59 = vmul.f32 %v2693_v41, %v2693_v41  ;;  %v2709_v60 = vmul.f32 %v853_v42, %v709_v47  ;;  %v715_v42 = vmul.f32 0.5, %v2671_v18  ;;  %1886 = vmatprep.subr.bf16.mxu1 %v2100_v49 }
 0x17b   : > { %v2711_v61 = vmul.f32 %v854_v52, %v710_v51  ;;  %v767_v62 = vmul.f32 0.70710677, %v2700_v53  ;;  %v855_v0 = vadd.f32 1.0, %v2129_v54  ;;  %2142 = verf.f32 %v766_v55 }
 0x17c   : > { %v2131_v63 = vpop.eup %2130  ;;  %v2715_v1 = vadd.f32 %v622_v56, %v2646_v46  ;;  %949 = vadd.xlane.f32.xlu0 %v948_v57  ;;  %v626_v3 = vpop.f32.mrf.mxu0  ;;  %v1093_v4 = vadd.f32 %v1045_v59, %v1044_v58  ;;  %v1046_v25 = vmul.f32 %v2709_v60, %v2709_v60  ;;  %v716_v51 = vmul.f32 0.5, %v2677_v29 }
 0x17d   : > { %v856_v7 = vadd.f32 1.0, %v2131_v63  ;;  %2144 = verf.f32 %v767_v62  ;;  %v2719_v9 = vadd.f32 %v626_v3, %v2644_v45  ;;  %v951_v15 = vadd.f32 %v2711_v61, %v2709_v60  ;;  %v2101_v62 = vld [vmem:[#allocation7 + $0x38] sm:$0xff]  }
 0x17e   : > { %v2133_v10 = vpop.eup %2132  ;;  %v768_v13 = vmul.f32 0.70710677, %v2715_v1  ;;  %1094 = vadd.xlane.f32.xlu1 %v1093_v4  ;;  %v628_v14 = vpop.f32.mrf.mxu0  ;;  %v1047_v16 = vmul.f32 %v2711_v61, %v2711_v61  ;;  %v2731_v22 = vmul.f32 %v855_v0, %v711_v11  ;;  %1887 = vmatpush3.bf16.msra.mxu1 %v2101_v62 }
 0x17f   : > { %v2727_v17 = vmul.f32 %v856_v7, %v712_v6  ;;  %v857_v19 = vadd.f32 1.0, %v2133_v10  ;;  %v769_v20 = vmul.f32 0.70710677, %v2719_v9  ;;  %v2734_v2 = vadd.f32 %v628_v14, %v2646_v46 }
 0x180   : > { %v2135_v21 = vpop.eup %2134  ;;  %2146 = verf.f32 %v768_v13  ;;  %952 = vadd.xlane.f32.xlu0 %v951_v15  ;;  %v630_v24 = vpop.f32.mrf.mxu0  ;;  %v1096_v35 = vadd.f32 %v1047_v16, %v1046_v25  ;;  %v1048_v47 = vmul.f32 %v2731_v22, %v2731_v22  ;;  %v717_v6 = vmul.f32 0.5, %v2682_v33  ;;  %v2102_v16 = vld [vmem:[#allocation7 + $0x70] sm:$0xff]  }
 0x181   : > { %v858_v27 = vadd.f32 1.0, %v2135_v21  ;;  %2148 = verf.f32 %v769_v20  ;;  %v2740_v8 = vadd.f32 %v630_v24, %v2644_v45  ;;  %v770_v30 = vmul.f32 0.70710677, %v2734_v2  ;;  %v2103_v25 = vld [vmem:[#allocation7 + $0x30] sm:$0xff]   ;;  %1888 = vmatprep.subr.bf16.mxu1 %v2102_v16 }
 0x182   : > { %v2137_v28 = vpop.eup %2136  ;;  %v632_v32 = vpop.f32.mrf.mxu0  ;;  %v954_v34 = vadd.f32 %v2727_v17, %v2731_v22  ;;  %v1049_v37 = vmul.f32 %v2727_v17, %v2727_v17  ;;  %v2747_v38 = vmul.f32 %v857_v19, %v713_v5  ;;  %v718_v13 = vmul.f32 0.5, %v2697_v48  ;;  %1889 = vmatpush3.bf16.msra.mxu1 %v2103_v25 }
 0x183   : > { %v2749_v39 = vmul.f32 %v858_v27, %v714_v26  ;;  %v859_v12 = vadd.f32 1.0, %v2137_v28  ;;  %v771_v40 = vmul.f32 0.70710677, %v2740_v8  ;;  %2150 = verf.f32 %v770_v30 }
 0x184   : > { %v2754_v43 = vadd.f32 %v632_v32, %v2646_v46  ;;  %955 = vadd.xlane.f32.xlu1 %v954_v34  ;;  %1097 = vadd.xlane.f32.xlu0 %v1096_v35  ;;  %v636_v44 = vpop.f32.mrf.mxu0  ;;  %v1099_v58 = vadd.f32 %v1049_v37, %v1048_v47  ;;  %v1050_v3 = vmul.f32 %v2747_v38, %v2747_v38  ;;  %v719_v32 = vmul.f32 0.5, %v2700_v53  ;;  %v2104_v47 = vld [vmem:[#allocation7 + $0x68] sm:$0xff]  }
 0x185   : > { %v2139_v50 = vpop.eup %2138  ;;  %2152 = verf.f32 %v771_v40  ;;  %v2760_v52 = vadd.f32 %v636_v44, %v2644_v45  ;;  %v957_v18 = vadd.f32 %v2749_v39, %v2747_v38  ;;  %v1051_v59 = vmul.f32 %v2749_v39, %v2749_v39  ;;  %1890 = vmatprep.subr.bf16.mxu1 %v2104_v47 }
 0x186   : > { %v2141_v54 = vpop.eup %2140  ;;  %v860_v55 = vadd.f32 1.0, %v2139_v50  ;;  %v772_v56 = vmul.f32 0.70710677, %v2754_v43  ;;  %v638_v57 = vpop.f32.mrf.mxu0  ;;  %v2767_v63 = vmul.f32 %v859_v12, %v715_v42  ;;  %v720_v12 = vmul.f32 0.5, %v2715_v1 }
 0x187   : > { %v773_v29 = vmul.f32 0.70710677, %v2760_v52  ;;  %v2771_v0 = vadd.f32 %v638_v57, %v2646_v46  ;;  %v861_v7 = vadd.f32 1.0, %v2141_v54  ;;  %v1102_v15 = vadd.f32 %v1051_v59, %v1050_v3  ;;  %v2105_v54 = vld [vmem:[#allocation7 + $0x28] sm:$0xff]  }
 0x188   : > { %v2775_v4 = vmul.f32 %v860_v55, %v716_v51  ;;  %2154 = verf.f32 %v772_v56  ;;  %1100 = vadd.xlane.f32.xlu1 %v1099_v58  ;;  %958 = vadd.xlane.f32.xlu0 %v957_v18  ;;  %v640_v10 = vpop.f32.mrf.mxu0  ;;  %v2143_v11 = vpop.eup %2142  ;;  %v1052_v27 = vmul.f32 %v2767_v63, %v2767_v63  ;;  %v721_v58 = vmul.f32 0.5, %v2719_v9  ;;  %v2106_v9 = vld [vmem:[#allocation7 + $0x60] sm:$0xff]  }
 0x189   : > { %2156 = verf.f32 %v773_v29  ;;  %v774_v14 = vmul.f32 0.70710677, %v2771_v0  ;;  %v862_v19 = vadd.f32 1.0, %v2143_v11  ;;  %v2781_v20 = vadd.f32 %v640_v10, %v2644_v45  ;;  %1891 = vmatpush3.bf16.msra.mxu1 %v2105_v54 }
 0x18a   : > { %v2145_v5 = vpop.eup %2144  ;;  %v642_v33 = vpop.f32.mrf.mxu0  ;;  %v960_v21 = vadd.f32 %v2775_v4, %v2767_v63  ;;  %v1053_v24 = vmul.f32 %v2775_v4, %v2775_v4  ;;  %v2792_v28 = vmul.f32 %v861_v7, %v717_v6  ;;  %v722_v6 = vmul.f32 0.5, %v2734_v2  ;;  %1892 = vmatprep.subr.bf16.mxu1 %v2106_v9 }
 0x18b   : > { %v863_v48 = vadd.f32 1.0, %v2145_v5  ;;  %2158 = verf.f32 %v774_v14  ;;  %v2788_v26 = vadd.f32 %v642_v33, %v2646_v46  ;;  %v2794_v30 = vmul.f32 %v862_v19, %v718_v13  ;;  %v2107_v19 = vld [vmem:[#allocation7 + $0x20] sm:$0xff]  }
 0x18c   : > { %v775_v34 = vmul.f32 0.70710677, %v2781_v20  ;;  %961 = vadd.xlane.f32.xlu1 %v960_v21  ;;  %1103 = vadd.xlane.f32.xlu0 %v1102_v15  ;;  %v646_v35 = vpop.f32.mrf.mxu0  ;;  %v1105_v44 = vadd.f32 %v1053_v24, %v1052_v27  ;;  %v1054_v29 = vmul.f32 %v2792_v28, %v2792_v28  ;;  %v723_v7 = vmul.f32 0.5, %v2740_v8 }
 0x18d   : > { %v2147_v37 = vpop.eup %2146  ;;  %v776_v40 = vmul.f32 0.70710677, %v2788_v26  ;;  %v2801_v42 = vadd.f32 %v646_v35, %v2644_v45  ;;  %v963_v51 = vadd.f32 %v2794_v30, %v2792_v28  ;;  %v1055_v18 = vmul.f32 %v2794_v30, %v2794_v30  ;;  %1893 = vmatpush3.bf16.msra.mxu1 %v2107_v19 }
 0x18e   : > { %v2149_v49 = vpop.eup %2148  ;;  %v864_v50 = vadd.f32 1.0, %v2147_v37  ;;  %2160 = verf.f32 %v775_v34  ;;  %v648_v53 = vpop.f32.mrf.mxu0  ;;  %v2807_v1 = vmul.f32 %v863_v48, %v719_v32  ;;  %v724_v34 = vmul.f32 0.5, %v2754_v43 }
 0x18f   : > { %v865_v55 = vadd.f32 1.0, %v2149_v49  ;;  %2162 = verf.f32 %v776_v40  ;;  %v777_v56 = vmul.f32 0.70710677, %v2801_v42  ;;  %v2814_v59 = vadd.f32 %v648_v53, %v2646_v46 }
 0x190   : > { %v2810_v57 = vmul.f32 %v864_v50, %v720_v12  ;;  %1106 = vadd.xlane.f32.xlu1 %v1105_v44  ;;  %964 = vadd.xlane.f32.xlu0 %v963_v51  ;;  %v650_v62 = vpop.f32.mrf.mxu0  ;;  %v2151_v3 = vpop.eup %2150  ;;  %v1108_v5 = vadd.f32 %v1055_v18, %v1054_v29  ;;  %v1056_v21 = vmul.f32 %v2807_v1, %v2807_v1  ;;  %v725_v35 = vmul.f32 0.5, %v2760_v52  ;;  %v2108_v12 = vld [vmem:[#allocation7 + $0x58] sm:$0xff]  }
 0x191   : > { %2164 = verf.f32 %v777_v56  ;;  %v2821_v10 = vadd.f32 %v650_v62, %v2644_v45  ;;  %v866_v13 = vadd.f32 1.0, %v2151_v3  ;;  %v778_v14 = vmul.f32 0.70710677, %v2814_v59  ;;  %v2109_v51 = vld [vmem:[#allocation7 + $0x18] sm:$0xff]   ;;  %1894 = vmatprep.subr.bf16.mxu1 %v2108_v12 }
 0x192   : > { %v2153_v11 = vpop.eup %2152  ;;  %v652_v15 = vpop.f32.mrf.mxu0  ;;  %v966_v16 = vadd.f32 %v2810_v57, %v2807_v1  ;;  %v2826_v33 = vmul.f32 %v865_v55, %v721_v58  ;;  %v1057_v27 = vmul.f32 %v2810_v57, %v2810_v57  ;;  %v726_v3 = vmul.f32 0.5, %v2771_v0  ;;  %1895 = vmatpush3.bf16.msra.mxu1 %v2109_v51 }
 0x193   : > { %v779_v2 = vmul.f32 0.70710677, %v2821_v10  ;;  %v2830_v8 = vadd.f32 %v652_v15, %v2646_v46  ;;  %v2834_v24 = vmul.f32 %v866_v13, %v722_v6  ;;  %v867_v25 = vadd.f32 1.0, %v2153_v11  ;;  %v2110_v13 = vld [vmem:[#allocation7 + $0x50] sm:$0xff]  }
 0x194   : > { %2166 = verf.f32 %v778_v14  ;;  %967 = vadd.xlane.f32.xlu1 %v966_v16  ;;  %1109 = vadd.xlane.f32.xlu0 %v1108_v5  ;;  %v656_v48 = vpop.f32.mrf.mxu0  ;;  %v1111_v50 = vadd.f32 %v1057_v27, %v1056_v21  ;;  %v1058_v52 = vmul.f32 %v2826_v33, %v2826_v33  ;;  %v727_v9 = vmul.f32 0.5, %v2781_v20  ;;  %v2111_v5 = vld [vmem:[#allocation7 + $0x10] sm:$0xff]  }
 0x195   : > { %v2155_v32 = vpop.eup %2154  ;;  %2168 = verf.f32 %v779_v2  ;;  %v780_v37 = vmul.f32 0.70710677, %v2830_v8  ;;  %v2842_v47 = vadd.f32 %v656_v48, %v2644_v45  ;;  %v969_v53 = vadd.f32 %v2834_v24, %v2826_v33  ;;  %1896 = vmatprep.subr.bf16.mxu1 %v2110_v13 }
 0x196   : > { %v2157_v40 = vpop.eup %2156  ;;  %v868_v44 = vadd.f32 1.0, %v2155_v32  ;;  %v658_v49 = vpop.f32.mrf.mxu0  ;;  %v1059_v18 = vmul.f32 %v2834_v24, %v2834_v24  ;;  %v2853_v55 = vmul.f32 %v867_v25, %v723_v7  ;;  %1897 = vmatpush3.bf16.msra.mxu1 %v2111_v5 }
 0x197   : > { %2170 = verf.f32 %v780_v37  ;;  %v2847_v43 = vadd.f32 %v658_v49, %v2646_v46  ;;  %v869_v58 = vadd.f32 1.0, %v2157_v40  ;;  %v781_v62 = vmul.f32 0.70710677, %v2842_v47 }
 0x198   : > { %v2159_v54 = vpop.eup %2158  ;;  %v2855_v56 = vmul.f32 %v868_v44, %v724_v34  ;;  %1112 = vadd.xlane.f32.xlu1 %v1111_v50  ;;  %970 = vadd.xlane.f32.xlu0 %v969_v53  ;;  %v660_v29 = vpop.f32.mrf.mxu0  ;;  %v1114_v16 = vadd.f32 %v1059_v18, %v1058_v52  ;;  %v1060_v34 = vmul.f32 %v2853_v55, %v2853_v55  ;;  %v728_v37 = vmul.f32 0.5, %v2788_v26  ;;  %v2113_v18 = vld [vmem:[#allocation7 + $0x8] sm:$0xff]  }
 0x199   : > { %v870_v6 = vadd.f32 1.0, %v2159_v54  ;;  %v782_v11 = vmul.f32 0.70710677, %v2847_v43  ;;  %2172 = verf.f32 %v781_v62  ;;  %v2862_v7 = vadd.f32 %v660_v29, %v2644_v45 }
 0x19a   : > { %v662_v14 = vpop.f32.mrf.mxu0  ;;  %v972_v15 = vadd.f32 %v2855_v56, %v2853_v55  ;;  %v1061_v20 = vmul.f32 %v2855_v56, %v2855_v56  ;;  %v2873_v25 = vmul.f32 %v869_v58, %v725_v35  ;;  %v2112_v35 = vld [vmem:[#allocation7 + $0x48] sm:$0xff]   ;;  %v729_v50 = vmul.f32 0.5, %v2801_v42 }
 0x19b   : > { %v2161_v19 = vpop.eup %2160  ;;  %v2866_v2 = vmul.f32 %v870_v6, %v726_v3  ;;  %2174 = verf.f32 %v782_v11  ;;  %v2869_v0 = vadd.f32 %v662_v14, %v2646_v46  ;;  %v783_v27 = vmul.f32 0.70710677, %v2862_v7  ;;  %1898 = vmatprep.subr.bf16.mxu1 %v2112_v35 }
 0x19c   : > { %v2163_v21 = vpop.eup %2162  ;;  %v871_v48 = vadd.f32 1.0, %v2161_v19  ;;  %973 = vadd.xlane.f32.xlu1 %v972_v15  ;;  %1115 = vadd.xlane.f32.xlu0 %v1114_v16  ;;  %v666_v32 = vpop.f32.mrf.mxu0  ;;  %v1117_v51 = vadd.f32 %v1061_v20, %v1060_v34  ;;  %v730_v58 = vmul.f32 0.5, %v2814_v59  ;;  %v731_v11 = vmul.f32 0.5, %v2821_v10  ;;  %v2114_v15 = vld [vmem:[#allocation7 + $0x40] sm:$0xff]  }
 0x19d   : > { %v872_v12 = vadd.f32 1.0, %v2163_v21  ;;  %v784_v40 = vmul.f32 0.70710677, %v2869_v0  ;;  %v2881_v44 = vadd.f32 %v666_v32, %v2644_v45  ;;  %2176 = verf.f32 %v783_v27  ;;  %1899 = vmatpush3.bf16.msra.mxu1 %v2113_v18  ;;  %v2115_v21 = vld [vmem:[#allocation7] sm:$0xff]  }
 0x19e   : > { %v2165_v49 = vpop.eup %2164  ;;  %v668_v53 = vpop.f32.mrf.mxu0  ;;  %v975_v52 = vadd.f32 %v2866_v2, %v2873_v25  ;;  %v2886_v54 = vmul.f32 %v871_v48, %v727_v9  ;;  %v1063_v6 = vmul.f32 %v2866_v2, %v2866_v2  ;;  %v1062_v10 = vmul.f32 %v2873_v25, %v2873_v25  ;;  %1900 = vmatprep.subr.bf16.mxu1 %v2114_v15 }
 0x19f   : > { %v2888_v26 = vmul.f32 %v872_v12, %v728_v37  ;;  %2178 = verf.f32 %v784_v40  ;;  %v873_v62 = vadd.f32 1.0, %v2165_v49  ;;  %v785_v29 = vmul.f32 0.70710677, %v2881_v44 }
 0x1a0   : > { %v2893_v42 = vadd.f32 %v668_v53, %v2646_v46  ;;  %1118 = vadd.xlane.f32.xlu1 %v1117_v51  ;;  %976 = vadd.xlane.f32.xlu0 %v975_v52  ;;  %v670_v3 = vpop.f32.mrf.mxu0  ;;  %v1064_v34 = vmul.f32 %v2886_v54, %v2886_v54  ;;  %v1120_v35 = vadd.f32 %v1063_v6, %v1062_v10  ;;  %v732_v53 = vmul.f32 0.5, %v2830_v8 }
 0x1a1   : > { %v2167_v9 = vpop.eup %2166  ;;  %v2899_v13 = vadd.f32 %v670_v3, %v2644_v45  ;;  %v978_v59 = vadd.f32 %v2888_v26, %v2886_v54  ;;  %v1065_v14 = vmul.f32 %v2888_v26, %v2888_v26  ;;  %2180 = verf.f32 %v785_v29  ;;  %1901 = vmatpush3.bf16.msra.mxu1 %v2115_v21 }
 0x1a2   : > { %v2169_v16 = vpop.eup %2168  ;;  %v874_v5 = vadd.f32 1.0, %v2167_v9  ;;  %v786_v19 = vmul.f32 0.70710677, %v2893_v42  ;;  %v672_v20 = vpop.f32.mrf.mxu0  ;;  %v2914_v12 = vmul.f32 %v873_v62, %v729_v50  ;;  %v733_v8 = vmul.f32 0.5, %v2842_v47 }
 0x1a3   : > { %v875_v48 = vadd.f32 1.0, %v2169_v16  ;;  %v787_v27 = vmul.f32 0.70710677, %v2899_v13  ;;  %v2910_v32 = vadd.f32 %v672_v20, %v2646_v46  ;;  %v1123_v52 = vadd.f32 %v1065_v14, %v1064_v34 }
 0x1a4   : > { %v2171_v37 = vpop.eup %2170  ;;  %v2916_v40 = vmul.f32 %v874_v5, %v730_v58  ;;  %2182 = verf.f32 %v786_v19  ;;  %979 = vadd.xlane.f32.xlu1 %v978_v59  ;;  %v676_v49 = vpop.f32.mrf.mxu0  ;;  %1121 = vadd.xlane.f32.xlu0 %v1120_v35  ;;  %v734_v9 = vmul.f32 0.5, %v2847_v43  ;;  %v735_v20 = vmul.f32 0.5, %v2862_v7 }
 0x1a5   : > { %v876_v51 = vadd.f32 1.0, %v2171_v37  ;;  %2184 = verf.f32 %v787_v27  ;;  %v2919_v18 = vmul.f32 %v875_v48, %v731_v11  ;;  %v788_v29 = vmul.f32 0.70710677, %v2910_v32 }
 0x1a6   : > { %v2923_v50 = vadd.f32 %v676_v49, %v2644_v45  ;;  %v678_v58 = vpop.f32.mrf.mxu0  ;;  %v981_v62 = vadd.f32 %v2916_v40, %v2914_v12  ;;  %v2173_v3 = vpop.eup %2172  ;;  %v1067_v5 = vmul.f32 %v2916_v40, %v2916_v40  ;;  %v1066_v48 = vmul.f32 %v2914_v12, %v2914_v12 }
 0x1a7   : > { %v2927_v6 = vmul.f32 %v876_v51, %v732_v53  ;;  %v2932_v11 = vadd.f32 %v678_v58, %v2646_v46  ;;  %v877_v14 = vadd.f32 1.0, %v2173_v3  ;;  %2186 = verf.f32 %v788_v29 }
 0x1a8   : > { %v2175_v59 = vpop.eup %2174  ;;  %v789_v15 = vmul.f32 0.70710677, %v2923_v50  ;;  %1124 = vadd.xlane.f32.xlu1 %v1123_v52  ;;  %v680_v16 = vpop.f32.mrf.mxu0  ;;  %982 = vadd.xlane.f32.xlu0 %v981_v62  ;;  %v1068_v27 = vmul.f32 %v2919_v18, %v2919_v18  ;;  %v1126_v52 = vadd.f32 %v1067_v5, %v1066_v48  ;;  %v736_v62 = vmul.f32 0.5, %v2869_v0 }
 0x1a9   : > { %v878_v19 = vadd.f32 1.0, %v2175_v59  ;;  %v790_v47 = vmul.f32 0.70710677, %v2932_v11  ;;  %v2940_v43 = vadd.f32 %v680_v16, %v2644_v45  ;;  %v984_v21 = vadd.f32 %v2927_v6, %v2919_v18 }
 0x1aa   : > { %2188 = verf.f32 %v789_v15  ;;  %v682_v10 = vpop.f32.mrf.mxu0  ;;  %v2177_v34 = vpop.eup %2176  ;;  %v2948_v37 = vmul.f32 %v877_v14, %v733_v8  ;;  %v1069_v58 = vmul.f32 %v2927_v6, %v2927_v6 }
 0x1ab   : > { %v2950_v7 = vmul.f32 %v878_v19, %v734_v9  ;;  %2190 = verf.f32 %v790_v47  ;;  %v791_v35 = vmul.f32 0.70710677, %v2940_v43  ;;  %v879_v53 = vadd.f32 1.0, %v2177_v34 }
 0x1ac   : > { %v2179_v49 = vpop.eup %2178  ;;  %v2954_v51 = vadd.f32 %v682_v10, %v2646_v46  ;;  %985 = vadd.xlane.f32.xlu1 %v984_v21  ;;  %v686_v29 = vpop.f32.mrf.mxu0  ;;  %v737_v9 = vmul.f32 0.5, %v2881_v44  ;;  %1127 = vadd.xlane.f32.xlu0 %v1126_v52  ;;  %v1129_v15 = vadd.f32 %v1069_v58, %v1068_v27  ;;  %v738_v44 = vmul.f32 0.5, %v2893_v42 }
 0x1ad   : > { %v880_v3 = vadd.f32 1.0, %v2179_v49  ;;  %2192 = verf.f32 %v791_v35  ;;  %v2960_v8 = vadd.f32 %v686_v29, %v2644_v45  ;;  %v987_v16 = vadd.f32 %v2950_v7, %v2948_v37 }
 0x1ae   : > { %v792_v59 = vmul.f32 0.70710677, %v2954_v51  ;;  %v688_v14 = vpop.f32.mrf.mxu0  ;;  %v2181_v5 = vpop.eup %2180  ;;  %v2966_v19 = vmul.f32 %v879_v53, %v735_v20  ;;  %v739_v21 = vmul.f32 0.5, %v2899_v13  ;;  %v1071_v27 = vmul.f32 %v2950_v7, %v2950_v7 }
 0x1af   : > { %v2968_v47 = vmul.f32 %v880_v3, %v736_v62  ;;  %v793_v0 = vmul.f32 0.70710677, %v2960_v8  ;;  %v2972_v10 = vadd.f32 %v688_v14, %v2646_v46  ;;  %v881_v20 = vadd.f32 1.0, %v2181_v5 }
 0x1b0   : > { %2194 = verf.f32 %v792_v59  ;;  %1130 = vadd.xlane.f32.xlu1 %v1129_v15  ;;  %v690_v48 = vpop.f32.mrf.mxu0  ;;  %v740_v42 = vmul.f32 0.5, %v2910_v32  ;;  %988 = vadd.xlane.f32.xlu0 %v987_v16  ;;  %v1070_v58 = vmul.f32 %v2948_v37, %v2948_v37  ;;  %v1072_v59 = vmul.f32 %v2966_v19, %v2966_v19 }
 0x1b1   : > { %v2183_v34 = vpop.eup %2182  ;;  %2196 = verf.f32 %v793_v0  ;;  %v794_v35 = vmul.f32 0.70710677, %v2972_v10  ;;  %v2980_v49 = vadd.f32 %v690_v48, %v2644_v45  ;;  %v990_v29 = vadd.f32 %v2968_v47, %v2966_v19 }
 0x1b2   : > { %v2185_v53 = vpop.eup %2184  ;;  %v882_v52 = vadd.f32 1.0, %v2183_v34  ;;  %v692_v13 = vpop.f32.mrf.mxu0  ;;  %v1132_v32 = vadd.f32 %v1071_v27, %v1070_v58  ;;  %v1073_v5 = vmul.f32 %v2968_v47, %v2968_v47  ;;  %v2997_v48 = vmul.f32 %v881_v20, %v737_v9 }
 0x1b3   : > { %v883_v62 = vadd.f32 1.0, %v2185_v53  ;;  %2198 = verf.f32 %v794_v35  ;;  %v795_v3 = vmul.f32 0.70710677, %v2980_v49  ;;  %v2993_v15 = vadd.f32 %v692_v13, %v2646_v46 }
 0x1b4   : > { %v2990_v14 = vmul.f32 %v882_v52, %v738_v44  ;;  %991 = vadd.xlane.f32.xlu1 %v990_v29  ;;  %v696_v16 = vpop.f32.mrf.mxu0  ;;  %v2187_v0 = vpop.eup %2186  ;;  %3428 = vst [vmem:[#allocation12_spill] sm:$0xff] %v2997_v48  ;;  %v741_v34 = vmul.f32 0.5, %v2923_v50  ;;  %v742_v53 = vmul.f32 0.5, %v2932_v11  ;;  %1133 = vadd.xlane.f32.xlu0 %v1132_v32  ;;  %v1135_v13 = vadd.f32 %v1073_v5, %v1072_v59 }
 0x1b5   : > { %2200 = verf.f32 %v795_v3  ;;  %v3001_v35 = vadd.f32 %v696_v16, %v2644_v45  ;;  %v884_v44 = vadd.f32 1.0, %v2187_v0  ;;  %v796_v52 = vmul.f32 0.70710677, %v2993_v15 }
 0x1b6   : > { %v698_v27 = vpop.f32.mrf.mxu0  ;;  %v3005_v58 = vmul.f32 %v883_v62, %v739_v21  ;;  %v993_v50 = vadd.f32 %v2990_v14, %v2997_v48  ;;  %v1075_v59 = vmul.f32 %v2990_v14, %v2990_v14  ;;  %v1074_v5 = vmul.f32 %v2997_v48, %v2997_v48 }
 0x1b7   : > { %v2189_v29 = vpop.eup %2188  ;;  %v797_v9 = vmul.f32 0.70710677, %v3001_v35  ;;  %v3009_v20 = vadd.f32 %v698_v27, %v2646_v46  ;;  %v3013_v16 = vmul.f32 %v884_v44, %v740_v42  ;;  %2202 = verf.f32 %v796_v52 }
 0x1b8   : > { %v2191_v3 = vpop.eup %2190  ;;  %v885_v11 = vadd.f32 1.0, %v2189_v29  ;;  %1136 = vadd.xlane.f32.xlu1 %v1135_v13  ;;  %v700_v32 = vpop.f32.mrf.mxu0  ;;  %994 = vadd.xlane.f32.xlu0 %v993_v50 }
 0x1b9   : > { %v886_v21 = vadd.f32 1.0, %v2191_v3  ;;  %2204 = verf.f32 %v797_v9  ;;  %v798_v62 = vmul.f32 0.70710677, %v3009_v20  ;;  %v3023_v42 = vadd.f32 %v700_v32, %v2644_v45 }
 0x1ba   : > { %v2193_v0 = vpop.eup %2192  ;;  %v3020_v27 = vmul.f32 %v885_v11, %v741_v34  ;;  %v702_v44 = vpop.f32.mrf.mxu0  ;;  %v996_v52 = vadd.f32 %v3013_v16, %v3005_v58  ;;  %v1138_v9 = vadd.f32 %v1075_v59, %v1074_v5  ;;  %v1076_v34 = vmul.f32 %v3005_v58, %v3005_v58 }
 0x1bb   : > { %v3027_v13 = vmul.f32 %v886_v21, %v742_v53  ;;  %2206 = verf.f32 %v798_v62  ;;  %v3030_v29 = vadd.f32 %v702_v44, %v2646_v46  ;;  %v887_v3 = vadd.f32 1.0, %v2193_v0 }
 0x1bc   : > { %v799_v48 = vmul.f32 0.70710677, %v3023_v42  ;;  %997 = vadd.xlane.f32.xlu1 %v996_v52  ;;  %v1077_v45 = vmul.f32 %v3013_v16, %v3013_v16  ;;  %v743_v11 = vmul.f32 0.5, %v2940_v43  ;;  %v744_v53 = vmul.f32 0.5, %v2954_v51  ;;  %1139 = vadd.xlane.f32.xlu0 %v1138_v9 }
 0x1bd   : > { %3429 = vst [vmem:[#allocation13_spill] sm:$0xff] %v3027_v13  ;;  %v2195_v50 = vpop.eup %2194  ;;  %v800_v32 = vmul.f32 0.70710677, %v3030_v29  ;;  %v999_v62 = vadd.f32 %v3027_v13, %v3020_v27  ;;  %v1079_v43 = vmul.f32 %v3027_v13, %v3027_v13  ;;  %v746_v51 = vmul.f32 0.5, %v2972_v10 }
 0x1be   : > { %v2197_v46 = vpop.eup %2196  ;;  %v888_v21 = vadd.f32 1.0, %v2195_v50  ;;  %2208 = verf.f32 %v799_v48  ;;  %v1141_v59 = vadd.f32 %v1077_v45, %v1076_v34  ;;  %v3042_v0 = vmul.f32 %v887_v3, %v743_v11 }
 0x1bf   : > { %2210 = verf.f32 %v800_v32  ;;  %v889_v52 = vadd.f32 1.0, %v2197_v46  ;;  %v745_v9 = vmul.f32 0.5, %v2960_v8  ;;  %v1078_v3 = vmul.f32 %v3020_v27, %v3020_v27 }
 0x1c0   : > { %v2199_v5 = vpop.eup %2198  ;;  %v3044_v44 = vmul.f32 %v888_v21, %v744_v53  ;;  %1142 = vadd.xlane.f32.xlu1 %v1141_v59  ;;  %1000 = vadd.xlane.f32.xlu0 %v999_v62  ;;  %v1080_v8 = vmul.f32 %v3042_v0, %v3042_v0  ;;  %v747_v21 = vmul.f32 0.5, %v2980_v49  ;;  %v748_v62 = vmul.f32 0.5, %v2993_v15 }
 0x1c1   : > { %v890_v50 = vadd.f32 1.0, %v2199_v5  ;;  %v3058_v53 = vmul.f32 %v889_v52, %v745_v9  ;;  %v1144_v10 = vadd.f32 %v1079_v43, %v1078_v3  ;;  %v750_v49 = vmul.f32 0.5, %v3009_v20 }
 0x1c2   : > { %3430 = vst [vmem:[#allocation14_spill] sm:$0xff] %v3044_v44  ;;  %v2201_v48 = vpop.eup %2200  ;;  %v1002_v34 = vadd.f32 %v3044_v44, %v3042_v0  ;;  %v1081_v45 = vmul.f32 %v3044_v44, %v3044_v44  ;;  %v749_v15 = vmul.f32 0.5, %v3001_v35 }
 0x1c3   : > { %v3056_v11 = vmul.f32 %v890_v50, %v746_v51  ;;  %3432 = vst [vmem:[#allocation16_spill] sm:$0xff] %v3058_v53  ;;  %v891_v32 = vadd.f32 1.0, %v2201_v48 }
 0x1c4   : > { %1003 = vadd.xlane.f32.xlu1 %v1002_v34  ;;  %v2203_v46 = vpop.eup %2202  ;;  %1145 = vadd.xlane.f32.xlu0 %v1144_v10  ;;  %v1147_v13 = vadd.f32 %v1081_v45, %v1080_v8  ;;  %v1082_v45 = vmul.f32 %v3058_v53, %v3058_v53 }
 0x1c5   : > { %3431 = vst [vmem:[#allocation15_spill] sm:$0xff] %v3056_v11  ;;  %v892_v5 = vadd.f32 1.0, %v2203_v46  ;;  %v1005_v51 = vadd.f32 %v3056_v11, %v3058_v53  ;;  %v3066_v50 = vmul.f32 %v891_v32, %v747_v21  ;;  %v1083_v9 = vmul.f32 %v3056_v11, %v3056_v11 }
 0x1c6   : > { %v2205_v59 = vpop.eup %2204 }
 0x1c7   : > { %3433 = vst [vmem:[#allocation17_spill] sm:$0xff] %v3066_v50  ;;  %v3068_v48 = vmul.f32 %v892_v5, %v748_v62  ;;  %v893_v43 = vadd.f32 1.0, %v2205_v59  ;;  %v1150_v21 = vadd.f32 %v1083_v9, %v1082_v45  ;;  %v1084_v35 = vmul.f32 %v3066_v50, %v3066_v50 }
 0x1c8   : > { %v2207_v52 = vpop.eup %2206  ;;  %1148 = vadd.xlane.f32.xlu1 %v1147_v13  ;;  %1006 = vadd.xlane.f32.xlu0 %v1005_v51  ;;  %v751_v59 = vmul.f32 0.5, %v3023_v42  ;;  %v752_v62 = vmul.f32 0.5, %v3030_v29 }
 0x1c9   : > { %3434 = vst [vmem:[#allocation18_spill] sm:$0xff] %v3068_v48  ;;  %v894_v34 = vadd.f32 1.0, %v2207_v52  ;;  %v1008_v3 = vadd.f32 %v3068_v48, %v3066_v50  ;;  %v1085_v32 = vmul.f32 %v3068_v48, %v3068_v48  ;;  %v3082_v46 = vmul.f32 %v893_v43, %v749_v15 }
 0x1cb   : > { %v2209_v10 = vpop.eup %2208  ;;  %v3080_v13 = vmul.f32 %v894_v34, %v750_v49  ;;  %3436 = vst [vmem:[#allocation20_spill] sm:$0xff] %v3082_v46  ;;  %v1153_v51 = vadd.f32 %v1085_v32, %v1084_v35  ;;  %v1086_v42 = vmul.f32 %v3082_v46, %v3082_v46 }
 0x1cc   : > { %v2211_v8 = vpop.eup %2210  ;;  %v895_v20 = vadd.f32 1.0, %v2209_v10  ;;  %1009 = vadd.xlane.f32.xlu1 %v1008_v3  ;;  %1151 = vadd.xlane.f32.xlu0 %v1150_v21 }
 0x1cd   : > { %3435 = vst [vmem:[#allocation19_spill] sm:$0xff] %v3080_v13  ;;  %v896_v5 = vadd.f32 1.0, %v2211_v8  ;;  %v1011_v52 = vadd.f32 %v3080_v13, %v3082_v46  ;;  %v1087_v9 = vmul.f32 %v3080_v13, %v3080_v13 }
 0x1ce   : > { %v3090_v49 = vmul.f32 %v895_v20, %v751_v59 }
 0x1cf   : > { %v3092_v43 = vmul.f32 %v896_v5, %v752_v62  ;;  %v1156_v15 = vadd.f32 %v1087_v9, %v1086_v42 }
 0x1d0   : > { %3437 = vst [vmem:[#allocation21_spill] sm:$0xff] %v3090_v49  ;;  %1154 = vadd.xlane.f32.xlu1 %v1153_v51  ;;  %1012 = vadd.xlane.f32.xlu0 %v1011_v52  ;;  %v1088_v3 = vmul.f32 %v3090_v49, %v3090_v49 }
 0x1d1   : > { %3438 = vst [vmem:[#allocation22_spill] sm:$0xff] %v3092_v43  ;;  %v1014_v34 = vadd.f32 %v3092_v43, %v3090_v49  ;;  %v1089_v29 = vmul.f32 %v3092_v43, %v3092_v43 }
 0x1d3   : > { %v1159_v45 = vadd.f32 %v1089_v29, %v1088_v3 }
 0x1d4   : > { %1015 = vadd.xlane.f32.xlu1 %v1014_v34  ;;  %1157 = vadd.xlane.f32.xlu0 %v1156_v15 }
 0x1d8   : > { %1160 = vadd.xlane.f32.xlu1 %v1159_v45 }
 0x201   : > { %v947_v32 = vpop.xlane.xlu0 %946 }
 0x202   : > { %v3104_v10 = vmul.f32 0.00390625, %v947_v32 }
 0x203   : > { %v1092_v8 = vpop.xlane.xlu1 %1091 }
 0x204   : > { %v1162_v20 = vmul.f32 0.00390625, %v1092_v8  ;;  %v1186_v21 = vmul.f32 %v3104_v10, %v3104_v10 }
 0x205   : > { %v950_v35 = vpop.xlane.xlu0 %949 }
 0x206   : > { %v1210_v59 = vsub.f32 %v1162_v20, %v1186_v21  ;;  %v1019_v62 = vmul.f32 0.00390625, %v950_v35 }
 0x207   : > { %v1095_v5 = vpop.xlane.xlu1 %1094 }
 0x208   : > { %v1234_v51 = vmax.f32 %v1210_v59, 0.0  ;;  %v1163_v52 = vmul.f32 0.00390625, %v1095_v5  ;;  %v1187_v9 = vmul.f32 %v1019_v62, %v1019_v62 }
 0x209   : > { %v953_v34 = vpop.xlane.xlu0 %952 }
 0x20a   : > { %v1211_v42 = vsub.f32 %v1163_v52, %v1187_v9  ;;  %v3108_v15 = vmul.f32 0.00390625, %v953_v34  ;;  %v1306_v29 = vadd.f32 1e-12, %v1234_v51 }
 0x20c   : > { %v1235_v3 = vmax.f32 %v1211_v42, 0.0  ;;  %v1188_v49 = vmul.f32 %v3108_v15, %v3108_v15  ;;  %2212 = vrsqrt.f32 %v1306_v29 }
 0x20d   : > { %v956_v45 = vpop.xlane.xlu1 %955  ;;  %v1098_v32 = vpop.xlane.xlu0 %1097 }
 0x20e   : > { %v1307_v43 = vadd.f32 1e-12, %v1235_v3  ;;  %v3110_v8 = vmul.f32 0.00390625, %v956_v45  ;;  %v1164_v20 = vmul.f32 0.00390625, %v1098_v32 }
 0x210   : > { %2214 = vrsqrt.f32 %v1307_v43  ;;  %v1212_v21 = vsub.f32 %v1164_v20, %v1188_v49  ;;  %v1189_v52 = vmul.f32 %v3110_v8, %v3110_v8 }
 0x211   : > { %v1101_v35 = vpop.xlane.xlu1 %1100  ;;  %v959_v59 = vpop.xlane.xlu0 %958 }
 0x212   : > { %v1236_v5 = vmax.f32 %v1212_v21, 0.0  ;;  %v1165_v51 = vmul.f32 0.00390625, %v1101_v35  ;;  %v3116_v9 = vmul.f32 0.00390625, %v959_v59 }
 0x214   : > { %v1213_v34 = vsub.f32 %v1165_v51, %v1189_v52  ;;  %v1308_v42 = vadd.f32 1e-12, %v1236_v5  ;;  %v1190_v43 = vmul.f32 %v3116_v9, %v3116_v9 }
 0x215   : > { %v962_v3 = vpop.xlane.xlu1 %961  ;;  %v1104_v45 = vpop.xlane.xlu0 %1103 }
 0x216   : > { %v1237_v13 = vmax.f32 %v1213_v34, 0.0  ;;  %v3118_v46 = vmul.f32 0.00390625, %v962_v3  ;;  %v1166_v49 = vmul.f32 0.00390625, %v1104_v45  ;;  %2216 = vrsqrt.f32 %v1308_v42 }
 0x217   : > { %v1258_v34 = vsub.f32 %v2673_v23, %v3104_v10 }
 0x218   : > { %v1309_v29 = vadd.f32 1e-12, %v1237_v13  ;;  %v1214_v32 = vsub.f32 %v1166_v49, %v1190_v43  ;;  %v1191_v20 = vmul.f32 %v3118_v46, %v3118_v46  ;;  %v1260_v13 = vsub.f32 %v2686_v36, %v1019_v62 }
 0x219   : > { %v1107_v21 = vpop.xlane.xlu1 %1106  ;;  %v965_v35 = vpop.xlane.xlu0 %964  ;;  %v1259_v49 = vsub.f32 %v2679_v31, %v3104_v10 }
 0x21a   : > { %2218 = vrsqrt.f32 %v1309_v29  ;;  %v1238_v59 = vmax.f32 %v1214_v32, 0.0  ;;  %v1167_v5 = vmul.f32 0.00390625, %v1107_v21  ;;  %v3124_v52 = vmul.f32 0.00390625, %v965_v35  ;;  %v2213_v51 = vpop.eup %2212 }
 0x21b   : > { %v1261_v29 = vsub.f32 %v2693_v41, %v1019_v62  ;;  %v1355_v23 = vmul.f32 %v2213_v51, %v1259_v49 }
 0x21c   : > { %v1215_v3 = vsub.f32 %v1167_v5, %v1191_v20  ;;  %v1310_v45 = vadd.f32 1e-12, %v1238_v59  ;;  %v1192_v35 = vmul.f32 %v3124_v52, %v3124_v52  ;;  %v1354_v5 = vmul.f32 %v2213_v51, %v1258_v34 }
 0x21d   : > { %v2215_v48 = vpop.eup %2214  ;;  %v968_v42 = vpop.xlane.xlu1 %967 }
 0x21e   : > { %v1110_v43 = vpop.xlane.xlu0 %1109  ;;  %v1239_v32 = vmax.f32 %v1215_v3, 0.0  ;;  %v3132_v21 = vmul.f32 0.00390625, %v968_v42  ;;  %v1357_v20 = vmul.f32 %v2215_v48, %v1261_v29  ;;  %v1356_v11 = vmul.f32 %v2215_v48, %v1260_v13 }
 0x21f   : > { %v1168_v50 = vmul.f32 0.00390625, %v1110_v43  ;;  %2220 = vrsqrt.f32 %v1310_v45 }
 0x220   : > { %v1311_v36 = vadd.f32 1e-12, %v1239_v32  ;;  %v1193_v53 = vmul.f32 %v3132_v21, %v3132_v21  ;;  %v1403_v41 = vpack.c.bf16 %v1357_v20, %v1355_v23  ;;  %v1402_v62 = vpack.c.bf16 %v1356_v11, %v1354_v5 }
 0x221   : > { %v1216_v59 = vsub.f32 %v1168_v50, %v1192_v35  ;;  %v1113_v31 = vpop.xlane.xlu1 %1112  ;;  %v1262_v50 = vsub.f32 %v2709_v60, %v3108_v15  ;;  %v1263_v35 = vsub.f32 %v2711_v61, %v3108_v15  ;;  %v1265_v60 = vsub.f32 %v2727_v17, %v3110_v8 }
 0x222   : > { %v971_v10 = vpop.xlane.xlu0 %970  ;;  %2222 = vrsqrt.f32 %v1311_v36  ;;  %v1169_v42 = vmul.f32 0.00390625, %v1113_v31  ;;  %1593 = vmatprep.mubr.bf16.mxu1 %v1403_v41 }
 0x223   : > { %v1240_v3 = vmax.f32 %v1216_v59, 0.0  ;;  %v3138_v44 = vmul.f32 0.00390625, %v971_v10  ;;  %1594 = vmatmul.mubr.bf16.vlgmr.msra.gmra.mxu1 %v1402_v62  ;;  %v2217_v34 = vpop.eup %2216 }
 0x224   : > { %v1217_v49 = vsub.f32 %v1169_v42, %v1193_v53  ;;  %v1264_v53 = vsub.f32 %v2731_v22, %v3110_v8  ;;  %v1359_v59 = vmul.f32 %v2217_v34, %v1263_v35  ;;  %v1358_v10 = vmul.f32 %v2217_v34, %v1262_v50 }
 0x225   : > { %v1312_v43 = vadd.f32 1e-12, %v1240_v3  ;;  %v974_v48 = vpop.xlane.xlu1 %973  ;;  %v1194_v11 = vmul.f32 %v3138_v44, %v3138_v44 }
 0x226   : > { %v1116_v51 = vpop.xlane.xlu0 %1115  ;;  %v1241_v13 = vmax.f32 %v1217_v49, 0.0  ;;  %v3142_v45 = vmul.f32 0.00390625, %v974_v48  ;;  %v1266_v48 = vsub.f32 %v2747_v38, %v3116_v9 }
 0x227   : > { %v1170_v29 = vmul.f32 0.00390625, %v1116_v51  ;;  %v2219_v32 = vpop.eup %2218  ;;  %2224 = vrsqrt.f32 %v1312_v43 }
 0x228   : > { %v1313_v23 = vadd.f32 1e-12, %v1241_v13  ;;  %v1361_v31 = vmul.f32 %v2219_v32, %v1265_v60  ;;  %v1360_v41 = vmul.f32 %v2219_v32, %v1264_v53  ;;  %v1195_v61 = vmul.f32 %v3142_v45, %v3142_v45 }
 0x229   : > { %v1218_v20 = vsub.f32 %v1170_v29, %v1194_v11  ;;  %v1119_v5 = vpop.xlane.xlu1 %1118  ;;  %v1267_v13 = vsub.f32 %v2749_v39, %v3116_v9  ;;  %v1268_v11 = vsub.f32 %v2767_v63, %v3118_v46  ;;  %v1269_v29 = vsub.f32 %v2775_v4, %v3118_v46 }
 0x22a   : > { %v977_v36 = vpop.xlane.xlu0 %976  ;;  %2226 = vrsqrt.f32 %v1313_v23  ;;  %v1171_v15 = vmul.f32 0.00390625, %v1119_v5  ;;  %v1405_v3 = vpack.c.bf16 %v1361_v31, %v1359_v59  ;;  %v1404_v22 = vpack.c.bf16 %v1360_v41, %v1358_v10 }
 0x22b   : > { %v1242_v62 = vmax.f32 %v1218_v20, 0.0  ;;  %v3154_v17 = vmul.f32 0.00390625, %v977_v36 }
 0x22c   : > { %v1219_v49 = vsub.f32 %v1171_v15, %v1195_v61  ;;  %1601 = vmatprep.mubr.bf16.mxu1 %v1405_v3  ;;  %v2221_v43 = vpop.eup %2220  ;;  %v1271_v61 = vsub.f32 %v2794_v30, %v3124_v52  ;;  %v1270_v3 = vsub.f32 %v2792_v28, %v3124_v52 }
 0x22d   : > { %v1314_v42 = vadd.f32 1e-12, %v1242_v62  ;;  %v980_v8 = vpop.xlane.xlu1 %979  ;;  %1602 = vmatmul.mubr.bf16.gmra.mxu1 %v1404_v22  ;;  %v1196_v38 = vmul.f32 %v3154_v17, %v3154_v17  ;;  %v1363_v23 = vmul.f32 %v2221_v43, %v1267_v13  ;;  %v1362_v5 = vmul.f32 %v2221_v43, %v1266_v48 }
 0x22e   : > { %v1243_v50 = vmax.f32 %v1219_v49, 0.0  ;;  %v3158_v51 = vmul.f32 0.00390625, %v980_v8  ;;  %v1122_v32 = vpop.xlane.xlu0 %1121  ;;  %v1273_v22 = vsub.f32 %v2810_v57, %v3132_v21  ;;  %v1272_v43 = vsub.f32 %v2807_v1, %v3132_v21 }
 0x22f   : > { %v2223_v34 = vpop.eup %2222  ;;  %2228 = vrsqrt.f32 %v1314_v42  ;;  %v1172_v53 = vmul.f32 0.00390625, %v1122_v32 }
 0x230   : > { %v1315_v35 = vadd.f32 1e-12, %v1243_v50  ;;  %v1365_v20 = vmul.f32 %v2223_v34, %v1269_v29  ;;  %v1364_v36 = vmul.f32 %v2223_v34, %v1268_v11  ;;  %v1197_v63 = vmul.f32 %v3158_v51, %v3158_v51 }
 0x231   : > { %v1125_v60 = vpop.xlane.xlu1 %1124  ;;  %v1220_v39 = vsub.f32 %v1172_v53, %v1196_v38 }
 0x232   : > { %2230 = vrsqrt.f32 %v1315_v35  ;;  %v1173_v9 = vmul.f32 0.00390625, %v1125_v60  ;;  %v983_v59 = vpop.xlane.xlu0 %982  ;;  %v1407_v4 = vpack.c.bf16 %v1365_v20, %v1363_v23  ;;  %v1406_v46 = vpack.c.bf16 %v1364_v36, %v1362_v5 }
 0x233   : > { %v1244_v10 = vmax.f32 %v1220_v39, 0.0  ;;  %v3170_v62 = vmul.f32 0.00390625, %v983_v59  ;;  %v1275_v36 = vsub.f32 %v2834_v24, %v3138_v44 }
 0x234   : > { %v2225_v31 = vpop.eup %2224  ;;  %v1221_v41 = vsub.f32 %v1173_v9, %v1197_v63  ;;  %1609 = vmatprep.mubr.bf16.mxu1 %v1407_v4  ;;  %v1274_v63 = vsub.f32 %v2826_v33, %v3138_v44  ;;  %v1277_v9 = vsub.f32 %v2855_v56, %v3142_v45 }
 0x235   : > { %v986_v15 = vpop.xlane.xlu1 %985  ;;  %v1316_v42 = vadd.f32 1e-12, %v1244_v10  ;;  %1610 = vmatmul.mubr.bf16.gmra.mxu1 %v1406_v46  ;;  %v1198_v30 = vmul.f32 %v3170_v62, %v3170_v62  ;;  %v1367_v34 = vmul.f32 %v2225_v31, %v1271_v61  ;;  %v1366_v29 = vmul.f32 %v2225_v31, %v1270_v3 }
 0x236   : > { %v1245_v49 = vmax.f32 %v1221_v41, 0.0  ;;  %v3180_v48 = vmul.f32 0.00390625, %v986_v15  ;;  %v1128_v50 = vpop.xlane.xlu0 %1127  ;;  %v1276_v31 = vsub.f32 %v2853_v55, %v3142_v45 }
 0x237   : > { %v2227_v8 = vpop.eup %2226  ;;  %2232 = vrsqrt.f32 %v1316_v42  ;;  %v1174_v28 = vmul.f32 0.00390625, %v1128_v50 }
 0x238   : > { %v1317_v13 = vadd.f32 1e-12, %v1245_v49  ;;  %v1369_v52 = vmul.f32 %v2227_v8, %v1273_v22  ;;  %v1199_v57 = vmul.f32 %v3180_v48, %v3180_v48  ;;  %v1368_v32 = vmul.f32 %v2227_v8, %v1272_v43 }
 0x239   : > { %v1131_v11 = vpop.xlane.xlu1 %1130  ;;  %v1222_v35 = vsub.f32 %v1174_v28, %v1198_v30  ;;  %v1279_v28 = vsub.f32 %v2866_v2, %v3154_v17 }
 0x23a   : > { %2234 = vrsqrt.f32 %v1317_v13  ;;  %v1175_v1 = vmul.f32 0.00390625, %v1131_v11  ;;  %v1409_v21 = vpack.c.bf16 %v1369_v52, %v1367_v34  ;;  %v989_v38 = vpop.xlane.xlu0 %988  ;;  %v1408_v53 = vpack.c.bf16 %v1368_v32, %v1366_v29 }
 0x23b   : > { %v1246_v23 = vmax.f32 %v1222_v35, 0.0  ;;  %v3186_v5 = vmul.f32 0.00390625, %v989_v38  ;;  %v1281_v11 = vsub.f32 %v2888_v26, %v3158_v51 }
 0x23c   : > { %v2229_v60 = vpop.eup %2228  ;;  %v1223_v20 = vsub.f32 %v1175_v1, %v1199_v57  ;;  %1617 = vmatprep.mubr.bf16.mxu1 %v1409_v21  ;;  %v1278_v57 = vsub.f32 %v2873_v25, %v3154_v17  ;;  %v1280_v1 = vsub.f32 %v2886_v54, %v3158_v51 }
 0x23d   : > { %v992_v39 = vpop.xlane.xlu1 %991  ;;  %v1318_v59 = vadd.f32 1e-12, %v1246_v23  ;;  %1618 = vmatmul.mubr.bf16.gmra.mxu1 %v1408_v53  ;;  %v1200_v41 = vmul.f32 %v3186_v5, %v3186_v5  ;;  %v1371_v61 = vmul.f32 %v2229_v60, %v1275_v36  ;;  %v1370_v22 = vmul.f32 %v2229_v60, %v1274_v63 }
 0x23e   : > { %v1247_v4 = vmax.f32 %v1223_v20, 0.0  ;;  %v3196_v10 = vmul.f32 0.00390625, %v992_v39  ;;  %v1134_v24 = vpop.xlane.xlu0 %1133 }
 0x23f   : > { %v2231_v46 = vpop.eup %2230  ;;  %2236 = vrsqrt.f32 %v1318_v59  ;;  %v1176_v33 = vmul.f32 0.00390625, %v1134_v24 }
 0x240   : > { %v1319_v15 = vadd.f32 1e-12, %v1247_v4  ;;  %v1373_v44 = vmul.f32 %v2231_v46, %v1277_v9  ;;  %v1201_v56 = vmul.f32 %v3196_v10, %v3196_v10  ;;  %v1372_v42 = vmul.f32 %v2231_v46, %v1276_v31 }
 0x241   : > { %v1137_v3 = vpop.xlane.xlu1 %1136  ;;  %v1224_v49 = vsub.f32 %v1176_v33, %v1200_v41  ;;  %v1283_v41 = vsub.f32 %v2916_v40, %v3170_v62 }
 0x242   : > { %2238 = vrsqrt.f32 %v1319_v15  ;;  %v1177_v55 = vmul.f32 0.00390625, %v1137_v3  ;;  %v1411_v45 = vpack.c.bf16 %v1373_v44, %v1371_v61  ;;  %v995_v8 = vpop.xlane.xlu0 %994  ;;  %v1410_v43 = vpack.c.bf16 %v1372_v42, %v1370_v22 }
 0x243   : > { %v1248_v30 = vmax.f32 %v1224_v49, 0.0  ;;  %v3202_v34 = vmul.f32 0.00390625, %v995_v8  ;;  %v1282_v61 = vsub.f32 %v2914_v12, %v3170_v62  ;;  %v1285_v15 = vsub.f32 %v2927_v6, %v3180_v48 }
 0x244   : > { %v1225_v50 = vsub.f32 %v1177_v55, %v1201_v56  ;;  %1625 = vmatprep.mubr.bf16.mxu1 %v1411_v45  ;;  %v2233_v13 = vpop.eup %2232  ;;  %v1284_v3 = vsub.f32 %v2919_v18, %v3180_v48 }
 0x245   : > { %v998_v52 = vpop.xlane.xlu1 %997  ;;  %v1320_v29 = vadd.f32 1e-12, %v1248_v30  ;;  %1626 = vmatmul.mubr.bf16.gmra.mxu1 %v1410_v43  ;;  %v1202_v38 = vmul.f32 %v3202_v34, %v3202_v34  ;;  %v1375_v53 = vmul.f32 %v2233_v13, %v1279_v28  ;;  %v1374_v20 = vmul.f32 %v2233_v13, %v1278_v57 }
 0x246   : > { %v1249_v32 = vmax.f32 %v1225_v50, 0.0  ;;  %v3212_v21 = vmul.f32 0.00390625, %v998_v52  ;;  %v1140_v2 = vpop.xlane.xlu0 %1139 }
 0x247   : > { %v2235_v35 = vpop.eup %2234  ;;  %2240 = vrsqrt.f32 %v1320_v29  ;;  %v1178_v25 = vmul.f32 0.00390625, %v1140_v2  ;;  %v1287_v29 = vsub.f32 %v2950_v7, %v3186_v5 }
 0x248   : > { %v1321_v60 = vadd.f32 1e-12, %v1249_v32  ;;  %v1377_v17 = vmul.f32 %v2235_v35, %v1281_v11  ;;  %v1203_v26 = vmul.f32 %v3212_v21, %v3212_v21  ;;  %v1376_v36 = vmul.f32 %v2235_v35, %v1280_v1 }
 0x249   : > { %v1143_v23 = vpop.xlane.xlu1 %1142  ;;  %v1226_v39 = vsub.f32 %v1178_v25, %v1202_v38  ;;  %v1286_v35 = vsub.f32 %v2948_v37, %v3186_v5  ;;  %v1289_v1 = vsub.f32 %v2968_v47, %v3196_v10 }
 0x24a   : > { %2242 = vrsqrt.f32 %v1321_v60  ;;  %v1179_v54 = vmul.f32 0.00390625, %v1143_v23  ;;  %v1413_v51 = vpack.c.bf16 %v1377_v17, %v1375_v53  ;;  %v1001_v63 = vpop.xlane.xlu0 %1000  ;;  %v1412_v9 = vpack.c.bf16 %v1376_v36, %v1374_v20 }
 0x24b   : > { %v1250_v59 = vmax.f32 %v1226_v39, 0.0  ;;  %v3218_v46 = vmul.f32 0.00390625, %v1001_v63  ;;  %v1288_v60 = vsub.f32 %v2966_v19, %v3196_v10 }
 0x24c   : > { %v1227_v4 = vsub.f32 %v1179_v54, %v1203_v26  ;;  %1633 = vmatprep.mubr.bf16.mxu1 %v1413_v51  ;;  %v2237_v31 = vpop.eup %2236 }
 0x24d   : > { %v1004_v24 = vpop.xlane.xlu1 %1003  ;;  %v1322_v33 = vadd.f32 1e-12, %v1250_v59  ;;  %1634 = vmatmul.mubr.bf16.gmra.mxu1 %v1412_v9  ;;  %v1204_v42 = vmul.f32 %v3218_v46, %v3218_v46  ;;  %v1379_v49 = vmul.f32 %v2237_v31, %v1283_v41  ;;  %v1378_v8 = vmul.f32 %v2237_v31, %v1282_v61  ;;  %v3439_v61 = vld [vmem:[#allocation12_spill] sm:$0xff] }
 0x24e   : > { %v1251_v44 = vmax.f32 %v1227_v4, 0.0  ;;  %v3228_v22 = vmul.f32 0.00390625, %v1004_v24  ;;  %v1146_v40 = vpop.xlane.xlu0 %1145  ;;  %v1291_v41 = vsub.f32 %v2990_v14, %v3202_v34 }
 0x24f   : > { %v2239_v56 = vpop.eup %2238  ;;  %2244 = vrsqrt.f32 %v1322_v33  ;;  %v1180_v12 = vmul.f32 0.00390625, %v1146_v40  ;;  %v1293_v33 = vsub.f32 %v3013_v16, %v3212_v21 }
 0x250   : > { %v1323_v55 = vadd.f32 1e-12, %v1251_v44  ;;  %v1381_v62 = vmul.f32 %v2239_v56, %v1285_v15  ;;  %v1205_v6 = vmul.f32 %v3228_v22, %v3228_v22  ;;  %v1380_v43 = vmul.f32 %v2239_v56, %v1284_v3 }
 0x251   : > { %v1149_v45 = vpop.xlane.xlu1 %1148  ;;  %v1228_v30 = vsub.f32 %v1180_v12, %v1204_v42  ;;  %v1290_v15 = vsub.f32 %v3439_v61, %v3202_v34  ;;  %v1292_v42 = vsub.f32 %v3005_v58, %v3212_v21  ;;  %v3448_v61 = vld [vmem:[#allocation21_spill] sm:$0xff] }
 0x252   : > { %2246 = vrsqrt.f32 %v1323_v55  ;;  %v1181_v18 = vmul.f32 0.00390625, %v1149_v45  ;;  %v1415_v48 = vpack.c.bf16 %v1381_v62, %v1379_v49  ;;  %v1007_v50 = vpop.xlane.xlu0 %1006  ;;  %v1414_v13 = vpack.c.bf16 %v1380_v43, %v1378_v8 }
 0x253   : > { %v1252_v28 = vmax.f32 %v1228_v30, 0.0  ;;  %v3234_v57 = vmul.f32 0.00390625, %v1007_v50 }
 0x254   : > { %v1229_v52 = vsub.f32 %v1181_v18, %v1205_v6  ;;  %1641 = vmatprep.mubr.bf16.mxu1 %v1415_v48  ;;  %v2241_v11 = vpop.eup %2240 }
 0x255   : > { %v1010_v32 = vpop.xlane.xlu1 %1009  ;;  %v1324_v38 = vadd.f32 1e-12, %v1252_v28  ;;  %1642 = vmatmul.mubr.bf16.gmra.mxu1 %v1414_v13  ;;  %v1206_v17 = vmul.f32 %v3234_v57, %v3234_v57  ;;  %v1383_v26 = vmul.f32 %v2241_v11, %v1287_v29  ;;  %v1382_v36 = vmul.f32 %v2241_v11, %v1286_v35  ;;  %v3440_v28 = vld [vmem:[#allocation13_spill] sm:$0xff]  ;;  %v3441_v29 = vld [vmem:[#allocation14_spill] sm:$0xff] }
 0x256   : > { %v1253_v2 = vmax.f32 %v1229_v52, 0.0  ;;  %v3244_v25 = vmul.f32 0.00390625, %v1010_v32  ;;  %v1152_v7 = vpop.xlane.xlu0 %1151  ;;  %v1294_v13 = vsub.f32 %v3020_v27, %v3218_v46  ;;  %v1295_v52 = vsub.f32 %v3440_v28, %v3218_v46 }
 0x257   : > { %v2243_v53 = vpop.eup %2242  ;;  %2248 = vrsqrt.f32 %v1324_v38  ;;  %v1182_v37 = vmul.f32 0.00390625, %v1152_v7  ;;  %v1296_v11 = vsub.f32 %v3042_v0, %v3228_v22  ;;  %v1297_v32 = vsub.f32 %v3441_v29, %v3228_v22  ;;  %v3442_v0 = vld [vmem:[#allocation16_spill] sm:$0xff]  ;;  %v3443_v22 = vld [vmem:[#allocation15_spill] sm:$0xff] }
 0x258   : > { %v1325_v23 = vadd.f32 1e-12, %v1253_v2  ;;  %v1385_v5 = vmul.f32 %v2243_v53, %v1289_v1  ;;  %v1207_v47 = vmul.f32 %v3244_v25, %v3244_v25  ;;  %v1384_v39 = vmul.f32 %v2243_v53, %v1288_v60 }
 0x259   : > { %v1155_v20 = vpop.xlane.xlu1 %1154  ;;  %v1230_v54 = vsub.f32 %v1182_v37, %v1206_v17  ;;  %v1299_v37 = vsub.f32 %v3443_v22, %v3234_v57 }
 0x25a   : > { %2250 = vrsqrt.f32 %v1325_v23  ;;  %v1183_v19 = vmul.f32 0.00390625, %v1155_v20  ;;  %v1417_v10 = vpack.c.bf16 %v1385_v5, %v1383_v26  ;;  %v1013_v51 = vpop.xlane.xlu0 %1012  ;;  %v1416_v63 = vpack.c.bf16 %v1384_v39, %v1382_v36  ;;  %v3444_v5 = vld [vmem:[#allocation17_spill] sm:$0xff]  ;;  %v3445_v20 = vld [vmem:[#allocation18_spill] sm:$0xff] }
 0x25b   : > { %v1254_v9 = vmax.f32 %v1230_v54, 0.0  ;;  %v3250_v4 = vmul.f32 0.00390625, %v1013_v51  ;;  %v1298_v23 = vsub.f32 %v3442_v0, %v3234_v57  ;;  %v1301_v36 = vsub.f32 %v3445_v20, %v3244_v25 }
 0x25c   : > { %v1231_v59 = vsub.f32 %v1183_v19, %v1207_v47  ;;  %1649 = vmatprep.mubr.bf16.mxu1 %v1417_v10  ;;  %v2245_v31 = vpop.eup %2244  ;;  %v1300_v47 = vsub.f32 %v3444_v5, %v3244_v25 }
 0x25d   : > { %v1016_v24 = vpop.xlane.xlu1 %1015  ;;  %v1326_v44 = vadd.f32 1e-12, %v1254_v9  ;;  %1650 = vmatmul.mubr.bf16.gmra.mxu1 %v1416_v63  ;;  %v1208_v49 = vmul.f32 %v3250_v4, %v3250_v4  ;;  %v1387_v55 = vmul.f32 %v2245_v31, %v1291_v41  ;;  %v1386_v45 = vmul.f32 %v2245_v31, %v1290_v15  ;;  %v3446_v31 = vld [vmem:[#allocation20_spill] sm:$0xff]  ;;  %v3447_v41 = vld [vmem:[#allocation19_spill] sm:$0xff]  ;;  %v3449_v15 = vld [vmem:[#allocation22_spill] sm:$0xff] }
 0x25e   : > { %v1255_v56 = vmax.f32 %v1231_v59, 0.0  ;;  %v3260_v40 = vmul.f32 0.00390625, %v1016_v24  ;;  %v1158_v14 = vpop.xlane.xlu0 %1157  ;;  %v1302_v57 = vsub.f32 %v3446_v31, %v3250_v4  ;;  %v1303_v24 = vsub.f32 %v3447_v41, %v3250_v4  ;;  %v3294_v4 = vld [vmem:[%s3400_s4] ss:$0 sm:$0xff] }
 0x25f   : > { %v2247_v3 = vpop.eup %2246  ;;  %2252 = vrsqrt.f32 %v1326_v44  ;;  %v1184_v34 = vmul.f32 0.00390625, %v1158_v14 }
 0x260   : > { %v1327_v12 = vadd.f32 1e-12, %v1255_v56  ;;  %v1389_v62 = vmul.f32 %v2247_v3, %v1293_v33  ;;  %v1209_v16 = vmul.f32 %v3260_v40, %v3260_v40  ;;  %v1388_v8 = vmul.f32 %v2247_v3, %v1292_v42 }
 0x261   : > { %v1161_v6 = vpop.xlane.xlu1 %1160  ;;  %v1232_v43 = vsub.f32 %v1184_v34, %v1208_v49  ;;  %v1304_v25 = vsub.f32 %v3448_v61, %v3260_v40  ;;  %v1305_v33 = vsub.f32 %v3449_v15, %v3260_v40 }
 0x262   : > { %2254 = vrsqrt.f32 %v1327_v12  ;;  %v1185_v58 = vmul.f32 0.00390625, %v1161_v6  ;;  %v1419_v21 = vpack.c.bf16 %v1389_v62, %v1387_v55  ;;  %v1418_v30 = vpack.c.bf16 %v1388_v8, %v1386_v45 }
 0x263   : > { %v1256_v18 = vmax.f32 %v1232_v43, 0.0 }
 0x264   : > { %v1233_v48 = vsub.f32 %v1185_v58, %v1209_v16  ;;  %1657 = vmatprep.mubr.bf16.mxu1 %v1419_v21  ;;  %v2249_v50 = vpop.eup %2248 }
 0x265   : > { %v1328_v35 = vadd.f32 1e-12, %v1256_v18  ;;  %1658 = vmatmul.mubr.bf16.gmra.mxu1 %v1418_v30  ;;  %v1391_v2 = vmul.f32 %v2249_v50, %v1295_v52  ;;  %v1390_v53 = vmul.f32 %v2249_v50, %v1294_v13 }
 0x266   : > { %v1257_v1 = vmax.f32 %v1233_v48, 0.0 }
 0x267   : > { %v2251_v38 = vpop.eup %2250  ;;  %2256 = vrsqrt.f32 %v1328_v35 }
 0x268   : > { %v1329_v60 = vadd.f32 1e-12, %v1257_v1  ;;  %v1393_v17 = vmul.f32 %v2251_v38, %v1297_v32  ;;  %v1392_v7 = vmul.f32 %v2251_v38, %v1296_v11 }
 0x26a   : > { %2258 = vrsqrt.f32 %v1329_v60  ;;  %v1421_v27 = vpack.c.bf16 %v1393_v17, %v1391_v2  ;;  %v1420_v26 = vpack.c.bf16 %v1392_v7, %v1390_v53 }
 0x26c   : > { %1665 = vmatprep.mubr.bf16.mxu1 %v1421_v27  ;;  %v2253_v46 = vpop.eup %2252 }
 0x26d   : > { %1666 = vmatmul.mubr.bf16.gmra.mxu1 %v1420_v26  ;;  %v1395_v54 = vmul.f32 %v2253_v46, %v1299_v37  ;;  %v1394_v10 = vmul.f32 %v2253_v46, %v1298_v23 }
 0x26f   : > { %v2255_v39 = vpop.eup %2254 }
 0x270   : > { %v1397_v19 = vmul.f32 %v2255_v39, %v1301_v36  ;;  %v1396_v51 = vmul.f32 %v2255_v39, %v1300_v47 }
 0x272   : > { %v1423_v63 = vpack.c.bf16 %v1397_v19, %v1395_v54  ;;  %v1422_v9 = vpack.c.bf16 %v1396_v51, %v1394_v10 }
 0x274   : > { %1673 = vmatprep.mubr.bf16.mxu1 %v1423_v63  ;;  %v2257_v59 = vpop.eup %2256 }
 0x275   : > { %1674 = vmatmul.mubr.bf16.gmra.mxu1 %v1422_v9  ;;  %v1399_v56 = vmul.f32 %v2257_v59, %v1303_v24  ;;  %v1398_v42 = vmul.f32 %v2257_v59, %v1302_v57 }
 0x277   : > { %v2259_v44 = vpop.eup %2258 }
 0x278   : > { %v1401_v3 = vmul.f32 %v2259_v44, %v1305_v33  ;;  %v1400_v49 = vmul.f32 %v2259_v44, %v1304_v25 }
 0x27a   : > { %v1425_v14 = vpack.c.bf16 %v1401_v3, %v1399_v56  ;;  %v1424_v55 = vpack.c.bf16 %v1400_v49, %v1398_v42 }
 0x27c   : > { %1681 = vmatprep.mubr.bf16.mxu1 %v1425_v14 }
 0x27d   : > { %1682 = vmatmul.mubr.bf16.gmra.mxu1 %v1424_v55 }
 0x2e3   : > { %v1902_v12 = vpop.f32.mrf.mxu1 }
 0x2e5   : > { %v1903_v34 = vpop.f32.mrf.mxu1 }
 0x2e6   : > { %v1904_v62 = vadd.f32 %v1903_v34, %v1902_v12 }
 0x2e7   : > { %v1905_v40 = vpop.f32.mrf.mxu1 }
 0x2e8   : > { %v1596_v16 = vadd.f32 %v1904_v62, %v3294_v4 }
 0x2e9   : > { %v1906_v6 = vpop.f32.mrf.mxu1 }
 0x2ea   : > { %1690 = vst [vmem:[%s3297_s14] sm:$0xff] %v1596_v16  ;;  %v1907_v45 = vadd.f32 %v1906_v6, %v1905_v40 }
 0x2ec   : > { %v1599_v8 = vadd.f32 %v1907_v45, %v3294_v4 }
 0x2ed   : > { %v1908_v43 = vpop.f32.mrf.mxu1 }
 0x2ee   : > { %1691 = vst [vmem:[%s3297_s14 + $0x8] sm:$0xff] %v1599_v8 }
 0x2ef   : > { %v1909_v58 = vpop.f32.mrf.mxu1 }
 0x2f0   : > { %v1910_v21 = vadd.f32 %v1909_v58, %v1908_v43 }
 0x2f1   : > { %v1911_v30 = vpop.f32.mrf.mxu1 }
 0x2f2   : > { %v1604_v18 = vadd.f32 %v1910_v21, %v3294_v4 }
 0x2f3   : > { %v1912_v48 = vpop.f32.mrf.mxu1 }
 0x2f4   : > { %1692 = vst [vmem:[%s3297_s14 + $0x10] sm:$0xff] %v1604_v18  ;;  %v1913_v50 = vadd.f32 %v1912_v48, %v1911_v30 }
 0x2f5   : > { %v1914_v13 = vpop.f32.mrf.mxu1 }
 0x2f6   : > { %v1607_v28 = vadd.f32 %v1913_v50, %v3294_v4 }
 0x2f7   : > { %v1915_v52 = vpop.f32.mrf.mxu1 }
 0x2f8   : > { %1693 = vst [vmem:[%s3297_s14 + $0x18] sm:$0xff] %v1607_v28  ;;  %v1916_v11 = vadd.f32 %v1915_v52, %v1914_v13 }
 0x2f9   : > { %v1917_v29 = vpop.f32.mrf.mxu1 }
 0x2fa   : > { %v1612_v32 = vadd.f32 %v1916_v11, %v3294_v4 }
 0x2fb   : > { %v1918_v35 = vpop.f32.mrf.mxu1 }
 0x2fc   : > { %1694 = vst [vmem:[%s3297_s14 + $0x20] sm:$0xff] %v1612_v32  ;;  %v1919_v1 = vadd.f32 %v1918_v35, %v1917_v29 }
 0x2fd   : > { %v1920_v38 = vpop.f32.mrf.mxu1 }
 0x2fe   : > { %v1615_v2 = vadd.f32 %v1919_v1, %v3294_v4 }
 0x2ff   : > { %v1921_v53 = vpop.f32.mrf.mxu1 }
 0x300   : > { %1695 = vst [vmem:[%s3297_s14 + $0x28] sm:$0xff] %v1615_v2  ;;  %v1922_v60 = vadd.f32 %v1921_v53, %v1920_v38 }
 0x301   : > { %v1923_v17 = vpop.f32.mrf.mxu1 }
 0x302   : > { %v1620_v7 = vadd.f32 %v1922_v60, %v3294_v4 }
 0x303   : > { %v1924_v27 = vpop.f32.mrf.mxu1 }
 0x304   : > { %1696 = vst [vmem:[%s3297_s14 + $0x30] sm:$0xff] %v1620_v7  ;;  %v1925_v26 = vadd.f32 %v1924_v27, %v1923_v17 }
 0x305   : > { %v1926_v46 = vpop.f32.mrf.mxu1 }
 0x306   : > { %v1623_v0 = vadd.f32 %v1925_v26, %v3294_v4 }
 0x307   : > { %v1927_v23 = vpop.f32.mrf.mxu1 }
 0x308   : > { %1697 = vst [vmem:[%s3297_s14 + $0x38] sm:$0xff] %v1623_v0  ;;  %v1928_v22 = vadd.f32 %v1927_v23, %v1926_v46 }
 0x309   : > { %v1929_v37 = vpop.f32.mrf.mxu1 }
 0x30a   : > { %v1628_v5 = vadd.f32 %v1928_v22, %v3294_v4 }
 0x30b   : > { %v1930_v47 = vpop.f32.mrf.mxu1 }
 0x30c   : > { %1698 = vst [vmem:[%s3297_s14 + $0x40] sm:$0xff] %v1628_v5  ;;  %v1931_v20 = vadd.f32 %v1930_v47, %v1929_v37 }
 0x30d   : > { %v1932_v36 = vpop.f32.mrf.mxu1 }
 0x30e   : > { %v1631_v39 = vadd.f32 %v1931_v20, %v3294_v4 }
 0x30f   : > { %v1933_v54 = vpop.f32.mrf.mxu1 }
 0x310   : > { %1699 = vst [vmem:[%s3297_s14 + $0x48] sm:$0xff] %v1631_v39  ;;  %v1934_v19 = vadd.f32 %v1933_v54, %v1932_v36 }
 0x311   : > { %v1935_v10 = vpop.f32.mrf.mxu1 }
 0x312   : > { %v1636_v51 = vadd.f32 %v1934_v19, %v3294_v4 }
 0x313   : > { %v1936_v63 = vpop.f32.mrf.mxu1 }
 0x314   : > { %1700 = vst [vmem:[%s3297_s14 + $0x50] sm:$0xff] %v1636_v51  ;;  %v1937_v9 = vadd.f32 %v1936_v63, %v1935_v10 }
 0x315   : > { %v1938_v59 = vpop.f32.mrf.mxu1 }
 0x316   : > { %v1639_v31 = vadd.f32 %v1937_v9, %v3294_v4 }
 0x317   : > { %v1939_v57 = vpop.f32.mrf.mxu1 }
 0x318   : > { %1701 = vst [vmem:[%s3297_s14 + $0x58] sm:$0xff] %v1639_v31  ;;  %v1940_v41 = vadd.f32 %v1939_v57, %v1938_v59 }
 0x319   : > { %v1941_v24 = vpop.f32.mrf.mxu1 }
 0x31a   : > { %v1644_v61 = vadd.f32 %v1940_v41, %v3294_v4 }
 0x31b   : > { %v1942_v25 = vpop.f32.mrf.mxu1 }
 0x31c   : > { %1702 = vst [vmem:[%s3297_s14 + $0x60] sm:$0xff] %v1644_v61  ;;  %v1943_v15 = vadd.f32 %v1942_v25, %v1941_v24 }
 0x31d   : > { %v1944_v33 = vpop.f32.mrf.mxu1 }
 0x31e   : > { %v1647_v44 = vadd.f32 %v1943_v15, %v3294_v4 }
 0x31f   : > { %v1945_v56 = vpop.f32.mrf.mxu1 }
 0x320   : > { %1703 = vst [vmem:[%s3297_s14 + $0x68] sm:$0xff] %v1647_v44  ;;  %v1946_v3 = vadd.f32 %v1945_v56, %v1944_v33 }
 0x321   : > { %v1947_v42 = vpop.f32.mrf.mxu1 }
 0x322   : > { %v1652_v49 = vadd.f32 %v1946_v3, %v3294_v4 }
 0x323   : > { %v1948_v14 = vpop.f32.mrf.mxu1 }
 0x324   : > { %1704 = vst [vmem:[%s3297_s14 + $0x70] sm:$0xff] %v1652_v49  ;;  %v1949_v55 = vadd.f32 %v1948_v14, %v1947_v42 }
 0x325   : > { %v1950_v12 = vpop.f32.mrf.mxu1 }
 0x326   : > { %v1655_v34 = vadd.f32 %v1949_v55, %v3294_v4 }
 0x327   : > { %v1951_v62 = vpop.f32.mrf.mxu1 }
 0x328   : > { %1705 = vst [vmem:[%s3297_s14 + $0x78] sm:$0xff] %v1655_v34  ;;  %v1952_v40 = vadd.f32 %v1951_v62, %v1950_v12 }
 0x329   : > { %v1953_v16 = vpop.f32.mrf.mxu1 }
 0x32a   : > { %v1660_v6 = vadd.f32 %v1952_v40, %v3294_v4 }
 0x32b   : > { %v1954_v45 = vpop.f32.mrf.mxu1 }
 0x32c   : > { %1706 = vst [vmem:[%s3297_s14 + $0x80] sm:$0xff] %v1660_v6  ;;  %v1955_v8 = vadd.f32 %v1954_v45, %v1953_v16 }
 0x32d   : > { %v1956_v43 = vpop.f32.mrf.mxu1 }
 0x32e   : > { %v1663_v58 = vadd.f32 %v1955_v8, %v3294_v4 }
 0x32f   : > { %v1957_v21 = vpop.f32.mrf.mxu1 }
 0x330   : > { %1707 = vst [vmem:[%s3297_s14 + $0x88] sm:$0xff] %v1663_v58  ;;  %v1958_v30 = vadd.f32 %v1957_v21, %v1956_v43 }
 0x331   : > { %v1959_v18 = vpop.f32.mrf.mxu1 }
 0x332   : > { %v1668_v48 = vadd.f32 %v1958_v30, %v3294_v4 }
 0x333   : > { %v1960_v50 = vpop.f32.mrf.mxu1 }
 0x334   : > { %1708 = vst [vmem:[%s3297_s14 + $0x90] sm:$0xff] %v1668_v48  ;;  %v1961_v13 = vadd.f32 %v1960_v50, %v1959_v18 }
 0x335   : > { %v1962_v28 = vpop.f32.mrf.mxu1 }
 0x336   : > { %v1671_v52 = vadd.f32 %v1961_v13, %v3294_v4 }
 0x337   : > { %v1963_v11 = vpop.f32.mrf.mxu1 }
 0x338   : > { %1709 = vst [vmem:[%s3297_s14 + $0x98] sm:$0xff] %v1671_v52  ;;  %v1964_v29 = vadd.f32 %v1963_v11, %v1962_v28 }
 0x339   : > { %v1965_v32 = vpop.f32.mrf.mxu1 }
 0x33a   : > { %v1676_v35 = vadd.f32 %v1964_v29, %v3294_v4 }
 0x33b   : > { %v1966_v1 = vpop.f32.mrf.mxu1 }
 0x33c   : > { %1710 = vst [vmem:[%s3297_s14 + $0xa0] sm:$0xff] %v1676_v35  ;;  %v1967_v38 = vadd.f32 %v1966_v1, %v1965_v32 }
 0x33d   : > { %v1968_v2 = vpop.f32.mrf.mxu1 }
 0x33e   : > { %v1679_v53 = vadd.f32 %v1967_v38, %v3294_v4 }
 0x33f   : > { %v1969_v60 = vpop.f32.mrf.mxu1 }
 0x340   : > { %1711 = vst [vmem:[%s3297_s14 + $0xa8] sm:$0xff] %v1679_v53  ;;  %v1970_v17 = vadd.f32 %v1969_v60, %v1968_v2 }
 0x341   : > { %v1971_v7 = vpop.f32.mrf.mxu1 }
 0x342   : > { %v1684_v27 = vadd.f32 %v1970_v17, %v3294_v4 }
 0x343   : > { %v1972_v26 = vpop.f32.mrf.mxu1 }
 0x344   : > { %1712 = vst [vmem:[%s3297_s14 + $0xb0] sm:$0xff] %v1684_v27  ;;  %v1973_v46 = vadd.f32 %v1972_v26, %v1971_v7 }
 0x346   : > { %v1687_v0 = vadd.f32 %v1973_v46, %v3294_v4 }
 0x348   : > { %1713 = vst [vmem:[%s3297_s14 + $0xb8] sm:$0xff] %v1687_v0 }
 0x349   : > { %2353 = shalt.err (!%p2350_p9)
}
 0x34a   : > { %s2354_s24 = scalar_lea.hbm %s3349_s15, 3072  ;;  %s2358_s11 = scalar_lea.hbm %s3401_s5, 6144 }
 0x34b   : > { %p2355_p13 = scmp.ne.s32.totalorder %s3349_s15, %s2354_s24  ;;  %p2359_p4 = scmp.lt.s32.totalorder %s3349_s15, %s3401_s5 }
 0x34c   : > { %p2360_p8 = scmp.lt.s32.totalorder %s2358_s11, %s2354_s24 }
 0x34d   : > { %p2356_p5 = pnand %p2355_p13, %p3450_p10 }
 0x34e   : > { %p2361_p7 = por %p2360_p8, %p2359_p4 }
 0x34f   : > { %p2357_p0 = pneg %p2356_p5 }
 0x351   : > { %p2362_p11 = pnand %p2361_p7, %p2357_p0 }
 0x353   : > { %2365 = shalt.err (!%p2362_p11)
}
 0x354   : > { %s2420_s29 = smov 128   ;;  %s2421_s10 = smov 8  }
 0x355   : > { %1987 = dma.vmem_to_hbm [thread:$0]  (%p3450_p10), %s3352_s7, 3072, %s3349_s15, %s1715_s22, %s2420_s29, %s2420_s29, %s2421_s10  }
 0x356 PF: > { %s1743_s12 = sand.u32 1, %s2396_s18   ;;  %p3451_p1 = scmp.ne.s32.totalorder %s3418_s25, 0 }
 0x357   : > { %p3452_p2 = scmp.ge.s32.totalorder %s2408_s21, 2  ;;  %s1744_s16 = scalar_lea.sflag [#allocation4], %s1743_s12 }
 0x359   : > { %p2001_p6 = pnand %p3452_p2, %p3451_p1 }
 0x35b   : > { %p2002_p12 = pneg %p2001_p6 }
 0x35d   : > { %2391 = dma.done.wait (%p2002_p12), %s1744_s16, 3072  }
 0x35e   : > { %2393 = vsyncadd (%p2002_p12), %s1744_s16, 4294964224  ;;  %p19_p3 = scmp.ge.s32.totalorder %s2524_s17, 4   ;;  %s3453_s18 = smov %s2400_s19 }
 0x35f   : > { %s3454_s19 = smov %s2404_s20  ;;  %s3455_s20 = smov %s2533_s28 }
 0x360   : > { %s3456_s21 = smov %s2524_s17  ;;  %21 = sbr.rel (!%p19_p3) target bundleno = 6 (0x6), region = 93 }
 0x365   :  { %1749 = vsyncpa [#allocation3], 1 }
 0x366   :  { %1751 = vsyncpa [#allocation3 + $0x1], 1 }
 0x367   :  { %1752 = vsyncpa [#allocation6], 1 }
 0x368   :  { %1753 = vsyncpa [#allocation4], 1 }
 0x369   :  { %1755 = vsyncpa [#allocation4 + $0x1], 1 }

</bundles_post_ra>
